<compile_context>
chip_gen: v6e
topology: v6e:2x2x1
jax: 0.10.0
libtpu: 0.0.40
codegen_flags: <defaults>
</compile_context>

<pallas_src>
import functools

import jax
import jax.numpy as jnp
from jax.experimental import pallas as pl
from jax.experimental.pallas import tpu as pltpu

EPS = 1e-5
LANE = 128
MM_TILE_R = 512                    # row tile for the im2col matmul path
VMEM_LIMIT = 48 * 1024 * 1024      # <= v7x 64 MiB/TC; plenty on v5e/v6e


def _ceil_to(x, m):
    return (x + m - 1) // m * m


def _pad2d(a, rows, cols):
    r, c = a.shape
    return jnp.pad(a, ((0, rows - r), (0, cols - c)))


# ------------------------------ kernels -----------------------------------
def _conv3x3_flat_kernel(x_ref, w_ref, m_ref, sc_ref, sh_ref,
                         y_ref, ssum_ref, ssq_ref, *, wp, core, fuse_bn_relu):
    """Stride-1 3x3 conv over one image in FlatPad layout.

    x_ref : (1, L, Cin_p)  bf16  FlatPad input
    w_ref : (9, Cin_p, Cout_p) bf16, resident
    m_ref : (L, 1) f32 validity mask (1 for real pixels, 0 for padding/guards)
    sc/sh : (1, Cin_p) f32; when fuse_bn_relu, BN+ReLU of the *input* is
            applied tap-wise (used to fuse BN1+ReLU into conv2)
    y_ref : (1, L, Cout_p) bf16 FlatPad output (borders zeroed)
    ssum/ssq : (1, 1, Cout_p) f32 per-image partial BN stats (from f32 acc)
    """
    p0 = wp + 1                               # start of the "core" rows
    acc = None
    for t in range(9):
        kh, kw = divmod(t, 3)
        d = kh * wp + kw                      # constant flat offset of tap t
        tap = x_ref[0, pl.ds(d, core), :]
        if fuse_bn_relu:
            v = tap.astype(jnp.float32) * sc_ref[...] + sh_ref[...]
            v = jnp.maximum(v, 0.0) * m_ref[pl.ds(d, core), :]
            tap = v.astype(jnp.bfloat16)
        part = jnp.dot(tap, w_ref[t], preferred_element_type=jnp.float32)
        acc = part if acc is None else acc + part
    # zero the output's padding columns (they are the next conv's W-padding)
    acc = acc * m_ref[pl.ds(p0, core), :]
    ssum_ref[...] = jnp.sum(acc, axis=0, keepdims=True).reshape(ssum_ref.shape)
    ssq_ref[...] = jnp.sum(acc * acc, axis=0, keepdims=True).reshape(ssq_ref.shape)
    y_ref[...] = jnp.zeros(y_ref.shape, y_ref.dtype)      # border rows = 0
    y_ref[0, pl.ds(p0, core), :] = acc.astype(y_ref.dtype)


def _matmul_stats_kernel(p_ref, w_ref, y_ref, ssum_ref, ssq_ref):
    """Row-tiled matmul (bf16 x bf16 -> f32) + per-tile partial BN stats.

    Used for the stride-2 conv1 (im2col) and the 1x1 projection shortcut.
    Stats are written (not accumulated) so the grid axis is fully parallel.
    Zero-padded rows/columns contribute exactly 0 to both sums.
    """
    y = jnp.dot(p_ref[...], w_ref[...], preferred_element_type=jnp.float32)
    y_ref[...] = y.astype(y_ref.dtype)
    ssum_ref[...] = jnp.sum(y, axis=0, keepdims=True).reshape(ssum_ref.shape)
    ssq_ref[...] = jnp.sum(y * y, axis=0, keepdims=True).reshape(ssq_ref.shape)


def _bn_add_relu_kernel(y_ref, s_ref, scy_ref, shy_ref, scs_ref, shs_ref,
                        o_ref, *, p0, core):
    """Final pass: out = relu(BN2(y2) + affine(shortcut)) over the core rows."""
    y = y_ref[0, pl.ds(p0, core), :].astype(jnp.float32)
    s = s_ref[0, pl.ds(p0, core), :].astype(jnp.float32)
    t = y * scy_ref[...] + shy_ref[...] + s * scs_ref[...] + shs_ref[...]
    o_ref[...] = jnp.maximum(t, 0.0).reshape(o_ref.shape)


# ------------------------------ pallas wrappers ----------------------------
def _conv3x3_flat(xf, w9, mask, scale_in, shift_in, H, W, fuse_bn_relu):
    N, L, cin_p = xf.shape
    cout_p = w9.shape[-1]
    wp = W + 2
    core = H * wp
    kernel = functools.partial(_conv3x3_flat_kernel, wp=wp, core=core,
                               fuse_bn_relu=fuse_bn_relu)
    flops = 2 * N * 9 * core * cin_p * cout_p
    bytes_accessed = (xf.size * 2 + w9.size * 2 + mask.size * 4
                      + N * L * cout_p * 2 + 2 * N * cout_p * 4)
    return pl.pallas_call(
        kernel,
        grid=(N,),
        in_specs=[pl.BlockSpec((1, L, cin_p), lambda n: (n, 0, 0)),
                  pl.BlockSpec((9, cin_p, cout_p), lambda n: (0, 0, 0)),
                  pl.BlockSpec((L, 1), lambda n: (0, 0)),
                  pl.BlockSpec((1, cin_p), lambda n: (0, 0)),
                  pl.BlockSpec((1, cin_p), lambda n: (0, 0))],
        out_specs=[pl.BlockSpec((1, L, cout_p), lambda n: (n, 0, 0)),
                   pl.BlockSpec((1, 1, cout_p), lambda n: (n, 0, 0)),
                   pl.BlockSpec((1, 1, cout_p), lambda n: (n, 0, 0))],
        out_shape=(jax.ShapeDtypeStruct((N, L, cout_p), jnp.bfloat16),
                   jax.ShapeDtypeStruct((N, 1, cout_p), jnp.float32),
                   jax.ShapeDtypeStruct((N, 1, cout_p), jnp.float32)),
        compiler_params=pltpu.CompilerParams(
            dimension_semantics=("parallel",),
            vmem_limit_bytes=VMEM_LIMIT),
        cost_estimate=pl.CostEstimate(flops=flops, transcendentals=0,
                                      bytes_accessed=bytes_accessed),
    )(xf, w9, mask, scale_in, shift_in)


def _matmul_stats(patches, weights, tile_r):
    r_pad, k_pad = patches.shape
    _, c_pad = weights.shape
    n_tiles = r_pad // tile_r
    flops = 2 * r_pad * k_pad * c_pad
    bytes_accessed = (patches.size * 2 + weights.size * 2
                      + r_pad * c_pad * 2 + 2 * n_tiles * c_pad * 4)
    return pl.pallas_call(
        _matmul_stats_kernel,
        grid=(n_tiles,),
        in_specs=[pl.BlockSpec((tile_r, k_pad), lambda i: (i, 0)),
                  pl.BlockSpec((k_pad, c_pad), lambda i: (0, 0))],
        out_specs=[pl.BlockSpec((tile_r, c_pad), lambda i: (i, 0)),
                   pl.BlockSpec((1, 1, c_pad), lambda i: (i, 0, 0)),
                   pl.BlockSpec((1, 1, c_pad), lambda i: (i, 0, 0))],
        out_shape=(jax.ShapeDtypeStruct((r_pad, c_pad), jnp.bfloat16),
                   jax.ShapeDtypeStruct((n_tiles, 1, c_pad), jnp.float32),
                   jax.ShapeDtypeStruct((n_tiles, 1, c_pad), jnp.float32)),
        compiler_params=pltpu.CompilerParams(
            dimension_semantics=("parallel",),
            vmem_limit_bytes=VMEM_LIMIT),
        cost_estimate=pl.CostEstimate(flops=flops, transcendentals=0,
                                      bytes_accessed=bytes_accessed),
    )(patches, weights)


def _bn_add_relu(y_flat, s_flat, sc_y, sh_y, sc_s, sh_s, H, W):
    N, L, c_pad = y_flat.shape
    wp = W + 2
    core = H * wp
    p0 = wp + 1
    kernel = functools.partial(_bn_add_relu_kernel, p0=p0, core=core)
    bytes_accessed = 2 * N * L * c_pad * 2 + N * core * c_pad * 4 + 4 * c_pad * 4
    return pl.pallas_call(
        kernel,
        grid=(N,),
        in_specs=[pl.BlockSpec((1, L, c_pad), lambda n: (n, 0, 0)),
                  pl.BlockSpec((1, L, c_pad), lambda n: (n, 0, 0)),
                  pl.BlockSpec((1, c_pad), lambda n: (0, 0)),
                  pl.BlockSpec((1, c_pad), lambda n: (0, 0)),
                  pl.BlockSpec((1, c_pad), lambda n: (0, 0)),
                  pl.BlockSpec((1, c_pad), lambda n: (0, 0))],
        out_specs=pl.BlockSpec((1, core, c_pad), lambda n: (n, 0, 0)),
        out_shape=jax.ShapeDtypeStruct((N, core, c_pad), jnp.float32),
        compiler_params=pltpu.CompilerParams(
            dimension_semantics=("parallel",),
            vmem_limit_bytes=VMEM_LIMIT),
        cost_estimate=pl.CostEstimate(flops=6 * N * core * c_pad,
                                      transcendentals=0,
                                      bytes_accessed=bytes_accessed),
    )(y_flat, s_flat, sc_y, sh_y, sc_s, sh_s)


# ------------------------------- JAX glue ----------------------------------
def _to_flatpad(x_nhwc, c_pad):
    """NHWC -> FlatPad: (N, (H+2)*(W+2)+2, c_pad), zero padding + guards."""
    N, H, W, C = x_nhwc.shape
    xp = jnp.pad(x_nhwc, ((0, 0), (1, 1), (1, 1), (0, c_pad - C)))
    flat = xp.reshape(N, (H + 2) * (W + 2), c_pad)
    return jnp.pad(flat, ((0, 0), (1, 1), (0, 0)))


def _flat_mask(H, W):
    """(L, 1) f32 mask: 1.0 at real-pixel positions of the FlatPad layout."""
    wp, hp = W + 2, H + 2
    L = hp * wp + 2
    q = jnp.arange(L) - 1
    i, j = q // wp, q % wp
    valid = (q >= 0) & (q < hp * wp) & (i >= 1) & (i <= H) & (j >= 1) & (j <= W)
    return valid.astype(jnp.float32).reshape(L, 1)


def _pad_w9(w, cin_p, cout_p):
    """(3,3,Cin,Cout) HWIO -> (9, cin_p, cout_p) bf16, zero-padded."""
    kh, kw, ci, co = w.shape
    w9 = w.reshape(9, ci, co)
    w9 = jnp.pad(w9, ((0, 0), (0, cin_p - ci), (0, cout_p - co)))
    return w9.astype(jnp.bfloat16)


def _im2col_3x3(x_nhwc, stride):
    """3x3 patches with padding=1 -> (N*Ho*Wo, 9*C). Only for stride-2 conv1."""
    N, H, W, C = x_nhwc.shape
    Ho = (H + 2 - 3) // stride + 1
    Wo = (W + 2 - 3) // stride + 1
    xp = jnp.pad(x_nhwc, ((0, 0), (1, 1), (1, 1), (0, 0)))
    cols = []
    for kh in range(3):
        for kw in range(3):
            patch = xp[:, kh:kh + stride * (Ho - 1) + 1:stride,
                       kw:kw + stride * (Wo - 1) + 1:stride, :]
            cols.append(patch.reshape(N * Ho * Wo, C))
    return jnp.concatenate(cols, axis=-1), (N, Ho, Wo)


def _bn_affine(ssum, ssq, gamma, beta, count, c_pad):
    """Finalize training-mode BN (biased var) from per-step partial sums."""
    s = jnp.sum(ssum, axis=0)                 # (1, c_pad)
    q = jnp.sum(ssq, axis=0)
    mean = s / count
    var = jnp.maximum(q / count - mean * mean, 0.0)   # clamp (f32 cancellation)
    g = _pad2d(gamma.reshape(1, -1).astype(jnp.float32), 1, c_pad)
    b = _pad2d(beta.reshape(1, -1).astype(jnp.float32), 1, c_pad)
    scale = g * jax.lax.rsqrt(var + EPS)
    shift = b - mean * scale
    return scale, shift


@jax.jit
def basic_block_forward(x_nchw, params):
    """Forward of BasicBlock. Input/output in PyTorch NCHW layout."""
    x = jnp.transpose(x_nchw, (0, 2, 3, 1)).astype(jnp.float32)      # -> NHWC
    N, H, W, Cin = x.shape
    Cout = params["w1"].shape[-1]
    stride = 1 if Cin == Cout else 2
    cin_p = _ceil_to(Cin, LANE)
    c_pad = _ceil_to(Cout, LANE)

    if stride == 1:
        # ---- conv1 (3x3, s=1) straight from the FlatPad input ------------
        Ho, Wo = H, W
        mask = _flat_mask(H, W)
        xf = _to_flatpad(x, cin_p).astype(jnp.bfloat16)
        w1f = _pad_w9(params["w1"], cin_p, c_pad)
        ones_in = jnp.ones((1, cin_p), jnp.float32)
        zeros_in = jnp.zeros((1, cin_p), jnp.float32)
        y1_flat, s1, q1 = _conv3x3_flat(xf, w1f, mask, ones_in, zeros_in,
                                        H, W, fuse_bn_relu=False)
        sc1, sh1 = _bn_affine(s1, q1, params["g1"], params["b1"],
                              N * H * W, c_pad)
        # identity shortcut: the already-built bf16 FlatPad x, scale=1/shift=0
        s_flat = xf
        sc_s = jnp.ones((1, c_pad), jnp.float32)
        sh_s = jnp.zeros((1, c_pad), jnp.float32)
    else:
        # ---- conv1 (3x3, s=2) via XLA im2col + matmul kernel --------------
        Ho, Wo = (H - 1) // 2 + 1, (W - 1) // 2 + 1
        R = N * Ho * Wo
        tile_r = min(MM_TILE_R, _ceil_to(R, 8))
        r_pad = _ceil_to(R, tile_r)
        p1, _ = _im2col_3x3(x, 2)
        k1_pad = _ceil_to(9 * Cin, LANE)
        p1p = _pad2d(p1, r_pad, k1_pad).astype(jnp.bfloat16)
        w1p = _pad2d(params["w1"].reshape(9 * Cin, Cout),
                     k1_pad, c_pad).astype(jnp.bfloat16)
        y1_rows, s1, q1 = _matmul_stats(p1p, w1p, tile_r)
        sc1, sh1 = _bn_affine(s1, q1, params["g1"], params["b1"], R, c_pad)
        mask = _flat_mask(Ho, Wo)
        y1_flat = _to_flatpad(y1_rows[:R].reshape(N, Ho, Wo, c_pad), c_pad)

        # ---- projection shortcut: 1x1 stride-2 conv + BN -------------------
        xs = x[:, ::2, ::2, :].reshape(R, Cin)
        xsp = _pad2d(xs, r_pad, cin_p).astype(jnp.bfloat16)
        wsp = _pad2d(params["ws"].reshape(Cin, Cout),
                     cin_p, c_pad).astype(jnp.bfloat16)
        s_rows, ss, sq = _matmul_stats(xsp, wsp, tile_r)
        sc_s, sh_s = _bn_affine(ss, sq, params["gs"], params["bs"], R, c_pad)
        s_flat = _to_flatpad(s_rows[:R].reshape(N, Ho, Wo, c_pad), c_pad)

    # ---- conv2 (3x3, s=1) with BN1 + ReLU fused into its tap loads --------
    w2f = _pad_w9(params["w2"], c_pad, c_pad)
    y2_flat, s2, q2 = _conv3x3_flat(y1_flat, w2f, mask, sc1, sh1,
                                    Ho, Wo, fuse_bn_relu=True)
    sc2, sh2 = _bn_affine(s2, q2, params["g2"], params["b2"],
                          N * Ho * Wo, c_pad)

    # ---- BN2 + shortcut add + ReLU ----------------------------------------
    out_core = _bn_add_relu(y2_flat, s_flat, sc2, sh2, sc_s, sh_s, Ho, Wo)
    out = out_core.reshape(N, Ho, Wo + 2, c_pad)[:, :, 1:Wo + 1, :Cout]
    return jnp.transpose(out, (0, 3, 1, 2))                          # -> NCHW


# --------------------------- params & reference ----------------------------
def init_params(key, cin, cout):
    ks = jax.random.split(key, 9)

    def w(k, shape, fan_in):
        bound = 1.0 / float(fan_in) ** 0.5
        return jax.random.uniform(k, shape, jnp.float32, -bound, bound)

    params = {
        "w1": w(ks[0], (3, 3, cin, cout), 9 * cin),            # conv1, HWIO
        "g1": 1.0 + 0.1 * jax.random.normal(ks[1], (1, cout), jnp.float32),
        "b1": 0.1 * jax.random.normal(ks[2], (1, cout), jnp.float32),
        "w2": w(ks[3], (3, 3, cout, cout), 9 * cout),          # conv2, HWIO
        "g2": 1.0 + 0.1 * jax.random.normal(ks[4], (1, cout), jnp.float32),
        "b2": 0.1 * jax.random.normal(ks[5], (1, cout), jnp.float32),
    }
    if cin != cout:
        params["ws"] = w(ks[6], (1, 1, cin, cout), cin)        # 1x1 shortcut
        params["gs"] = 1.0 + 0.1 * jax.random.normal(ks[7], (1, cout), jnp.float32)
        params["bs"] = 0.1 * jax.random.normal(ks[8], (1, cout), jnp.float32)
    return params


def reference_forward(x_nchw, params, matmul_dtype=jnp.float32,
                      store_dtype=jnp.float32):
    """Pure-JAX reference.  matmul_dtype=bf16 / store_dtype=bf16 mirrors the
    kernel's bf16 matmuls and bf16-stored intermediates (stats stay f32)."""
    x = jnp.transpose(x_nchw, (0, 2, 3, 1)).astype(jnp.float32)
    Cin = x.shape[-1]
    Cout = params["w1"].shape[-1]
    stride = 1 if Cin == Cout else 2
    dn = ("NHWC", "HWIO", "NHWC")

    def conv(v, w, s, pad):
        return jax.lax.conv_general_dilated(
            v.astype(matmul_dtype), w.astype(matmul_dtype), (s, s),
            [(pad, pad), (pad, pad)], dimension_numbers=dn,
            preferred_element_type=jnp.float32)

    def bn(v, g, b):
        # stats from the f32 conv output; normalization applied to the
        # (possibly bf16-quantized) stored copy -- mirrors the kernel.
        mean = jnp.mean(v, axis=(0, 1, 2), keepdims=True)
        var = jnp.mean((v - mean) ** 2, axis=(0, 1, 2), keepdims=True)
        vq = v.astype(store_dtype).astype(jnp.float32)
        return (vq - mean) * jax.lax.rsqrt(var + EPS) * g.reshape(1, 1, 1, -1) \
            + b.reshape(1, 1, 1, -1)

    out = jax.nn.relu(bn(conv(x, params["w1"], stride, 1),
                         params["g1"], params["b1"]))
    out = bn(conv(out, params["w2"], 1, 1), params["g2"], params["b2"])
    if stride == 1:
        sc = x.astype(store_dtype).astype(jnp.float32)
    else:
        sc = bn(conv(x, params["ws"], stride, 0), params["gs"], params["bs"])
    out = jax.nn.relu(out + sc)
    return jnp.transpose(out, (0, 3, 1, 2))


def _check(out, x, params, tag):
    # Structural check vs a precision-matched reference (bf16 matmuls + bf16
    # stored intermediates): catches tiling/indexing/BN bugs.  The tolerance
    # allows for bf16 1-ulp rounding resonances amplified by BN scaling.
    # Loose check vs the exact f32 reference bounds the total bf16 cost.
    ref_match = reference_forward(x, params, matmul_dtype=jnp.bfloat16,
                                  store_dtype=jnp.bfloat16)
    ref_exact = reference_forward(x, params)
    err_struct = float(jnp.max(jnp.abs(out - ref_match)))
    err_exact = float(jnp.max(jnp.abs(out - ref_exact)))
    assert err_struct < 5e-2, f"{tag}: structural err vs matched ref = {err_struct}"
    assert err_exact < 1.5e-1, f"{tag}: err vs exact f32 ref = {err_exact}"


# ---------------------------------- main -----------------------------------
if __name__ == "__main__":
    key = jax.random.PRNGKey(0)
    kx1, kp1, kx2, kp2 = jax.random.split(key, 4)

    # primary test: in != out -> stride-2 conv1 + 1x1 projection shortcut
    x1 = jax.random.normal(kx1, (2, 4, 16, 16), dtype=jnp.float32)   # NCHW
    params1 = init_params(kp1, 4, 8)
    out1 = jax.block_until_ready(basic_block_forward(x1, params1))
    assert out1.shape == (2, 8, 8, 8), out1.shape
    _check(out1, x1, params1, "projection")

    # secondary test: in == out -> stride-1 conv1 (flat 9-tap kernel) +
    # identity shortcut fed directly from the bf16 FlatPad input.
    x2 = jax.random.normal(kx2, (2, 8, 16, 16), dtype=jnp.float32)
    params2 = init_params(kp2, 8, 8)
    out2 = jax.block_until_ready(basic_block_forward(x2, params2))
    assert out2.shape == (2, 8, 16, 16), out2.shape
    _check(out2, x2, params2, "identity")

    print("KERNEL_OK")
</pallas_src>

<mosaic_0001>
module attributes {stable_mosaic.version = 11 : i64} {
  func.func @_matmul_stats_kernel(%arg0: i32, %arg1: memref<128x128xbf16, #tpu.memory_space<vmem>>, %arg2: memref<128x128xbf16, #tpu.memory_space<vmem>>, %arg3: memref<128x128xbf16, #tpu.memory_space<vmem>>, %arg4: memref<1x1x128xf32, #tpu.memory_space<vmem>>, %arg5: memref<1x1x128xf32, #tpu.memory_space<vmem>>) attributes {dimension_semantics = [#tpu.dimension_semantics<parallel>], iteration_bounds = array<i64: 1>, scalar_prefetch = 0 : i64, scratch_operands = 0 : i64, tpu.core_type = #tpu.core_type<tc>, window_params = [{transform_indices = @transform_0, window_bounds = array<i64: 128, 128>}, {pipeline_mode = #tpu.pipeline_mode<synchronous>, transform_indices = @transform_1, window_bounds = array<i64: 128, 128>}, {transform_indices = @transform_2, window_bounds = array<i64: 128, 128>}, {transform_indices = @transform_3, window_bounds = array<i64: 1, 1, 128>}, {transform_indices = @transform_4, window_bounds = array<i64: 1, 1, 128>}]} {
    %c0 = arith.constant 0 : index
    %c0_0 = arith.constant 0 : index
    %0 = vector.load %arg1[%c0, %c0_0] : memref<128x128xbf16, #tpu.memory_space<vmem>>, vector<128x128xbf16>
    %c0_1 = arith.constant 0 : index
    %c0_2 = arith.constant 0 : index
    %1 = vector.load %arg2[%c0_1, %c0_2] : memref<128x128xbf16, #tpu.memory_space<vmem>>, vector<128x128xbf16>
    %cst = arith.constant dense<0.000000e+00> : vector<128x128xf32>
    %2 = tpu.matmul %0, %1, %cst {dimension_numbers = #tpu.dot_dimension_numbers<[1], [0], [0], [1], [0, 0, 1, 1], [], []>} : vector<128x128xbf16>, vector<128x128xbf16>, vector<128x128xf32> -> vector<128x128xf32>
    %3 = arith.truncf %2 : vector<128x128xf32> to vector<128x128xbf16>
    %c0_3 = arith.constant 0 : index
    %c0_4 = arith.constant 0 : index
    %4 = vector.load %arg3[%c0_3, %c0_4] : memref<128x128xbf16, #tpu.memory_space<vmem>>, vector<128x128xbf16>
    tpu.vector_store %arg3[%c0_3, %c0_4], %3 {strides = array<i32>} : memref<128x128xbf16, #tpu.memory_space<vmem>>, vector<128x128xbf16>,
    %cst_5 = arith.constant dense<0.000000e+00> : vector<128xf32>
    %5 = vector.multi_reduction <add>, %2, %cst_5 [0] : vector<128x128xf32> to vector<128xf32>
    %6 = vector.shape_cast %5 : vector<128xf32> to vector<1x128xf32>
    %7 = vector.shape_cast %6 : vector<1x128xf32> to vector<1x1x128xf32>
    %c0_6 = arith.constant 0 : index
    %c0_7 = arith.constant 0 : index
    %c0_8 = arith.constant 0 : index
    %8 = vector.load %arg4[%c0_6, %c0_7, %c0_8] : memref<1x1x128xf32, #tpu.memory_space<vmem>>, vector<1x1x128xf32>
    tpu.vector_store %arg4[%c0_6, %c0_7, %c0_8], %7 {strides = array<i32>} : memref<1x1x128xf32, #tpu.memory_space<vmem>>, vector<1x1x128xf32>,
    %9 = arith.mulf %2, %2 : vector<128x128xf32>
    %cst_9 = arith.constant dense<0.000000e+00> : vector<128xf32>
    %10 = vector.multi_reduction <add>, %9, %cst_9 [0] : vector<128x128xf32> to vector<128xf32>
    %11 = vector.shape_cast %10 : vector<128xf32> to vector<1x128xf32>
    %12 = vector.shape_cast %11 : vector<1x128xf32> to vector<1x1x128xf32>
    %c0_10 = arith.constant 0 : index
    %c0_11 = arith.constant 0 : index
    %c0_12 = arith.constant 0 : index
    %13 = vector.load %arg5[%c0_10, %c0_11, %c0_12] : memref<1x1x128xf32, #tpu.memory_space<vmem>>, vector<1x1x128xf32>
    tpu.vector_store %arg5[%c0_10, %c0_11, %c0_12], %12 {strides = array<i32>} : memref<1x1x128xf32, #tpu.memory_space<vmem>>, vector<1x1x128xf32>,
    return
  }
  func.func @transform_0(%arg0: i32) -> (i32, i32) {
    %c0_i32 = arith.constant 0 : i32
    %c0_i32_0 = arith.constant 0 : i32
    return %arg0, %c0_i32 : i32, i32
  }
  func.func @transform_1(%arg0: i32) -> (i32, i32) {
    %c0_i32 = arith.constant 0 : i32
    %c0_i32_0 = arith.constant 0 : i32
    %c0_i32_1 = arith.constant 0 : i32
    return %c0_i32, %c0_i32_0 : i32, i32
  }
  func.func @transform_2(%arg0: i32) -> (i32, i32) {
    %c0_i32 = arith.constant 0 : i32
    %c0_i32_0 = arith.constant 0 : i32
    return %arg0, %c0_i32 : i32, i32
  }
  func.func @transform_3(%arg0: i32) -> (i32, i32, i32) {
    %c0_i32 = arith.constant 0 : i32
    %c0_i32_0 = arith.constant 0 : i32
    %c0_i32_1 = arith.constant 0 : i32
    return %arg0, %c0_i32, %c0_i32_0 : i32, i32, i32
  }
  func.func @transform_4(%arg0: i32) -> (i32, i32, i32) {
    %c0_i32 = arith.constant 0 : i32
    %c0_i32_0 = arith.constant 0 : i32
    %c0_i32_1 = arith.constant 0 : i32
    return %arg0, %c0_i32, %c0_i32_0 : i32, i32, i32
  }
}

module attributes {stable_mosaic.version = 11 : i64} {
  func.func @_conv3x3_flat_kernel(%arg0: i32, %arg1: memref<1x102x128xbf16, #tpu.memory_space<vmem>>, %arg2: memref<9x128x128xbf16, #tpu.memory_space<vmem>>, %arg3: memref<102x1xf32, #tpu.memory_space<vmem>>, %arg4: memref<1x128xf32, #tpu.memory_space<vmem>>, %arg5: memref<1x128xf32, #tpu.memory_space<vmem>>, %arg6: memref<1x102x128xbf16, #tpu.memory_space<vmem>>, %arg7: memref<1x1x128xf32, #tpu.memory_space<vmem>>, %arg8: memref<1x1x128xf32, #tpu.memory_space<vmem>>) attributes {dimension_semantics = [#tpu.dimension_semantics<parallel>], iteration_bounds = array<i64: 2>, scalar_prefetch = 0 : i64, scratch_operands = 0 : i64, tpu.core_type = #tpu.core_type<tc>, window_params = [{transform_indices = @transform_0, window_bounds = array<i64: 1, 102, 128>}, {pipeline_mode = #tpu.pipeline_mode<synchronous>, transform_indices = @transform_1, window_bounds = array<i64: 9, 128, 128>}, {pipeline_mode = #tpu.pipeline_mode<synchronous>, transform_indices = @transform_2, window_bounds = array<i64: 102, 1>}, {pipeline_mode = #tpu.pipeline_mode<synchronous>, transform_indices = @transform_3, window_bounds = array<i64: 1, 128>}, {pipeline_mode = #tpu.pipeline_mode<synchronous>, transform_indices = @transform_4, window_bounds = array<i64: 1, 128>}, {transform_indices = @transform_5, window_bounds = array<i64: 1, 102, 128>}, {transform_indices = @transform_6, window_bounds = array<i64: 1, 1, 128>}, {transform_indices = @transform_7, window_bounds = array<i64: 1, 1, 128>}]} {
    %c0 = arith.constant 0 : index
    %c0_0 = arith.constant 0 : index
    %c0_1 = arith.constant 0 : index
    %0 = vector.load %arg1[%c0, %c0_0, %c0_1] : memref<1x102x128xbf16, #tpu.memory_space<vmem>>, vector<1x80x128xbf16>
    %1 = vector.shape_cast %0 : vector<1x80x128xbf16> to vector<80x128xbf16>
    %2 = arith.extf %1 : vector<80x128xbf16> to vector<80x128xf32>
    %c0_2 = arith.constant 0 : index
    %c0_3 = arith.constant 0 : index
    %3 = vector.load %arg4[%c0_2, %c0_3] : memref<1x128xf32, #tpu.memory_space<vmem>>, vector<1x128xf32>
    %4 = vector.broadcast %3 : vector<1x128xf32> to vector<80x128xf32>
    %5 = arith.mulf %2, %4 : vector<80x128xf32>
    %c0_4 = arith.constant 0 : index
    %c0_5 = arith.constant 0 : index
    %6 = vector.load %arg5[%c0_4, %c0_5] : memref<1x128xf32, #tpu.memory_space<vmem>>, vector<1x128xf32>
    %7 = vector.broadcast %6 : vector<1x128xf32> to vector<80x128xf32>
    %8 = arith.addf %5, %7 : vector<80x128xf32>
    %cst = arith.constant 0.000000e+00 : f32
    %9 = vector.broadcast %cst : f32 to vector<80x128xf32>
    %10 = arith.maximumf %8, %9 : vector<80x128xf32>
    %c0_6 = arith.constant 0 : index
    %c0_7 = arith.constant 0 : index
    %11 = vector.load %arg3[%c0_6, %c0_7] : memref<102x1xf32, #tpu.memory_space<vmem>>, vector<80x1xf32>
    %12 = vector.broadcast %11 : vector<80x1xf32> to vector<80x128xf32>
    %13 = arith.mulf %10, %12 : vector<80x128xf32>
    %14 = arith.truncf %13 : vector<80x128xf32> to vector<80x128xbf16>
    %c0_8 = arith.constant 0 : index
    %c0_9 = arith.constant 0 : index
    %c0_10 = arith.constant 0 : index
    %15 = vector.load %arg2[%c0_8, %c0_9, %c0_10] : memref<9x128x128xbf16, #tpu.memory_space<vmem>>, vector<1x128x128xbf16>
    %16 = vector.shape_cast %15 : vector<1x128x128xbf16> to vector<128x128xbf16>
    %cst_11 = arith.constant dense<0.000000e+00> : vector<80x128xf32>
    %17 = tpu.matmul %14, %16, %cst_11 {dimension_numbers = #tpu.dot_dimension_numbers<[1], [0], [0], [1], [0, 0, 1, 1], [], []>} : vector<80x128xbf16>, vector<128x128xbf16>, vector<80x128xf32> -> vector<80x128xf32>
    %c0_12 = arith.constant 0 : index
    %c1 = arith.constant 1 : index
    %c0_13 = arith.constant 0 : index
    %18 = vector.load %arg1[%c0_12, %c1, %c0_13] : memref<1x102x128xbf16, #tpu.memory_space<vmem>>, vector<1x80x128xbf16>
    %19 = vector.shape_cast %18 : vector<1x80x128xbf16> to vector<80x128xbf16>
    %20 = arith.extf %19 : vector<80x128xbf16> to vector<80x128xf32>
    %c0_14 = arith.constant 0 : index
    %c0_15 = arith.constant 0 : index
    %21 = vector.load %arg4[%c0_14, %c0_15] : memref<1x128xf32, #tpu.memory_space<vmem>>, vector<1x128xf32>
    %22 = vector.broadcast %21 : vector<1x128xf32> to vector<80x128xf32>
    %23 = arith.mulf %20, %22 : vector<80x128xf32>
    %c0_16 = arith.constant 0 : index
    %c0_17 = arith.constant 0 : index
    %24 = vector.load %arg5[%c0_16, %c0_17] : memref<1x128xf32, #tpu.memory_space<vmem>>, vector<1x128xf32>
    %25 = vector.broadcast %24 : vector<1x128xf32> to vector<80x128xf32>
    %26 = arith.addf %23, %25 : vector<80x128xf32>
    %cst_18 = arith.constant 0.000000e+00 : f32
    %27 = vector.broadcast %cst_18 : f32 to vector<80x128xf32>
    %28 = arith.maximumf %26, %27 : vector<80x128xf32>
    %c1_19 = arith.constant 1 : index
    %c0_20 = arith.constant 0 : index
    %29 = vector.load %arg3[%c1_19, %c0_20] : memref<102x1xf32, #tpu.memory_space<vmem>>, vector<80x1xf32>
    %30 = vector.broadcast %29 : vector<80x1xf32> to vector<80x128xf32>
    %31 = arith.mulf %28, %30 : vector<80x128xf32>
    %32 = arith.truncf %31 : vector<80x128xf32> to vector<80x128xbf16>
    %c1_21 = arith.constant 1 : index
    %c0_22 = arith.constant 0 : index
    %c0_23 = arith.constant 0 : index
    %33 = vector.load %arg2[%c1_21, %c0_22, %c0_23] : memref<9x128x128xbf16, #tpu.memory_space<vmem>>, vector<1x128x128xbf16>
    %34 = vector.shape_cast %33 : vector<1x128x128xbf16> to vector<128x128xbf16>
    %cst_24 = arith.constant dense<0.000000e+00> : vector<80x128xf32>
    %35 = tpu.matmul %32, %34, %cst_24 {dimension_numbers = #tpu.dot_dimension_numbers<[1], [0], [0], [1], [0, 0, 1, 1], [], []>} : vector<80x128xbf16>, vector<128x128xbf16>, vector<80x128xf32> -> vector<80x128xf32>
    %36 = arith.addf %17, %35 : vector<80x128xf32>
    %c0_25 = arith.constant 0 : index
    %c2 = arith.constant 2 : index
    %c0_26 = arith.constant 0 : index
    %37 = vector.load %arg1[%c0_25, %c2, %c0_26] : memref<1x102x128xbf16, #tpu.memory_space<vmem>>, vector<1x80x128xbf16>
    %38 = vector.shape_cast %37 : vector<1x80x128xbf16> to vector<80x128xbf16>
    %39 = arith.extf %38 : vector<80x128xbf16> to vector<80x128xf32>
    %c0_27 = arith.constant 0 : index
    %c0_28 = arith.constant 0 : index
    %40 = vector.load %arg4[%c0_27, %c0_28] : memref<1x128xf32, #tpu.memory_space<vmem>>, vector<1x128xf32>
    %41 = vector.broadcast %40 : vector<1x128xf32> to vector<80x128xf32>
    %42 = arith.mulf %39, %41 : vector<80x128xf32>
    %c0_29 = arith.constant 0 : index
    %c0_30 = arith.constant 0 : index
    %43 = vector.load %arg5[%c0_29, %c0_30] : memref<1x128xf32, #tpu.memory_space<vmem>>, vector<1x128xf32>
    %44 = vector.broadcast %43 : vector<1x128xf32> to vector<80x128xf32>
    %45 = arith.addf %42, %44 : vector<80x128xf32>
    %cst_31 = arith.constant 0.000000e+00 : f32
    %46 = vector.broadcast %cst_31 : f32 to vector<80x128xf32>
    %47 = arith.maximumf %45, %46 : vector<80x128xf32>
    %c2_32 = arith.constant 2 : index
    %c0_33 = arith.constant 0 : index
    %48 = vector.load %arg3[%c2_32, %c0_33] : memref<102x1xf32, #tpu.memory_space<vmem>>, vector<80x1xf32>
    %49 = vector.broadcast %48 : vector<80x1xf32> to vector<80x128xf32>
    %50 = arith.mulf %47, %49 : vector<80x128xf32>
    %51 = arith.truncf %50 : vector<80x128xf32> to vector<80x128xbf16>
    %c2_34 = arith.constant 2 : index
    %c0_35 = arith.constant 0 : index
    %c0_36 = arith.constant 0 : index
    %52 = vector.load %arg2[%c2_34, %c0_35, %c0_36] : memref<9x128x128xbf16, #tpu.memory_space<vmem>>, vector<1x128x128xbf16>
    %53 = vector.shape_cast %52 : vector<1x128x128xbf16> to vector<128x128xbf16>
    %cst_37 = arith.constant dense<0.000000e+00> : vector<80x128xf32>
    %54 = tpu.matmul %51, %53, %cst_37 {dimension_numbers = #tpu.dot_dimension_numbers<[1], [0], [0], [1], [0, 0, 1, 1], [], []>} : vector<80x128xbf16>, vector<128x128xbf16>, vector<80x128xf32> -> vector<80x128xf32>
    %55 = arith.addf %36, %54 : vector<80x128xf32>
    %c0_38 = arith.constant 0 : index
    %c10 = arith.constant 10 : index
    %c0_39 = arith.constant 0 : index
    %56 = vector.load %arg1[%c0_38, %c10, %c0_39] : memref<1x102x128xbf16, #tpu.memory_space<vmem>>, vector<1x80x128xbf16>
    %57 = vector.shape_cast %56 : vector<1x80x128xbf16> to vector<80x128xbf16>
    %58 = arith.extf %57 : vector<80x128xbf16> to vector<80x128xf32>
    %c0_40 = arith.constant 0 : index
    %c0_41 = arith.constant 0 : index
    %59 = vector.load %arg4[%c0_40, %c0_41] : memref<1x128xf32, #tpu.memory_space<vmem>>, vector<1x128xf32>
    %60 = vector.broadcast %59 : vector<1x128xf32> to vector<80x128xf32>
    %61 = arith.mulf %58, %60 : vector<80x128xf32>
    %c0_42 = arith.constant 0 : index
    %c0_43 = arith.constant 0 : index
    %62 = vector.load %arg5[%c0_42, %c0_43] : memref<1x128xf32, #tpu.memory_space<vmem>>, vector<1x128xf32>
    %63 = vector.broadcast %62 : vector<1x128xf32> to vector<80x128xf32>
    %64 = arith.addf %61, %63 : vector<80x128xf32>
    %cst_44 = arith.constant 0.000000e+00 : f32
    %65 = vector.broadcast %cst_44 : f32 to vector<80x128xf32>
    %66 = arith.maximumf %64, %65 : vector<80x128xf32>
    %c10_45 = arith.constant 10 : index
    %c0_46 = arith.constant 0 : index
    %67 = vector.load %arg3[%c10_45, %c0_46] : memref<102x1xf32, #tpu.memory_space<vmem>>, vector<80x1xf32>
    %68 = vector.broadcast %67 : vector<80x1xf32> to vector<80x128xf32>
    %69 = arith.mulf %66, %68 : vector<80x128xf32>
    %70 = arith.truncf %69 : vector<80x128xf32> to vector<80x128xbf16>
    %c3 = arith.constant 3 : index
    %c0_47 = arith.constant 0 : index
    %c0_48 = arith.constant 0 : index
    %71 = vector.load %arg2[%c3, %c0_47, %c0_48] : memref<9x128x128xbf16, #tpu.memory_space<vmem>>, vector<1x128x128xbf16>
    %72 = vector.shape_cast %71 : vector<1x128x128xbf16> to vector<128x128xbf16>
    %cst_49 = arith.constant dense<0.000000e+00> : vector<80x128xf32>
    %73 = tpu.matmul %70, %72, %cst_49 {dimension_numbers = #tpu.dot_dimension_numbers<[1], [0], [0], [1], [0, 0, 1, 1], [], []>} : vector<80x128xbf16>, vector<128x128xbf16>, vector<80x128xf32> -> vector<80x128xf32>
    %74 = arith.addf %55, %73 : vector<80x128xf32>
    %c0_50 = arith.constant 0 : index
    %c11 = arith.constant 11 : index
    %c0_51 = arith.constant 0 : index
    %75 = vector.load %arg1[%c0_50, %c11, %c0_51] : memref<1x102x128xbf16, #tpu.memory_space<vmem>>, vector<1x80x128xbf16>
    %76 = vector.shape_cast %75 : vector<1x80x128xbf16> to vector<80x128xbf16>
    %77 = arith.extf %76 : vector<80x128xbf16> to vector<80x128xf32>
    %c0_52 = arith.constant 0 : index
    %c0_53 = arith.constant 0 : index
    %78 = vector.load %arg4[%c0_52, %c0_53] : memref<1x128xf32, #tpu.memory_space<vmem>>, vector<1x128xf32>
    %79 = vector.broadcast %78 : vector<1x128xf32> to vector<80x128xf32>
    %80 = arith.mulf %77, %79 : vector<80x128xf32>
    %c0_54 = arith.constant 0 : index
    %c0_55 = arith.constant 0 : index
    %81 = vector.load %arg5[%c0_54, %c0_55] : memref<1x128xf32, #tpu.memory_space<vmem>>, vector<1x128xf32>
    %82 = vector.broadcast %81 : vector<1x128xf32> to vector<80x128xf32>
    %83 = arith.addf %80, %82 : vector<80x128xf32>
    %cst_56 = arith.constant 0.000000e+00 : f32
    %84 = vector.broadcast %cst_56 : f32 to vector<80x128xf32>
    %85 = arith.maximumf %83, %84 : vector<80x128xf32>
    %c11_57 = arith.constant 11 : index
    %c0_58 = arith.constant 0 : index
    %86 = vector.load %arg3[%c11_57, %c0_58] : memref<102x1xf32, #tpu.memory_space<vmem>>, vector<80x1xf32>
    %87 = vector.broadcast %86 : vector<80x1xf32> to vector<80x128xf32>
    %88 = arith.mulf %85, %87 : vector<80x128xf32>
    %89 = arith.truncf %88 : vector<80x128xf32> to vector<80x128xbf16>
    %c4 = arith.constant 4 : index
    %c0_59 = arith.constant 0 : index
    %c0_60 = arith.constant 0 : index
    %90 = vector.load %arg2[%c4, %c0_59, %c0_60] : memref<9x128x128xbf16, #tpu.memory_space<vmem>>, vector<1x128x128xbf16>
    %91 = vector.shape_cast %90 : vector<1x128x128xbf16> to vector<128x128xbf16>
    %cst_61 = arith.constant dense<0.000000e+00> : vector<80x128xf32>
    %92 = tpu.matmul %89, %91, %cst_61 {dimension_numbers = #tpu.dot_dimension_numbers<[1], [0], [0], [1], [0, 0, 1, 1], [], []>} : vector<80x128xbf16>, vector<128x128xbf16>, vector<80x128xf32> -> vector<80x128xf32>
    %93 = arith.addf %74, %92 : vector<80x128xf32>
    %c0_62 = arith.constant 0 : index
    %c12 = arith.constant 12 : index
    %c0_63 = arith.constant 0 : index
    %94 = vector.load %arg1[%c0_62, %c12, %c0_63] : memref<1x102x128xbf16, #tpu.memory_space<vmem>>, vector<1x80x128xbf16>
    %95 = vector.shape_cast %94 : vector<1x80x128xbf16> to vector<80x128xbf16>
    %96 = arith.extf %95 : vector<80x128xbf16> to vector<80x128xf32>
    %c0_64 = arith.constant 0 : index
    %c0_65 = arith.constant 0 : index
    %97 = vector.load %arg4[%c0_64, %c0_65] : memref<1x128xf32, #tpu.memory_space<vmem>>, vector<1x128xf32>
    %98 = vector.broadcast %97 : vector<1x128xf32> to vector<80x128xf32>
    %99 = arith.mulf %96, %98 : vector<80x128xf32>
    %c0_66 = arith.constant 0 : index
    %c0_67 = arith.constant 0 : index
    %100 = vector.load %arg5[%c0_66, %c0_67] : memref<1x128xf32, #tpu.memory_space<vmem>>, vector<1x128xf32>
    %101 = vector.broadcast %100 : vector<1x128xf32> to vector<80x128xf32>
    %102 = arith.addf %99, %101 : vector<80x128xf32>
    %cst_68 = arith.constant 0.000000e+00 : f32
    %103 = vector.broadcast %cst_68 : f32 to vector<80x128xf32>
    %104 = arith.maximumf %102, %103 : vector<80x128xf32>
    %c12_69 = arith.constant 12 : index
    %c0_70 = arith.constant 0 : index
    %105 = vector.load %arg3[%c12_69, %c0_70] : memref<102x1xf32, #tpu.memory_space<vmem>>, vector<80x1xf32>
    %106 = vector.broadcast %105 : vector<80x1xf32> to vector<80x128xf32>
    %107 = arith.mulf %104, %106 : vector<80x128xf32>
    %108 = arith.truncf %107 : vector<80x128xf32> to vector<80x128xbf16>
    %c5 = arith.constant 5 : index
    %c0_71 = arith.constant 0 : index
    %c0_72 = arith.constant 0 : index
    %109 = vector.load %arg2[%c5, %c0_71, %c0_72] : memref<9x128x128xbf16, #tpu.memory_space<vmem>>, vector<1x128x128xbf16>
    %110 = vector.shape_cast %109 : vector<1x128x128xbf16> to vector<128x128xbf16>
    %cst_73 = arith.constant dense<0.000000e+00> : vector<80x128xf32>
    %111 = tpu.matmul %108, %110, %cst_73 {dimension_numbers = #tpu.dot_dimension_numbers<[1], [0], [0], [1], [0, 0, 1, 1], [], []>} : vector<80x128xbf16>, vector<128x128xbf16>, vector<80x128xf32> -> vector<80x128xf32>
    %112 = arith.addf %93, %111 : vector<80x128xf32>
    %c0_74 = arith.constant 0 : index
    %c20 = arith.constant 20 : index
    %c0_75 = arith.constant 0 : index
    %113 = vector.load %arg1[%c0_74, %c20, %c0_75] : memref<1x102x128xbf16, #tpu.memory_space<vmem>>, vector<1x80x128xbf16>
    %114 = vector.shape_cast %113 : vector<1x80x128xbf16> to vector<80x128xbf16>
    %115 = arith.extf %114 : vector<80x128xbf16> to vector<80x128xf32>
    %c0_76 = arith.constant 0 : index
    %c0_77 = arith.constant 0 : index
    %116 = vector.load %arg4[%c0_76, %c0_77] : memref<1x128xf32, #tpu.memory_space<vmem>>, vector<1x128xf32>
    %117 = vector.broadcast %116 : vector<1x128xf32> to vector<80x128xf32>
    %118 = arith.mulf %115, %117 : vector<80x128xf32>
    %c0_78 = arith.constant 0 : index
    %c0_79 = arith.constant 0 : index
    %119 = vector.load %arg5[%c0_78, %c0_79] : memref<1x128xf32, #tpu.memory_space<vmem>>, vector<1x128xf32>
    %120 = vector.broadcast %119 : vector<1x128xf32> to vector<80x128xf32>
    %121 = arith.addf %118, %120 : vector<80x128xf32>
    %cst_80 = arith.constant 0.000000e+00 : f32
    %122 = vector.broadcast %cst_80 : f32 to vector<80x128xf32>
    %123 = arith.maximumf %121, %122 : vector<80x128xf32>
    %c20_81 = arith.constant 20 : index
    %c0_82 = arith.constant 0 : index
    %124 = vector.load %arg3[%c20_81, %c0_82] : memref<102x1xf32, #tpu.memory_space<vmem>>, vector<80x1xf32>
    %125 = vector.broadcast %124 : vector<80x1xf32> to vector<80x128xf32>
    %126 = arith.mulf %123, %125 : vector<80x128xf32>
    %127 = arith.truncf %126 : vector<80x128xf32> to vector<80x128xbf16>
    %c6 = arith.constant 6 : index
    %c0_83 = arith.constant 0 : index
    %c0_84 = arith.constant 0 : index
    %128 = vector.load %arg2[%c6, %c0_83, %c0_84] : memref<9x128x128xbf16, #tpu.memory_space<vmem>>, vector<1x128x128xbf16>
    %129 = vector.shape_cast %128 : vector<1x128x128xbf16> to vector<128x128xbf16>
    %cst_85 = arith.constant dense<0.000000e+00> : vector<80x128xf32>
    %130 = tpu.matmul %127, %129, %cst_85 {dimension_numbers = #tpu.dot_dimension_numbers<[1], [0], [0], [1], [0, 0, 1, 1], [], []>} : vector<80x128xbf16>, vector<128x128xbf16>, vector<80x128xf32> -> vector<80x128xf32>
    %131 = arith.addf %112, %130 : vector<80x128xf32>
    %c0_86 = arith.constant 0 : index
    %c21 = arith.constant 21 : index
    %c0_87 = arith.constant 0 : index
    %132 = vector.load %arg1[%c0_86, %c21, %c0_87] : memref<1x102x128xbf16, #tpu.memory_space<vmem>>, vector<1x80x128xbf16>
    %133 = vector.shape_cast %132 : vector<1x80x128xbf16> to vector<80x128xbf16>
    %134 = arith.extf %133 : vector<80x128xbf16> to vector<80x128xf32>
    %c0_88 = arith.constant 0 : index
    %c0_89 = arith.constant 0 : index
    %135 = vector.load %arg4[%c0_88, %c0_89] : memref<1x128xf32, #tpu.memory_space<vmem>>, vector<1x128xf32>
    %136 = vector.broadcast %135 : vector<1x128xf32> to vector<80x128xf32>
    %137 = arith.mulf %134, %136 : vector<80x128xf32>
    %c0_90 = arith.constant 0 : index
    %c0_91 = arith.constant 0 : index
    %138 = vector.load %arg5[%c0_90, %c0_91] : memref<1x128xf32, #tpu.memory_space<vmem>>, vector<1x128xf32>
    %139 = vector.broadcast %138 : vector<1x128xf32> to vector<80x128xf32>
    %140 = arith.addf %137, %139 : vector<80x128xf32>
    %cst_92 = arith.constant 0.000000e+00 : f32
    %141 = vector.broadcast %cst_92 : f32 to vector<80x128xf32>
    %142 = arith.maximumf %140, %141 : vector<80x128xf32>
    %c21_93 = arith.constant 21 : index
    %c0_94 = arith.constant 0 : index
    %143 = vector.load %arg3[%c21_93, %c0_94] : memref<102x1xf32, #tpu.memory_space<vmem>>, vector<80x1xf32>
    %144 = vector.broadcast %143 : vector<80x1xf32> to vector<80x128xf32>
    %145 = arith.mulf %142, %144 : vector<80x128xf32>
    %146 = arith.truncf %145 : vector<80x128xf32> to vector<80x128xbf16>
    %c7 = arith.constant 7 : index
    %c0_95 = arith.constant 0 : index
    %c0_96 = arith.constant 0 : index
    %147 = vector.load %arg2[%c7, %c0_95, %c0_96] : memref<9x128x128xbf16, #tpu.memory_space<vmem>>, vector<1x128x128xbf16>
    %148 = vector.shape_cast %147 : vector<1x128x128xbf16> to vector<128x128xbf16>
    %cst_97 = arith.constant dense<0.000000e+00> : vector<80x128xf32>
    %149 = tpu.matmul %146, %148, %cst_97 {dimension_numbers = #tpu.dot_dimension_numbers<[1], [0], [0], [1], [0, 0, 1, 1], [], []>} : vector<80x128xbf16>, vector<128x128xbf16>, vector<80x128xf32> -> vector<80x128xf32>
    %150 = arith.addf %131, %149 : vector<80x128xf32>
    %c0_98 = arith.constant 0 : index
    %c22 = arith.constant 22 : index
    %c0_99 = arith.constant 0 : index
    %151 = vector.load %arg1[%c0_98, %c22, %c0_99] : memref<1x102x128xbf16, #tpu.memory_space<vmem>>, vector<1x80x128xbf16>
    %152 = vector.shape_cast %151 : vector<1x80x128xbf16> to vector<80x128xbf16>
    %153 = arith.extf %152 : vector<80x128xbf16> to vector<80x128xf32>
    %c0_100 = arith.constant 0 : index
    %c0_101 = arith.constant 0 : index
    %154 = vector.load %arg4[%c0_100, %c0_101] : memref<1x128xf32, #tpu.memory_space<vmem>>, vector<1x128xf32>
    %155 = vector.broadcast %154 : vector<1x128xf32> to vector<80x128xf32>
    %156 = arith.mulf %153, %155 : vector<80x128xf32>
    %c0_102 = arith.constant 0 : index
    %c0_103 = arith.constant 0 : index
    %157 = vector.load %arg5[%c0_102, %c0_103] : memref<1x128xf32, #tpu.memory_space<vmem>>, vector<1x128xf32>
    %158 = vector.broadcast %157 : vector<1x128xf32> to vector<80x128xf32>
    %159 = arith.addf %156, %158 : vector<80x128xf32>
    %cst_104 = arith.constant 0.000000e+00 : f32
    %160 = vector.broadcast %cst_104 : f32 to vector<80x128xf32>
    %161 = arith.maximumf %159, %160 : vector<80x128xf32>
    %c22_105 = arith.constant 22 : index
    %c0_106 = arith.constant 0 : index
    %162 = vector.load %arg3[%c22_105, %c0_106] : memref<102x1xf32, #tpu.memory_space<vmem>>, vector<80x1xf32>
    %163 = vector.broadcast %162 : vector<80x1xf32> to vector<80x128xf32>
    %164 = arith.mulf %161, %163 : vector<80x128xf32>
    %165 = arith.truncf %164 : vector<80x128xf32> to vector<80x128xbf16>
    %c8 = arith.constant 8 : index
    %c0_107 = arith.constant 0 : index
    %c0_108 = arith.constant 0 : index
    %166 = vector.load %arg2[%c8, %c0_107, %c0_108] : memref<9x128x128xbf16, #tpu.memory_space<vmem>>, vector<1x128x128xbf16>
    %167 = vector.shape_cast %166 : vector<1x128x128xbf16> to vector<128x128xbf16>
    %cst_109 = arith.constant dense<0.000000e+00> : vector<80x128xf32>
    %168 = tpu.matmul %165, %167, %cst_109 {dimension_numbers = #tpu.dot_dimension_numbers<[1], [0], [0], [1], [0, 0, 1, 1], [], []>} : vector<80x128xbf16>, vector<128x128xbf16>, vector<80x128xf32> -> vector<80x128xf32>
    %169 = arith.addf %150, %168 : vector<80x128xf32>
    %c11_110 = arith.constant 11 : index
    %c0_111 = arith.constant 0 : index
    %170 = vector.load %arg3[%c11_110, %c0_111] : memref<102x1xf32, #tpu.memory_space<vmem>>, vector<80x1xf32>
    %171 = vector.broadcast %170 : vector<80x1xf32> to vector<80x128xf32>
    %172 = arith.mulf %169, %171 : vector<80x128xf32>
    %cst_112 = arith.constant dense<0.000000e+00> : vector<128xf32>
    %173 = vector.multi_reduction <add>, %172, %cst_112 [0] : vector<80x128xf32> to vector<128xf32>
    %174 = vector.shape_cast %173 : vector<128xf32> to vector<1x128xf32>
    %175 = vector.shape_cast %174 : vector<1x128xf32> to vector<1x1x128xf32>
    %c0_113 = arith.constant 0 : index
    %c0_114 = arith.constant 0 : index
    %c0_115 = arith.constant 0 : index
    %176 = vector.load %arg7[%c0_113, %c0_114, %c0_115] : memref<1x1x128xf32, #tpu.memory_space<vmem>>, vector<1x1x128xf32>
    tpu.vector_store %arg7[%c0_113, %c0_114, %c0_115], %175 {strides = array<i32>} : memref<1x1x128xf32, #tpu.memory_space<vmem>>, vector<1x1x128xf32>,
    %177 = arith.mulf %172, %172 : vector<80x128xf32>
    %cst_116 = arith.constant dense<0.000000e+00> : vector<128xf32>
    %178 = vector.multi_reduction <add>, %177, %cst_116 [0] : vector<80x128xf32> to vector<128xf32>
    %179 = vector.shape_cast %178 : vector<128xf32> to vector<1x128xf32>
    %180 = vector.shape_cast %179 : vector<1x128xf32> to vector<1x1x128xf32>
    %c0_117 = arith.constant 0 : index
    %c0_118 = arith.constant 0 : index
    %c0_119 = arith.constant 0 : index
    %181 = vector.load %arg8[%c0_117, %c0_118, %c0_119] : memref<1x1x128xf32, #tpu.memory_space<vmem>>, vector<1x1x128xf32>
    tpu.vector_store %arg8[%c0_117, %c0_118, %c0_119], %180 {strides = array<i32>} : memref<1x1x128xf32, #tpu.memory_space<vmem>>, vector<1x1x128xf32>,
    %cst_120 = arith.constant 0.000000e+00 : bf16
    %182 = vector.broadcast %cst_120 : bf16 to vector<1x102x128xbf16>
    %c0_121 = arith.constant 0 : index
    %c0_122 = arith.constant 0 : index
    %c0_123 = arith.constant 0 : index
    %183 = vector.load %arg6[%c0_121, %c0_122, %c0_123] : memref<1x102x128xbf16, #tpu.memory_space<vmem>>, vector<1x102x128xbf16>
    tpu.vector_store %arg6[%c0_121, %c0_122, %c0_123], %182 {strides = array<i32>} : memref<1x102x128xbf16, #tpu.memory_space<vmem>>, vector<1x102x128xbf16>,
    %184 = arith.truncf %172 : vector<80x128xf32> to vector<80x128xbf16>
    %c0_124 = arith.constant 0 : index
    %c11_125 = arith.constant 11 : index
    %c0_126 = arith.constant 0 : index
    %185 = vector.load %arg6[%c0_124, %c11_125, %c0_126] : memref<1x102x128xbf16, #tpu.memory_space<vmem>>, vector<1x80x128xbf16>
    %186 = vector.shape_cast %185 : vector<1x80x128xbf16> to vector<80x128xbf16>
    %187 = vector.shape_cast %184 : vector<80x128xbf16> to vector<1x80x128xbf16>
    tpu.vector_store %arg6[%c0_124, %c11_125, %c0_126], %187 {strides = array<i32>} : memref<1x102x128xbf16, #tpu.memory_space<vmem>>, vector<1x80x128xbf16>,
    return
  }
  func.func @transform_0(%arg0: i32) -> (i32, i32, i32) {
    %c0_i32 = arith.constant 0 : i32
    %c0_i32_0 = arith.constant 0 : i32
    %c0_i32_1 = arith.constant 0 : i32
    return %arg0, %c0_i32, %c0_i32_0 : i32, i32, i32
  }
  func.func @transform_1(%arg0: i32) -> (i32, i32, i32) {
    %c0_i32 = arith.constant 0 : i32
    %c0_i32_0 = arith.constant 0 : i32
    %c0_i32_1 = arith.constant 0 : i32
    %c0_i32_2 = arith.constant 0 : i32
    return %c0_i32, %c0_i32_0, %c0_i32_1 : i32, i32, i32
  }
  func.func @transform_2(%arg0: i32) -> (i32, i32) {
    %c0_i32 = arith.constant 0 : i32
    %c0_i32_0 = arith.constant 0 : i32
    %c0_i32_1 = arith.constant 0 : i32
    return %c0_i32, %c0_i32_0 : i32, i32
  }
  func.func @transform_3(%arg0: i32) -> (i32, i32) {
    %c0_i32 = arith.constant 0 : i32
    %c0_i32_0 = arith.constant 0 : i32
    %c0_i32_1 = arith.constant 0 : i32
    return %c0_i32, %c0_i32_0 : i32, i32
  }
  func.func @transform_4(%arg0: i32) -> (i32, i32) {
    %c0_i32 = arith.constant 0 : i32
    %c0_i32_0 = arith.constant 0 : i32
    %c0_i32_1 = arith.constant 0 : i32
    return %c0_i32, %c0_i32_0 : i32, i32
  }
  func.func @transform_5(%arg0: i32) -> (i32, i32, i32) {
    %c0_i32 = arith.constant 0 : i32
    %c0_i32_0 = arith.constant 0 : i32
    %c0_i32_1 = arith.constant 0 : i32
    return %arg0, %c0_i32, %c0_i32_0 : i32, i32, i32
  }
  func.func @transform_6(%arg0: i32) -> (i32, i32, i32) {
    %c0_i32 = arith.constant 0 : i32
    %c0_i32_0 = arith.constant 0 : i32
    %c0_i32_1 = arith.constant 0 : i32
    return %arg0, %c0_i32, %c0_i32_0 : i32, i32, i32
  }
  func.func @transform_7(%arg0: i32) -> (i32, i32, i32) {
    %c0_i32 = arith.constant 0 : i32
    %c0_i32_0 = arith.constant 0 : i32
    %c0_i32_1 = arith.constant 0 : i32
    return %arg0, %c0_i32, %c0_i32_0 : i32, i32, i32
  }
}

module attributes {stable_mosaic.version = 11 : i64} {
  func.func @_bn_add_relu_kernel(%arg0: i32, %arg1: memref<1x102x128xbf16, #tpu.memory_space<vmem>>, %arg2: memref<1x102x128xbf16, #tpu.memory_space<vmem>>, %arg3: memref<1x128xf32, #tpu.memory_space<vmem>>, %arg4: memref<1x128xf32, #tpu.memory_space<vmem>>, %arg5: memref<1x128xf32, #tpu.memory_space<vmem>>, %arg6: memref<1x128xf32, #tpu.memory_space<vmem>>, %arg7: memref<1x80x128xf32, #tpu.memory_space<vmem>>) attributes {dimension_semantics = [#tpu.dimension_semantics<parallel>], iteration_bounds = array<i64: 2>, scalar_prefetch = 0 : i64, scratch_operands = 0 : i64, tpu.core_type = #tpu.core_type<tc>, window_params = [{transform_indices = @transform_0, window_bounds = array<i64: 1, 102, 128>}, {transform_indices = @transform_1, window_bounds = array<i64: 1, 102, 128>}, {pipeline_mode = #tpu.pipeline_mode<synchronous>, transform_indices = @transform_2, window_bounds = array<i64: 1, 128>}, {pipeline_mode = #tpu.pipeline_mode<synchronous>, transform_indices = @transform_3, window_bounds = array<i64: 1, 128>}, {pipeline_mode = #tpu.pipeline_mode<synchronous>, transform_indices = @transform_4, window_bounds = array<i64: 1, 128>}, {pipeline_mode = #tpu.pipeline_mode<synchronous>, transform_indices = @transform_5, window_bounds = array<i64: 1, 128>}, {transform_indices = @transform_6, window_bounds = array<i64: 1, 80, 128>}]} {
    %c0 = arith.constant 0 : index
    %c11 = arith.constant 11 : index
    %c0_0 = arith.constant 0 : index
    %0 = vector.load %arg1[%c0, %c11, %c0_0] : memref<1x102x128xbf16, #tpu.memory_space<vmem>>, vector<1x80x128xbf16>
    %1 = vector.shape_cast %0 : vector<1x80x128xbf16> to vector<80x128xbf16>
    %2 = arith.extf %1 : vector<80x128xbf16> to vector<80x128xf32>
    %c0_1 = arith.constant 0 : index
    %c11_2 = arith.constant 11 : index
    %c0_3 = arith.constant 0 : index
    %3 = vector.load %arg2[%c0_1, %c11_2, %c0_3] : memref<1x102x128xbf16, #tpu.memory_space<vmem>>, vector<1x80x128xbf16>
    %4 = vector.shape_cast %3 : vector<1x80x128xbf16> to vector<80x128xbf16>
    %5 = arith.extf %4 : vector<80x128xbf16> to vector<80x128xf32>
    %c0_4 = arith.constant 0 : index
    %c0_5 = arith.constant 0 : index
    %6 = vector.load %arg3[%c0_4, %c0_5] : memref<1x128xf32, #tpu.memory_space<vmem>>, vector<1x128xf32>
    %7 = vector.broadcast %6 : vector<1x128xf32> to vector<80x128xf32>
    %8 = arith.mulf %2, %7 : vector<80x128xf32>
    %c0_6 = arith.constant 0 : index
    %c0_7 = arith.constant 0 : index
    %9 = vector.load %arg4[%c0_6, %c0_7] : memref<1x128xf32, #tpu.memory_space<vmem>>, vector<1x128xf32>
    %10 = vector.broadcast %9 : vector<1x128xf32> to vector<80x128xf32>
    %11 = arith.addf %8, %10 : vector<80x128xf32>
    %c0_8 = arith.constant 0 : index
    %c0_9 = arith.constant 0 : index
    %12 = vector.load %arg5[%c0_8, %c0_9] : memref<1x128xf32, #tpu.memory_space<vmem>>, vector<1x128xf32>
    %13 = vector.broadcast %12 : vector<1x128xf32> to vector<80x128xf32>
    %14 = arith.mulf %5, %13 : vector<80x128xf32>
    %15 = arith.addf %11, %14 : vector<80x128xf32>
    %c0_10 = arith.constant 0 : index
    %c0_11 = arith.constant 0 : index
    %16 = vector.load %arg6[%c0_10, %c0_11] : memref<1x128xf32, #tpu.memory_space<vmem>>, vector<1x128xf32>
    %17 = vector.broadcast %16 : vector<1x128xf32> to vector<80x128xf32>
    %18 = arith.addf %15, %17 : vector<80x128xf32>
    %cst = arith.constant 0.000000e+00 : f32
    %19 = vector.broadcast %cst : f32 to vector<80x128xf32>
    %20 = arith.maximumf %18, %19 : vector<80x128xf32>
    %21 = vector.shape_cast %20 : vector<80x128xf32> to vector<1x80x128xf32>
    %c0_12 = arith.constant 0 : index
    %c0_13 = arith.constant 0 : index
    %c0_14 = arith.constant 0 : index
    %22 = vector.load %arg7[%c0_12, %c0_13, %c0_14] : memref<1x80x128xf32, #tpu.memory_space<vmem>>, vector<1x80x128xf32>
    tpu.vector_store %arg7[%c0_12, %c0_13, %c0_14], %21 {strides = array<i32>} : memref<1x80x128xf32, #tpu.memory_space<vmem>>, vector<1x80x128xf32>,
    return
  }
  func.func @transform_0(%arg0: i32) -> (i32, i32, i32) {
    %c0_i32 = arith.constant 0 : i32
    %c0_i32_0 = arith.constant 0 : i32
    %c0_i32_1 = arith.constant 0 : i32
    return %arg0, %c0_i32, %c0_i32_0 : i32, i32, i32
  }
  func.func @transform_1(%arg0: i32) -> (i32, i32, i32) {
    %c0_i32 = arith.constant 0 : i32
    %c0_i32_0 = arith.constant 0 : i32
    %c0_i32_1 = arith.constant 0 : i32
    return %arg0, %c0_i32, %c0_i32_0 : i32, i32, i32
  }
  func.func @transform_2(%arg0: i32) -> (i32, i32) {
    %c0_i32 = arith.constant 0 : i32
    %c0_i32_0 = arith.constant 0 : i32
    %c0_i32_1 = arith.constant 0 : i32
    return %c0_i32, %c0_i32_0 : i32, i32
  }
  func.func @transform_3(%arg0: i32) -> (i32, i32) {
    %c0_i32 = arith.constant 0 : i32
    %c0_i32_0 = arith.constant 0 : i32
    %c0_i32_1 = arith.constant 0 : i32
    return %c0_i32, %c0_i32_0 : i32, i32
  }
  func.func @transform_4(%arg0: i32) -> (i32, i32) {
    %c0_i32 = arith.constant 0 : i32
    %c0_i32_0 = arith.constant 0 : i32
    %c0_i32_1 = arith.constant 0 : i32
    return %c0_i32, %c0_i32_0 : i32, i32
  }
  func.func @transform_5(%arg0: i32) -> (i32, i32) {
    %c0_i32 = arith.constant 0 : i32
    %c0_i32_0 = arith.constant 0 : i32
    %c0_i32_1 = arith.constant 0 : i32
    return %c0_i32, %c0_i32_0 : i32, i32
  }
  func.func @transform_6(%arg0: i32) -> (i32, i32, i32) {
    %c0_i32 = arith.constant 0 : i32
    %c0_i32_0 = arith.constant 0 : i32
    %c0_i32_1 = arith.constant 0 : i32
    return %arg0, %c0_i32, %c0_i32_0 : i32, i32, i32
  }
}

</mosaic_0001>

<bundles_post_ra>
// kernel: basic_block_forward.7
= control target key start
LH: loop header
LB: loop body
LE: loop exit
PB: predicated region body
PF: predicated region fallthrough
CT: control target
= control target key end

     0   :  { %s595_s21 = smov 0   ;;  %s714_s0 = inlined_call_operand.vmem [shape: bf16[2,102,128], index: 0, kind: input, shape index: {}]   ;;  %s715_s1 = inlined_call_operand.vmem [shape: bf16[2,102,128], index: 1, kind: input, shape index: {}]   ;;  %s716_s2 = inlined_call_operand.vmem [shape: f32[1,128], index: 2, kind: input, shape index: {}]   ;;  %s717_s3 = inlined_call_operand.vmem [shape: f32[1,128], index: 3, kind: input, shape index: {}]   ;;  %s718_s4 = inlined_call_operand.vmem [shape: f32[1,128], index: 4, kind: input, shape index: {}]   ;;  %s719_s5 = inlined_call_operand.vmem [shape: f32[1,128], index: 5, kind: input, shape index: {}]   ;;  %s720_s6 = inlined_call_operand.vmem [shape: f32[2,80,128], index: 6, kind: output, shape index: {}]  }
   0x1 LB: > { %s488_s22 = sadd.s32 4294967295, %s558_s21   ;;  %p492_p0 = scmp.ge.s32.totalorder %s558_s21, 1  ;;  %s558_s21 = sphi %s595_s21, %s16_s21  }
   0x2   : > { %p222_p1 = scmp.lt.s32.totalorder %s558_s21, 3 }
   0x4   : > { %p223_p2 = pnand %p492_p0, %p222_p1 }
   0x5   : > { %p257_p3 = scmp.lt.s32.totalorder (!%p223_p2), %s488_s22, 1 }
   0x6   : > { %226 = sbr.rel (%p223_p2) target bundleno = 45 (0x2d), region = 44 }
   0xb   : > { %s722_s22 = smov (!%p257_p3, %s488_s22), 1  ;;  %v619_v0 = vld [vmem:[%s716_s2] ss:$0 sm:$0xff] }
   0xc   : > { %s542_s23 = smul.u32 52, %s722_s22  ;;  %v624_v1 = vld [vmem:[%s718_s4] ss:$0 sm:$0xff] }
   0xd   : > { %v635_v12 = vld [vmem:[%s717_s3] ss:$0 sm:$0xff]  ;;  %s543_s12 = smul.u32 80, %s722_s22 }
   0xe   : > { %s609_s26 = scalar_lea.vmem %s714_s0, %s542_s23  ;;  %s614_s29 = scalar_lea.vmem %s715_s1, %s542_s23  ;;  %v654_v31 = vld [vmem:[%s719_s5] ss:$0 sm:$0xff] }
   0xf   : > { %v272_v2 = vld [vmem:[%s609_s26 + $0x4] sm:$0xe]  ;;  %v534_v4 = vld [vmem:[%s609_s26 + $0x8] sm:$0xff]   ;;  %v535_v10 = vld [vmem:[%s609_s26 + $0x10] sm:$0xff]   ;;  %s668_s17 = scalar_lea.vmem %s720_s6, %s543_s12 }
  0x10   : > { %v294_v3 = vld [vmem:[%s614_s29 + $0x4] sm:$0xe]  ;;  %v283_v5 = vunpack.c.l.bf16 %v272_v2  ;;  %v504_v7 = vunpack.c.l.bf16 %v534_v4  ;;  %v538_v8 = vld [vmem:[%s614_s29 + $0x8] sm:$0xff]   ;;  %v505_v9 = vunpack.c.h.bf16 %v534_v4  ;;  %v539_v11 = vld [vmem:[%s614_s29 + $0x10] sm:$0xff]   ;;  %v508_v15 = vunpack.c.l.bf16 %v535_v10 }
  0x11   : > { %v305_v6 = vunpack.c.l.bf16 %v294_v3  ;;  %v520_v13 = vunpack.c.l.bf16 %v538_v8  ;;  %v521_v14 = vunpack.c.h.bf16 %v538_v8  ;;  %v524_v16 = vunpack.c.l.bf16 %v539_v11  ;;  %v536_v21 = vld [vmem:[%s609_s26 + $0x18] sm:$0xff]   ;;  %v537_v52 = vld [vmem:[%s609_s26 + $0x20] sm:$0xff]   ;;  %v281_v58 = vld [vmem:[%s609_s26 + $0x28] sm:$0xf] }
  0x12   : > { %v323_v17 = vmul.f32 %v619_v0, %v283_v5  ;;  %v324_v19 = vmul.f32 %v504_v7, %v619_v0  ;;  %v325_v20 = vmul.f32 %v505_v9, %v619_v0  ;;  %v540_v22 = vld [vmem:[%s614_s29 + $0x18] sm:$0xff]   ;;  %v326_v25 = vmul.f32 %v508_v15, %v619_v0  ;;  %v541_v53 = vld [vmem:[%s614_s29 + $0x20] sm:$0xff]   ;;  %v303_v5 = vld [vmem:[%s614_s29 + $0x28] sm:$0xf] }
  0x13   : > { %v359_v18 = vmul.f32 %v624_v1, %v305_v6  ;;  %v360_v23 = vmul.f32 %v520_v13, %v624_v1  ;;  %v361_v24 = vmul.f32 %v521_v14, %v624_v1  ;;  %v362_v26 = vmul.f32 %v524_v16, %v624_v1  ;;  %v304_v16 = vld [vmem:[%s614_s29 + $0x2c] sm:$0x3] }
  0x14   : > { %v341_v27 = vadd.f32 %v635_v12, %v323_v17  ;;  %v342_v28 = vadd.f32 %v635_v12, %v324_v19  ;;  %v343_v29 = vadd.f32 %v635_v12, %v325_v20  ;;  %v509_v30 = vunpack.c.h.bf16 %v535_v10  ;;  %v282_v10 = vld [vmem:[%s609_s26 + $0x2c] sm:$0x3] }
  0x15   : > { %v344_v32 = vadd.f32 %v635_v12, %v326_v25  ;;  %v525_v33 = vunpack.c.h.bf16 %v539_v11  ;;  %v512_v34 = vunpack.c.l.bf16 %v536_v21  ;;  %v528_v35 = vunpack.c.l.bf16 %v540_v22 }
  0x16   : > { %v370_v36 = vadd.f32 %v359_v18, %v341_v27  ;;  %v371_v37 = vadd.f32 %v360_v23, %v342_v28  ;;  %v372_v38 = vadd.f32 %v361_v24, %v343_v29  ;;  %v327_v39 = vmul.f32 %v509_v30, %v619_v0 }
  0x17   : > { %v373_v40 = vadd.f32 %v362_v26, %v344_v32  ;;  %v363_v41 = vmul.f32 %v525_v33, %v624_v1  ;;  %v328_v42 = vmul.f32 %v512_v34, %v619_v0  ;;  %v364_v43 = vmul.f32 %v528_v35, %v624_v1 }
  0x18   : > { %v388_v44 = vadd.f32 %v654_v31, %v370_v36  ;;  %v389_v45 = vadd.f32 %v654_v31, %v371_v37  ;;  %v390_v46 = vadd.f32 %v654_v31, %v372_v38  ;;  %v345_v47 = vadd.f32 %v635_v12, %v327_v39 }
  0x19   : > { %v391_v48 = vadd.f32 %v654_v31, %v373_v40  ;;  %v346_v49 = vadd.f32 %v635_v12, %v328_v42  ;;  %v513_v50 = vunpack.c.h.bf16 %v536_v21  ;;  %v529_v51 = vunpack.c.h.bf16 %v540_v22 }
  0x1a   : > { %v399_v54 = vmax.f32 %v388_v44, 0.0  ;;  %v400_v55 = vmax.f32 %v389_v45, 0.0  ;;  %v401_v56 = vmax.f32 %v390_v46, 0.0  ;;  %v374_v57 = vadd.f32 %v363_v41, %v345_v47 }
  0x1b   : > { %v402_v59 = vmax.f32 %v391_v48, 0.0  ;;  %v375_v60 = vadd.f32 %v364_v43, %v346_v49  ;;  %v329_v61 = vmul.f32 %v513_v50, %v619_v0  ;;  %v365_v62 = vmul.f32 %v529_v51, %v624_v1 }
  0x1c   : > { %410 = vst [vmem:[%s668_s17 - $0x3] sm:$0xf8] %v399_v54  ;;  %411 = vst [vmem:[%s668_s17 + $0x5] sm:$0xff] %v400_v55  ;;  %v392_v63 = vadd.f32 %v654_v31, %v374_v57  ;;  %v516_v2 = vunpack.c.l.bf16 %v537_v52  ;;  %v532_v3 = vunpack.c.l.bf16 %v541_v53  ;;  %v517_v4 = vunpack.c.h.bf16 %v537_v52 }
  0x1d   : > { %412 = vst [vmem:[%s668_s17 + $0xd] sm:$0xff] %v401_v56  ;;  %413 = vst [vmem:[%s668_s17 + $0x15] sm:$0xff] %v402_v59  ;;  %v393_v6 = vadd.f32 %v654_v31, %v375_v60  ;;  %v347_v7 = vadd.f32 %v635_v12, %v329_v61  ;;  %v533_v8 = vunpack.c.h.bf16 %v541_v53  ;;  %v292_v9 = vunpack.c.l.bf16 %v281_v58 }
  0x1e   : > { %v403_v11 = vmax.f32 %v392_v63, 0.0  ;;  %v330_v13 = vmul.f32 %v516_v2, %v619_v0  ;;  %v366_v14 = vmul.f32 %v532_v3, %v624_v1  ;;  %v331_v15 = vmul.f32 %v517_v4, %v619_v0 }
  0x1f   : > { %v404_v17 = vmax.f32 %v393_v6, 0.0  ;;  %v376_v18 = vadd.f32 %v365_v62, %v347_v7  ;;  %v367_v19 = vmul.f32 %v533_v8, %v624_v1  ;;  %v314_v20 = vunpack.c.l.bf16 %v303_v5 }
  0x20   : > { %414 = vst [vmem:[%s668_s17 + $0x1d] sm:$0xff] %v403_v11  ;;  %v348_v21 = vadd.f32 %v635_v12, %v330_v13  ;;  %v349_v22 = vadd.f32 %v635_v12, %v331_v15  ;;  %v332_v23 = vmul.f32 %v619_v0, %v292_v9  ;;  %v293_v24 = vunpack.c.l.bf16 %v282_v10 }
  0x21   : > { %415 = vst [vmem:[%s668_s17 + $0x25] sm:$0xff] %v404_v17  ;;  %v394_v25 = vadd.f32 %v654_v31, %v376_v18  ;;  %v368_v26 = vmul.f32 %v624_v1, %v314_v20  ;;  %v315_v27 = vunpack.c.l.bf16 %v304_v16 }
  0x22   : > { %v377_v28 = vadd.f32 %v366_v14, %v348_v21  ;;  %v378_v29 = vadd.f32 %v367_v19, %v349_v22  ;;  %v350_v30 = vadd.f32 %v635_v12, %v332_v23  ;;  %v333_v32 = vmul.f32 %v619_v0, %v293_v24 }
  0x23   : > { %v405_v33 = vmax.f32 %v394_v25, 0.0  ;;  %v369_v34 = vmul.f32 %v624_v1, %v315_v27 }
  0x24   : > { %v395_v35 = vadd.f32 %v654_v31, %v377_v28  ;;  %v396_v36 = vadd.f32 %v654_v31, %v378_v29  ;;  %v379_v37 = vadd.f32 %v368_v26, %v350_v30  ;;  %v351_v38 = vadd.f32 %v635_v12, %v333_v32 }
  0x25   : > { %416 = vst [vmem:[%s668_s17 + $0x2d] sm:$0xff] %v405_v33 }
  0x26   : > { %v406_v39 = vmax.f32 %v395_v35, 0.0  ;;  %v407_v40 = vmax.f32 %v396_v36, 0.0  ;;  %v397_v41 = vadd.f32 %v654_v31, %v379_v37  ;;  %v380_v42 = vadd.f32 %v369_v34, %v351_v38 }
  0x28   : > { %417 = vst [vmem:[%s668_s17 + $0x35] sm:$0xff] %v406_v39  ;;  %418 = vst [vmem:[%s668_s17 + $0x3d] sm:$0xff] %v407_v40  ;;  %v408_v0 = vmax.f32 %v397_v41, 0.0  ;;  %v398_v43 = vadd.f32 %v654_v31, %v380_v42 }
  0x2a   : > { %419 = vst [vmem:[%s668_s17 + $0x45] sm:$0xff] %v408_v0  ;;  %v409_v1 = vmax.f32 %v398_v43, 0.0 }
  0x2c   : > { %420 = vst [vmem:[%s668_s17 + $0x4d] sm:$0x7] %v409_v1 }
  0x2d PF: > { %s16_s21 = sadd.s32 1, %s558_s21  }
  0x2e   : > { %p13_p4 = scmp.ge.s32.totalorder %s16_s21, 4  }
  0x30   :  { %15 = sbr.rel (!%p13_p4) target bundleno = 1 (0x1), region = 77 }

// kernel: basic_block_forward.4
= control target key start
LH: loop header
LB: loop body
LE: loop exit
PB: predicated region body
PF: predicated region fallthrough
CT: control target
= control target key end

     0   :  { %s670_s1 = inlined_call_operand.vmem [shape: bf16[128,128], index: 1, kind: input, shape index: {}]   ;;  %s671_s0 = inlined_call_operand.vmem [shape: bf16[128,128], index: 0, kind: input, shape index: {}]   ;;  %s672_s2 = inlined_call_operand.vmem [shape: bf16[128,128], index: 2, kind: output, shape index: {0}]   ;;  %s673_s3 = inlined_call_operand.vmem [shape: f32[1,1,128], index: 3, kind: output, shape index: {1}]   ;;  %s674_s4 = inlined_call_operand.vmem [shape: f32[1,1,128], index: 4, kind: output, shape index: {2}]  }
   0x1   :  { %v551_v0 = vld [vmem:[%s670_s1 + $0x38] sm:$0xff]   ;;  %v552_v1 = vld [vmem:[%s670_s1 + $0x30] sm:$0xff]   ;;  %v553_v2 = vld [vmem:[%s670_s1 + $0x28] sm:$0xff]  }
   0x2   :  { %503 = vmatprep.subr.bf16.mxu0 %v551_v0  ;;  %535 = vmatprep.subr.bf16.mxu1 %v551_v0  ;;  %v554_v3 = vld [vmem:[%s670_s1 + $0x20] sm:$0xff]   ;;  %v555_v5 = vld [vmem:[%s670_s1 + $0x18] sm:$0xff]   ;;  %v556_v7 = vld [vmem:[%s670_s1 + $0x10] sm:$0xff]  }
   0x3   :  { %504 = vmatpush3.bf16.msra.mxu0 %v551_v0  ;;  %543 = vmatpush3.bf16.msra.mxu1 %v551_v0  ;;  %v559_v4 = vld [vmem:[%s671_s0] sm:$0xff]   ;;  %v557_v8 = vld [vmem:[%s670_s1 + $0x8] sm:$0xff]   ;;  %v561_v12 = vld [vmem:[%s671_s0 + $0x10] sm:$0xff]  }
   0x4   :  { %505 = vmatprep.subr.bf16.mxu0 %v552_v1  ;;  %536 = vmatprep.subr.bf16.mxu1 %v552_v1  ;;  %v563_v6 = vld [vmem:[%s671_s0 + $0x20] sm:$0xff]   ;;  %v560_v10 = vld [vmem:[%s671_s0 + $0x8] sm:$0xff]   ;;  %v565_v13 = vld [vmem:[%s671_s0 + $0x30] sm:$0xff]  }
   0x5   :  { %519 = vmatprep.mubr.bf16.mxu0 %v559_v4  ;;  %527 = vmatprep.mubr.bf16.mxu1 %v563_v6  ;;  %v558_v9 = vld [vmem:[%s670_s1] sm:$0xff]   ;;  %v564_v11 = vld [vmem:[%s671_s0 + $0x28] sm:$0xff]   ;;  %v562_v14 = vld [vmem:[%s671_s0 + $0x18] sm:$0xff]  }
   0x6   :  { %v566_v15 = vld [vmem:[%s671_s0 + $0x38] sm:$0xff]  }
   0x7   :  { %506 = vmatpush3.bf16.msra.mxu0 %v552_v1  ;;  %544 = vmatpush3.bf16.msra.mxu1 %v552_v1 }
   0x8   :  { %507 = vmatprep.subr.bf16.mxu0 %v553_v2  ;;  %537 = vmatprep.subr.bf16.mxu1 %v553_v2 }
   0xb   :  { %508 = vmatpush3.bf16.msra.mxu0 %v553_v2  ;;  %545 = vmatpush3.bf16.msra.mxu1 %v553_v2 }
   0xc   :  { %509 = vmatprep.subr.bf16.mxu0 %v554_v3  ;;  %538 = vmatprep.subr.bf16.mxu1 %v554_v3 }
   0xf   :  { %510 = vmatpush3.bf16.msra.mxu0 %v554_v3  ;;  %546 = vmatpush3.bf16.msra.mxu1 %v554_v3 }
  0x10   :  { %511 = vmatprep.subr.bf16.mxu0 %v555_v5  ;;  %539 = vmatprep.subr.bf16.mxu1 %v555_v5 }
  0x13   :  { %512 = vmatpush3.bf16.msra.mxu0 %v555_v5  ;;  %547 = vmatpush3.bf16.msra.mxu1 %v555_v5 }
  0x14   :  { %513 = vmatprep.subr.bf16.mxu0 %v556_v7  ;;  %540 = vmatprep.subr.bf16.mxu1 %v556_v7 }
  0x17   :  { %514 = vmatpush3.bf16.msra.mxu0 %v556_v7  ;;  %548 = vmatpush3.bf16.msra.mxu1 %v556_v7 }
  0x18   :  { %515 = vmatprep.subr.bf16.mxu0 %v557_v8  ;;  %541 = vmatprep.subr.bf16.mxu1 %v557_v8 }
  0x1b   :  { %516 = vmatpush3.bf16.msra.mxu0 %v557_v8  ;;  %549 = vmatpush3.bf16.msra.mxu1 %v557_v8 }
  0x1c   :  { %517 = vmatprep.subr.bf16.mxu0 %v558_v9  ;;  %542 = vmatprep.subr.bf16.mxu1 %v558_v9 }
  0x1f   :  { %518 = vmatpush3.bf16.msra.mxu0 %v558_v9  ;;  %550 = vmatpush3.bf16.msra.mxu1 %v558_v9 }
  0x22   :  { %520 = vmatmul.mubr.bf16.vlgmr.msra.gmra.mxu0 %v560_v10  ;;  %528 = vmatmul.mubr.bf16.vlgmr.msra.gmra.mxu1 %v564_v11 }
  0x23   :  { %523 = vmatprep.mubr.bf16.mxu0 %v561_v12  ;;  %531 = vmatprep.mubr.bf16.mxu1 %v565_v13 }
  0x2a   :  { %524 = vmatmul.mubr.bf16.gmra.mxu0 %v562_v14  ;;  %532 = vmatmul.mubr.bf16.gmra.mxu1 %v566_v15 }
  0xe2   :  { %v521_v16 = vpop.f32.mrf.mxu0  ;;  %v529_v17 = vpop.f32.mrf.mxu1 }
  0xe3   :  { %v344_v33 = vmul.f32 %v521_v16, %v521_v16  ;;  %v352_v3 = vmul.f32 %v529_v17, %v529_v17 }
  0xe4   :  { %v177_v18 = vpop.f32.mrf.mxu0  ;;  %v209_v19 = vpop.f32.mrf.mxu1 }
  0xe5   :  { %v342_v24 = vmul.f32 %v177_v18, %v177_v18  ;;  %v350_v61 = vmul.f32 %v209_v19, %v209_v19 }
  0xe6   :  { %v522_v20 = vpop.f32.mrf.mxu0  ;;  %v530_v21 = vpop.f32.mrf.mxu1 }
  0xe7   :  { %v448_v22 = vpack.c.bf16 %v522_v20, %v521_v16  ;;  %v468_v23 = vpack.c.bf16 %v530_v21, %v529_v17  ;;  %v345_v38 = vmul.f32 %v522_v20, %v522_v20  ;;  %v353_v6 = vmul.f32 %v530_v21, %v530_v21 }
  0xe8   :  { %v180_v25 = vpop.f32.mrf.mxu0  ;;  %v212_v26 = vpop.f32.mrf.mxu1 }
  0xe9   :  { %480 = vst [vmem:[%s672_s2 + $0x8] sm:$0xff] %v448_v22   ;;  %v443_v27 = vpack.c.bf16 %v180_v25, %v177_v18  ;;  %v320_v28 = vadd.f32 %v180_v25, %v177_v18  ;;  %v343_v29 = vmul.f32 %v180_v25, %v180_v25  ;;  %484 = vst [vmem:[%s672_s2 + $0x28] sm:$0xff] %v468_v23  }
  0xea   :  { %v463_v30 = vpack.c.bf16 %v212_v26, %v209_v19  ;;  %v525_v31 = vpop.f32.mrf.mxu0  ;;  %v533_v32 = vpop.f32.mrf.mxu1  ;;  %v351_v1 = vmul.f32 %v212_v26, %v212_v26 }
  0xeb   :  { %444 = vst [vmem:[%s672_s2] sm:$0xff] %v443_v27   ;;  %v321_v34 = vadd.f32 %v521_v16, %v320_v28  ;;  %v358_v35 = vadd.f32 %v343_v29, %v342_v24  ;;  %v348_v55 = vmul.f32 %v525_v31, %v525_v31  ;;  %v356_v15 = vmul.f32 %v533_v32, %v533_v32 }
  0xec   :  { %483 = vst [vmem:[%s672_s2 + $0x20] sm:$0xff] %v463_v30   ;;  %v193_v36 = vpop.f32.mrf.mxu0  ;;  %v225_v37 = vpop.f32.mrf.mxu1 }
  0xed   :  { %v359_v39 = vadd.f32 %v358_v35, %v344_v33  ;;  %v322_v40 = vadd.f32 %v522_v20, %v321_v34  ;;  %v346_v44 = vmul.f32 %v193_v36, %v193_v36  ;;  %v354_v10 = vmul.f32 %v225_v37, %v225_v37 }
  0xee   :  { %v526_v41 = vpop.f32.mrf.mxu0  ;;  %v534_v42 = vpop.f32.mrf.mxu1 }
  0xef   :  { %v323_v43 = vadd.f32 %v322_v40, %v193_v36  ;;  %v360_v45 = vadd.f32 %v359_v39, %v345_v38  ;;  %v458_v46 = vpack.c.bf16 %v526_v41, %v525_v31  ;;  %v478_v48 = vpack.c.bf16 %v534_v42, %v533_v32 }
  0xf0   :  { %v196_v47 = vpop.f32.mrf.mxu0  ;;  %v228_v49 = vpop.f32.mrf.mxu1  ;;  %v349_v58 = vmul.f32 %v526_v41, %v526_v41  ;;  %v357_v20 = vmul.f32 %v534_v42, %v534_v42 }
  0xf1   :  { %v361_v50 = vadd.f32 %v360_v45, %v346_v44  ;;  %482 = vst [vmem:[%s672_s2 + $0x18] sm:$0xff] %v458_v46   ;;  %v453_v51 = vpack.c.bf16 %v196_v47, %v193_v36  ;;  %v324_v52 = vadd.f32 %v323_v43, %v196_v47  ;;  %v347_v53 = vmul.f32 %v196_v47, %v196_v47 }
  0xf2   :  { %486 = vst [vmem:[%s672_s2 + $0x38] sm:$0xff] %v478_v48   ;;  %v473_v54 = vpack.c.bf16 %v228_v49, %v225_v37  ;;  %v355_v14 = vmul.f32 %v228_v49, %v228_v49 }
  0xf3   :  { %481 = vst [vmem:[%s672_s2 + $0x10] sm:$0xff] %v453_v51   ;;  %v325_v56 = vadd.f32 %v525_v31, %v324_v52  ;;  %v362_v57 = vadd.f32 %v361_v50, %v347_v53 }
  0xf4   :  { %485 = vst [vmem:[%s672_s2 + $0x30] sm:$0xff] %v473_v54  }
  0xf5   :  { %v326_v59 = vadd.f32 %v526_v41, %v325_v56  ;;  %v363_v60 = vadd.f32 %v362_v57, %v348_v55 }
  0xf7   :  { %v364_v62 = vadd.f32 %v363_v60, %v349_v58  ;;  %v327_v63 = vadd.f32 %v326_v59, %v209_v19 }
  0xf9   :  { %v328_v0 = vadd.f32 %v327_v63, %v212_v26  ;;  %v365_v2 = vadd.f32 %v364_v62, %v350_v61 }
  0xfb   :  { %v329_v4 = vadd.f32 %v529_v17, %v328_v0  ;;  %v366_v5 = vadd.f32 %v365_v2, %v351_v1 }
  0xfd   :  { %v367_v7 = vadd.f32 %v366_v5, %v352_v3  ;;  %v330_v8 = vadd.f32 %v530_v21, %v329_v4 }
  0xff   :  { %v331_v9 = vadd.f32 %v330_v8, %v225_v37  ;;  %v368_v11 = vadd.f32 %v367_v7, %v353_v6 }
 0x101   :  { %v369_v12 = vadd.f32 %v368_v11, %v354_v10  ;;  %v332_v13 = vadd.f32 %v331_v9, %v228_v49 }
 0x103   :  { %v333_v16 = vadd.f32 %v533_v32, %v332_v13  ;;  %v370_v18 = vadd.f32 %v369_v12, %v355_v14 }
 0x105   :  { %v334_v19 = vadd.f32 %v534_v42, %v333_v16  ;;  %v371_v22 = vadd.f32 %v370_v18, %v356_v15 }
 0x107   :  { %v335_v23 = vrot.slane %v334_v19, 4  ;;  %v372_v24 = vadd.f32 %v371_v22, %v357_v20 }
 0x109   :  { %v336_v25 = vadd.f32 %v335_v23, %v334_v19  ;;  %v373_v17 = vrot.slane %v372_v24, 4 }
 0x10b   :  { %v337_v26 = vrot.slane %v336_v25, 2  ;;  %v374_v27 = vadd.f32 %v373_v17, %v372_v24 }
 0x10d   :  { %v338_v28 = vadd.f32 %v337_v26, %v336_v25  ;;  %v375_v21 = vrot.slane %v374_v27, 2 }
 0x10f   :  { %v339_v29 = vrot.slane %v338_v28, 1  ;;  %v376_v30 = vadd.f32 %v375_v21, %v374_v27 }
 0x111   :  { %v340_v31 = vadd.f32 %v339_v29, %v338_v28  ;;  %v377_v33 = vrot.slane %v376_v30, 1 }
 0x113   :  { %341 = vst [vmem:[%s673_s3] sm:$0x1] %v340_v31  ;;  %v378_v32 = vadd.f32 %v377_v33, %v376_v30 }
 0x115   :  { %379 = vst [vmem:[%s674_s4] sm:$0x1] %v378_v32 }

// kernel: basic_block_forward.6
= control target key start
LH: loop header
LB: loop body
LE: loop exit
PB: predicated region body
PF: predicated region fallthrough
CT: control target
= control target key end

     0   :  { %s4258_s24 = smov 0   ;;  %s5623_s0 = inlined_call_operand.vmem [shape: bf16[2,102,128], index: 0, kind: input, shape index: {}]   ;;  %s5624_s1 = inlined_call_operand.vmem [shape: bf16[9,128,128], index: 1, kind: input, shape index: {}]   ;;  %s5625_s2 = inlined_call_operand.vmem [shape: f32[102,1], index: 2, kind: input, shape index: {}]   ;;  %s5626_s3 = inlined_call_operand.vmem [shape: f32[1,128], index: 3, kind: input, shape index: {}]   ;;  %s5627_s4 = inlined_call_operand.vmem [shape: f32[1,128], index: 4, kind: input, shape index: {}]   ;;  %s5628_s5 = inlined_call_operand.vmem [shape: bf16[2,102,128], index: 5, kind: output, shape index: {0}]   ;;  %s5629_s6 = inlined_call_operand.vmem [shape: f32[2,1,128], index: 6, kind: output, shape index: {1}]   ;;  %s5630_s7 = inlined_call_operand.vmem [shape: f32[2,1,128], index: 7, kind: output, shape index: {2}]  }
   0x1 LB: > { %s3343_s25 = sadd.s32 4294967295, %s4213_s24   ;;  %p3347_p0 = scmp.ge.s32.totalorder %s4213_s24, 1  ;;  %s4213_s24 = sphi %s4258_s24, %s18_s24  }
   0x2   : > { %p242_p1 = scmp.lt.s32.totalorder %s4213_s24, 3 }
   0x4   : > { %p243_p2 = pnand %p3347_p0, %p242_p1 }
   0x5   : > { %p280_p3 = scmp.lt.s32.totalorder (!%p243_p2), %s3343_s25, 1 }
   0x6   : > { %246 = sbr.rel (%p243_p2) target bundleno = 561 (0x231), region = 40 }
   0xb   : > { %v509_v0 = vld [vmem:[%s5625_s2 + $0x11] sm:$0xff]  ;;  %v507_v1 = vld [vmem:[%s5625_s2 + $0x1] sm:$0xff]  ;;  %v4215_v2 = vmov 0   ;;  %s5636_s25 = smov (!%p280_p3, %s3343_s25), 1  ;;  %v510_v3 = vld [vmem:[%s5625_s2 + $0x19] sm:$0xff]  ;;  %v4216_v5 = vmov 0.0  }
   0xc   : > { %4132 = vset.pattern.permute.xlu1 %v4215_v2  ;;  %4131 = vset.pattern.permute.xlu0 %v4215_v2  ;;  %v508_v4 = vld [vmem:[%s5625_s2 + $0x9] sm:$0xff]  ;;  %s4119_s11 = smul.u32 52, %s5636_s25  ;;  %v511_v7 = vld [vmem:[%s5625_s2 + $0x21] sm:$0xff]  ;;  %v514_v8 = vld [vmem:[%s5625_s2 + $0x39] sm:$0xff]  ;;  %vm4217_vm0 = vmmov 0   ;;  %vm557_vm1 = vcmask 1040384   ;;  %s292_s22 = scalar_lea.vmem %s5629_s6, %s5636_s25 }
   0xd   : > { %527 = vperm.xlu1 %4132, %v509_v0   ;;  %519 = vperm.xlu0 %4131, %v507_v1   ;;  %v512_v6 = vld [vmem:[%s5625_s2 + $0x29] sm:$0xff]  ;;  %v513_v9 = vld [vmem:[%s5625_s2 + $0x31] sm:$0xff]  ;;  %v361_v11 = vld [vmem:[%s5625_s2] sm:$0xff]  ;;  %vm622_vm2 = vsmask.f32 7424  ;;  %vm969_vm3 = vcmask 1041408   ;;  %s295_s27 = scalar_lea.vmem %s5630_s7, %s5636_s25 }
   0xe   : > { %3779 = vmatprep.subr.bf16.mxu0 %v4216_v5  ;;  %3815 = vmatprep.subr.bf16.mxu1 %v4216_v5  ;;  %s4288_s14 = scalar_lea.vmem %s5628_s5, %s4119_s11  ;;  %v362_v10 = vld [vmem:[%s5625_s2 + $0x8] sm:$0xff]  ;;  %v4133_v12 = vld [vmem:[%s5624_s1 + $0x78] sm:$0xff]   ;;  %v4135_v16 = vld [vmem:[%s5624_s1 + $0x70] sm:$0xff]   ;;  %s4505_s21 = scalar_lea.vmem %s5623_s0, %s4119_s11  ;;  %vm1040_vm4 = vcmask 1046528   ;;  %vm1575_vm5 = vcmask 1042432   ;;  %vm1885_vm7 = vcmask 1043456  }
   0xf   : > { %3062 = vst [vmem:[%s4288_s14] sm:$0xf] %v4215_v2  ;;  %3074 = vst [vmem:[%s4288_s14 + $0x30] sm:$0x7] %v4215_v2  ;;  %3795 = vmatprep.mubr.msk.bf16.mxu0 %vm4217_vm0, %v4216_v5  ;;  %3831 = vmatprep.mubr.msk.bf16.mxu1 %vm4217_vm0, %v4216_v5  ;;  %v4134_v13 = vld [vmem:[%s5624_s1 + $0x38] sm:$0xff]   ;;  %v516_v14 = vld [vmem:[%s5625_s2 + $0x49] sm:$0xff]  ;;  %vm1956_vm8 = vcmask 1045504  }
  0x10   : > { %3063 = vst [vmem:[%s4288_s14 + $0x4] sm:$0xf] %v4215_v2  ;;  %3064 = vst [vmem:[%s4288_s14 + $0x8] sm:$0xf] %v4215_v2  ;;  %v515_v15 = vld [vmem:[%s5625_s2 + $0x41] sm:$0xff]  ;;  %3780 = vmatpush3.bf16.msra.mxu0 %v4133_v12  ;;  %3816 = vmatpush3.bf16.msra.mxu1 %v4134_v13  ;;  %v4136_v17 = vld [vmem:[%s5624_s1 + $0x30] sm:$0xff]  }
  0x11   : > { %531 = vperm.xlu1 %4132, %v510_v3   ;;  %523 = vperm.xlu0 %4131, %v508_v4   ;;  %3065 = vst [vmem:[%s4288_s14 + $0xc] sm:$0xf] %v4215_v2  ;;  %3066 = vst [vmem:[%s4288_s14 + $0x10] sm:$0xf] %v4215_v2  ;;  %v364_v18 = vld [vmem:[%s5625_s2 + $0x18] sm:$0xff]  ;;  %v363_v19 = vld [vmem:[%s5625_s2 + $0x10] sm:$0xff] }
  0x12   : > { %3067 = vst [vmem:[%s4288_s14 + $0x14] sm:$0xf] %v4215_v2  ;;  %3068 = vst [vmem:[%s4288_s14 + $0x18] sm:$0xf] %v4215_v2  ;;  %3781 = vmatprep.subr.bf16.mxu0 %v4216_v5  ;;  %3817 = vmatprep.subr.bf16.mxu1 %v4216_v5  ;;  %v4137_v20 = vld [vmem:[%s5624_s1 + $0x68] sm:$0xff]   ;;  %v365_v23 = vld [vmem:[%s5625_s2 + $0x20] sm:$0xff] }
  0x13   : > { %3069 = vst [vmem:[%s4288_s14 + $0x1c] sm:$0xf] %v4215_v2  ;;  %3070 = vst [vmem:[%s4288_s14 + $0x20] sm:$0xf] %v4215_v2  ;;  %v4138_v21 = vld [vmem:[%s5624_s1 + $0x28] sm:$0xff]   ;;  %v4139_v24 = vld [vmem:[%s5624_s1 + $0x60] sm:$0xff]  }
  0x14   : > { %3071 = vst [vmem:[%s4288_s14 + $0x24] sm:$0xf] %v4215_v2  ;;  %3072 = vst [vmem:[%s4288_s14 + $0x28] sm:$0xf] %v4215_v2  ;;  %3782 = vmatpush3.bf16.msra.mxu0 %v4135_v16  ;;  %3818 = vmatpush3.bf16.msra.mxu1 %v4136_v17  ;;  %v366_v22 = vld [vmem:[%s5625_s2 + $0x28] sm:$0xff]  ;;  %v4140_v25 = vld [vmem:[%s5624_s1 + $0x20] sm:$0xff]  }
  0x15   : > { %3073 = vst [vmem:[%s4288_s14 + $0x2c] sm:$0xf] %v4215_v2  ;;  %539 = vperm.xlu1 %4132, %v512_v6   ;;  %535 = vperm.xlu0 %4131, %v511_v7   ;;  %v920_v26 = vld [vmem:[%s5625_s2 + $0xa] sm:$0xff]  ;;  %v919_v27 = vld [vmem:[%s5625_s2 + $0x2] sm:$0xff]  ;;  %v4141_v28 = vld [vmem:[%s5624_s1 + $0x58] sm:$0xff]   ;;  %vm2481_vm9 = vcmask 1044480  }
  0x16   : > { %3783 = vmatprep.subr.bf16.mxu0 %v4216_v5  ;;  %3819 = vmatprep.subr.bf16.mxu1 %v4216_v5  ;;  %v4142_v29 = vld [vmem:[%s5624_s1 + $0x18] sm:$0xff]   ;;  %v4143_v32 = vld [vmem:[%s5624_s1 + $0x50] sm:$0xff]   ;;  %v4145_v36 = vld [vmem:[%s5624_s1 + $0x48] sm:$0xff]   ;;  %vm1640_vm6 = vsmask.f32 6400  ;;  %vm3218_vm11 = vcmask 1043457  }
  0x17   : > { %v922_v30 = vld [vmem:[%s5625_s2 + $0x1a] sm:$0xff]  ;;  %v921_v31 = vld [vmem:[%s5625_s2 + $0x12] sm:$0xff]  ;;  %v4146_v37 = vld [vmem:[%s5624_s1 + $0x8] sm:$0xff]   ;;  %vm2546_vm10 = vsmask.f32 5376 }
  0x18   : > { %3784 = vmatpush3.bf16.msra.mxu0 %v4137_v20  ;;  %3820 = vmatpush3.bf16.msra.mxu1 %v4138_v21  ;;  %v4144_v33 = vld [vmem:[%s5624_s1 + $0x10] sm:$0xff]   ;;  %v368_v34 = vld [vmem:[%s5625_s2 + $0x38] sm:$0xff]  ;;  %v923_v39 = vld [vmem:[%s5625_s2 + $0x22] sm:$0xff]  ;;  %vm3219_vm12 = vsmask.f32 7942 }
  0x19   : > { %547 = vperm.xlu1 %4132, %v514_v8   ;;  %543 = vperm.xlu0 %4131, %v513_v9   ;;  %v367_v35 = vld [vmem:[%s5625_s2 + $0x30] sm:$0xff]  ;;  %v4147_v40 = vld [vmem:[%s5624_s1 + $0x40] sm:$0xff]   ;;  %v370_v42 = vld [vmem:[%s5625_s2 + $0x48] sm:$0xff]  ;;  %vm3105_vm13 = vsmask.f32 1280 }
  0x1a   : > { %3785 = vmatprep.subr.bf16.mxu0 %v4216_v5  ;;  %3821 = vmatprep.subr.bf16.mxu1 %v4216_v5  ;;  %v924_v38 = vld [vmem:[%s5625_s2 + $0x2a] sm:$0xff]  ;;  %v4148_v41 = vld [vmem:[%s5624_s1] sm:$0xff]   ;;  %v925_v45 = vld [vmem:[%s5625_s2 + $0x32] sm:$0xff]  ;;  %vm3106_vm14 = vsmask.f32 5392 }
  0x1b   : > { %v369_v43 = vld [vmem:[%s5625_s2 + $0x40] sm:$0xff]  ;;  %v928_v46 = vld [vmem:[%s5625_s2 + $0x4a] sm:$0xff]  ;;  %v1516_v48 = vld [vmem:[%s5625_s2 + $0x13] sm:$0xff] }
  0x1c   : > { %3786 = vmatpush3.bf16.msra.mxu0 %v4139_v24  ;;  %3822 = vmatpush3.bf16.msra.mxu1 %v4140_v25  ;;  %v926_v44 = vld [vmem:[%s5625_s2 + $0x3a] sm:$0xff]  ;;  %v927_v47 = vld [vmem:[%s5625_s2 + $0x42] sm:$0xff]  ;;  %v1515_v49 = vld [vmem:[%s5625_s2 + $0xb] sm:$0xff] }
  0x1d   : > { %378 = vperm.xlu1 %4132, %v362_v10   ;;  %373 = vperm.xlu0 %4131, %v361_v11   ;;  %v1518_v50 = vld [vmem:[%s5625_s2 + $0x23] sm:$0xff]  ;;  %v1517_v51 = vld [vmem:[%s5625_s2 + $0x1b] sm:$0xff]  ;;  %v1252_v52 = vld [vmem:[%s5625_s2 + $0x52] sm:$0xff] }
  0x1e   : > { %3787 = vmatprep.subr.bf16.mxu0 %v4216_v5  ;;  %3823 = vmatprep.subr.bf16.mxu1 %v4216_v5  ;;  %v1520_v53 = vld [vmem:[%s5625_s2 + $0x33] sm:$0xff]  ;;  %v1519_v54 = vld [vmem:[%s5625_s2 + $0x2b] sm:$0xff]  ;;  %v1522_v55 = vld [vmem:[%s5625_s2 + $0x43] sm:$0xff] }
  0x1f   : > { %v1521_v56 = vld [vmem:[%s5625_s2 + $0x3b] sm:$0xff]  ;;  %v1835_v58 = vld [vmem:[%s5625_s2 + $0xc] sm:$0xff]  ;;  %v1838_v59 = vld [vmem:[%s5625_s2 + $0x24] sm:$0xff] }
  0x20   : > { %3788 = vmatpush3.bf16.msra.mxu0 %v4141_v28  ;;  %3824 = vmatpush3.bf16.msra.mxu1 %v4142_v29  ;;  %v1836_v57 = vld [vmem:[%s5625_s2 + $0x14] sm:$0xff]  ;;  %v1837_v60 = vld [vmem:[%s5625_s2 + $0x1c] sm:$0xff]  ;;  %v1523_v62 = vld [vmem:[%s5625_s2 + $0x4b] sm:$0xff] }
  0x21   : > { %555 = vperm.xlu1 %4132, %v516_v14   ;;  %551 = vperm.xlu0 %4131, %v515_v15   ;;  %v1524_v61 = vld [vmem:[%s5625_s2 + $0x53] sm:$0xff]  ;;  %v4510_v1 = vld [vmem:[%s5625_s2 + $0x44] sm:$0xff]  ;;  %v1841_v2 = vld [vmem:[%s5625_s2 + $0x3c] sm:$0xff] }
  0x22   : > { %3789 = vmatprep.subr.bf16.mxu0 %v4216_v5  ;;  %3825 = vmatprep.subr.bf16.mxu1 %v4216_v5  ;;  %v1840_v63 = vld [vmem:[%s5625_s2 + $0x34] sm:$0xff]  ;;  %v1839_v0 = vld [vmem:[%s5625_s2 + $0x2c] sm:$0xff]  ;;  %v3595_v3 = vld [vmem:[%s4505_s21] sm:$0xff]  }
  0x23   : > { %v3650_v4 = vld [vmem:[%s4505_s21 + $0x8] sm:$0xff]   ;;  %v4521_v6 = vld [vmem:[%s5625_s2 + $0x54] sm:$0xff]  ;;  %v3596_v8 = vunpack.c.l.bf16 %v3595_v3  ;;  %v4532_v10 = vld [vmem:[%s5626_s3] ss:$0 sm:$0xff]  ;;  %v3597_v11 = vunpack.c.h.bf16 %v3595_v3 }
  0x24   : > { %3790 = vmatpush3.bf16.msra.mxu0 %v4143_v32  ;;  %3826 = vmatpush3.bf16.msra.mxu1 %v4144_v33  ;;  %v4526_v7 = vld [vmem:[%s5625_s2 + $0x4c] sm:$0xff]  ;;  %v3601_v12 = vunpack.c.h.bf16 %v3650_v4  ;;  %v3600_v13 = vunpack.c.l.bf16 %v3650_v4  ;;  %v3652_v17 = vld [vmem:[%s4505_s21 + $0x18] sm:$0xff]   ;;  %vm5543_vm15 = vmand %vm3218_vm11, %vm3219_vm12 }
  0x25   : > { %388 = vperm.xlu1 %4132, %v364_v18   ;;  %383 = vperm.xlu0 %4131, %v363_v19   ;;  %v3651_v9 = vld [vmem:[%s4505_s21 + $0x10] sm:$0xff]   ;;  %v474_v16 = vmul.f32 %v3596_v8, %v4532_v10  ;;  %v4541_v18 = vld [vmem:[%s5627_s4] ss:$0 sm:$0xff]  ;;  %v475_v20 = vmul.f32 %v3597_v11, %v4532_v10  ;;  %v3608_v24 = vunpack.c.l.bf16 %v3652_v17  ;;  %v3609_v33 = vunpack.c.h.bf16 %v3652_v17 }
  0x26   : > { %3791 = vmatprep.subr.bf16.mxu0 %v4216_v5  ;;  %3827 = vmatprep.subr.bf16.mxu1 %v4216_v5  ;;  %v3604_v14 = vunpack.c.l.bf16 %v3651_v9  ;;  %v3605_v15 = vunpack.c.h.bf16 %v3651_v9  ;;  %v477_v19 = vmul.f32 %v3601_v12, %v4532_v10  ;;  %v476_v21 = vmul.f32 %v3600_v13, %v4532_v10  ;;  %v2434_v8 = vld [vmem:[%s5625_s2 + $0x2d] sm:$0xff]  ;;  %v2433_v9 = vld [vmem:[%s5625_s2 + $0x25] sm:$0xff] }
  0x27   : > { %v4549_v25 = vadd.f32 %v4541_v18, %v474_v16  ;;  %v486_v29 = vadd.f32 %v4541_v18, %v475_v20 }
  0x28   : > { %3792 = vmatpush3.bf16.msra.mxu0 %v4145_v36  ;;  %3828 = vmatpush3.bf16.msra.mxu1 %v4146_v37  ;;  %v488_v28 = vadd.f32 %v4541_v18, %v477_v19 }
  0x29   : > { %398 = vperm.xlu1 %4132, %v366_v22   ;;  %393 = vperm.xlu0 %4131, %v365_v23   ;;  %v478_v22 = vmul.f32 %v3604_v14, %v4532_v10  ;;  %v479_v23 = vmul.f32 %v3605_v15, %v4532_v10 }
  0x2a   : > { %3793 = vmatprep.subr.bf16.mxu0 %v4216_v5  ;;  %3829 = vmatprep.subr.bf16.mxu1 %v4216_v5 }
  0x2b   : > { %v490_v32 = vadd.f32 %v4541_v18, %v479_v23 }
  0x2c   : > { %3794 = vmatpush3.bf16.msra.mxu0 %v4147_v40  ;;  %3830 = vmatpush3.bf16.msra.mxu1 %v4148_v41  ;;  %v4560_v40 = vmax.f32 %v486_v29, 0.0 }
  0x2d   : > { %935 = vperm.xlu1 %4132, %v920_v26   ;;  %931 = vperm.xlu0 %4131, %v919_v27  }
  0x2e   : > { %3851 = vmatprep.subr.bf16.mxu0 %v4216_v5  ;;  %3887 = vmatprep.subr.bf16.mxu1 %v4216_v5 }
  0x31   : > { %943 = vperm.xlu1 %4132, %v922_v30   ;;  %939 = vperm.xlu0 %4131, %v921_v31  }
  0x35   : > { %408 = vperm.xlu1 %4132, %v368_v34   ;;  %403 = vperm.xlu0 %4131, %v367_v35   ;;  %v480_v34 = vmul.f32 %v3608_v24, %v4532_v10  ;;  %v496_v35 = vmax.f32 %v4549_v25, 0.0  ;;  %v2435_v25 = vld [vmem:[%s5625_s2 + $0x35] sm:$0xff] }
  0x39   : > { %951 = vperm.xlu1 %4132, %v924_v38   ;;  %947 = vperm.xlu0 %4131, %v923_v39  }
  0x3d   : > { %418 = vperm.xlu1 %4132, %v370_v42   ;;  %413 = vperm.xlu0 %4131, %v369_v43   ;;  %v3653_v42 = vld [vmem:[%s4505_s21 + $0x20] sm:$0xff]  }
  0x41   : > { %959 = vperm.xlu1 %4132, %v926_v44   ;;  %955 = vperm.xlu0 %4131, %v925_v45  }
  0x45   : > { %1259 = vperm.xlu1 %4132, %v921_v31   ;;  %1255 = vperm.xlu0 %4131, %v920_v26   ;;  %v489_v31 = vadd.f32 %v4541_v18, %v478_v22 }
  0x49   : > { %1267 = vperm.xlu1 %4132, %v923_v39   ;;  %1263 = vperm.xlu0 %4131, %v922_v30   ;;  %v487_v30 = vadd.f32 %v4541_v18, %v476_v21 }
  0x4b   : > { %v4562_v41 = vmax.f32 %v487_v30, 0.0 }
  0x4d   : > { %967 = vperm.xlu1 %4132, %v928_v46   ;;  %963 = vperm.xlu0 %4131, %v927_v47  }
  0x51   : > { %1275 = vperm.xlu1 %4132, %v925_v45   ;;  %1271 = vperm.xlu0 %4131, %v924_v38   ;;  %v4558_v38 = vmax.f32 %v488_v28, 0.0 }
  0x55   : > { %1283 = vperm.xlu1 %4132, %v927_v47   ;;  %1279 = vperm.xlu0 %4131, %v926_v44   ;;  %v4567_v47 = vmax.f32 %v490_v32, 0.0 }
  0x59   : > { %1532 = vperm.xlu1 %4132, %v1516_v48   ;;  %1527 = vperm.xlu0 %4131, %v1515_v49   ;;  %v2432_v48 = vld [vmem:[%s5625_s2 + $0x1d] sm:$0xff]  ;;  %v2431_v49 = vld [vmem:[%s5625_s2 + $0x15] sm:$0xff] }
  0x5d   : > { %1542 = vperm.xlu1 %4132, %v1518_v50   ;;  %1537 = vperm.xlu0 %4131, %v1517_v51   ;;  %v481_v50 = vmul.f32 %v3609_v33, %v4532_v10  ;;  %v491_v51 = vadd.f32 %v4541_v18, %v480_v34 }
  0x5f   : > { %v492_v4 = vadd.f32 %v4541_v18, %v481_v50  ;;  %v4596_v13 = vmax.f32 %v491_v51, 0.0  ;;  %v2436_v51 = vld [vmem:[%s5625_s2 + $0x3d] sm:$0xff] }
  0x61   : > { %1291 = vperm.xlu1 %4132, %v1252_v52   ;;  %1287 = vperm.xlu0 %4131, %v928_v46   ;;  %v4565_v46 = vmax.f32 %v489_v31, 0.0 }
  0x65   : > { %1552 = vperm.xlu1 %4132, %v1520_v53   ;;  %1547 = vperm.xlu0 %4131, %v1519_v54  }
  0x69   : > { %1562 = vperm.xlu1 %4132, %v1522_v55   ;;  %1557 = vperm.xlu0 %4131, %v1521_v56   ;;  %v3612_v55 = vunpack.c.l.bf16 %v3653_v42 }
  0x6b   : > { %v482_v20 = vmul.f32 %v3612_v55, %v4532_v10  ;;  %v4150_v55 = vld [vmem:[%s5624_s1 + $0xb0] sm:$0xff]  }
  0x6d   : > { %1851 = vperm.xlu1 %4132, %v1836_v57   ;;  %1847 = vperm.xlu0 %4131, %v1835_v58  }
  0x71   : > { %1859 = vperm.xlu1 %4132, %v1838_v59   ;;  %1855 = vperm.xlu0 %4131, %v1837_v60  }
  0x75   : > { %1572 = vperm.xlu1 %4132, %v1524_v61   ;;  %1567 = vperm.xlu0 %4131, %v1523_v62  }
  0x79   : > { %1867 = vperm.xlu1 %4132, %v1840_v63   ;;  %1863 = vperm.xlu0 %4131, %v1839_v0  }
  0x7d   : > { %1875 = vperm.xlu1 %4132, %v4510_v1   ;;  %1871 = vperm.xlu0 %4131, %v1841_v2  }
  0x81   : > { %1883 = vperm.xlu1 %4132, %v4521_v6   ;;  %1879 = vperm.xlu0 %4131, %v4526_v7  }
  0x85   : > { %2175 = vperm.xlu1 %4132, %v1837_v60   ;;  %2171 = vperm.xlu0 %4131, %v1836_v57  }
  0x88   : > { %v528_v26 = vpop.permute.xlu1 %527  ;;  %v520_v27 = vpop.permute.xlu0 %519 }
  0x89   : > { %2183 = vperm.xlu1 %4132, %v1839_v0   ;;  %2179 = vperm.xlu0 %4131, %v1838_v59   ;;  %v558_v36 = vrot.slane %v520_v27, 7  ;;  %v561_v43 = vrot.slane %v528_v26, 7  ;;  %v3613_v0 = vunpack.c.h.bf16 %v3653_v42  ;;  %v4605_v27 = vmax.f32 %v492_v4, 0.0  ;;  %v4155_v4 = vld [vmem:[%s5624_s1 + $0xf0] sm:$0xff]  }
  0x8b   : > { %v588_v56 = vmul.f32 %v558_v36, %v496_v35  ;;  %v483_v24 = vmul.f32 %v3613_v0, %v4532_v10 }
  0x8c   : > { %v532_v37 = vpop.permute.xlu1 %531  ;;  %v524_v39 = vpop.permute.xlu0 %523 }
  0x8d   : > { %v563_v44 = vrot.slane %v532_v37, 7  ;;  %v559_v45 = vrot.slane %v524_v39, 7  ;;  %2191 = vperm.xlu1 %4132, %v1841_v2   ;;  %2187 = vperm.xlu0 %4131, %v1840_v63   ;;  %v4149_v37 = vld [vmem:[%s5624_s1 + $0xb8] sm:$0xff]   ;;  %v493_v39 = vadd.f32 %v4541_v18, %v482_v20  ;;  %v2438_v20 = vld [vmem:[%s5625_s2 + $0x4d] sm:$0xff] }
  0x8f   : > { %v564_v52 = vsel %vm557_vm1, %v561_v43, %v563_v44  ;;  %v560_v53 = vsel %vm557_vm1, %v558_v36, %v559_v45  ;;  %v562_v54 = vsel %vm557_vm1, %v559_v45, %v561_v43  ;;  %v494_v45 = vadd.f32 %v4541_v18, %v483_v24 }
  0x90   : > { %v591_v57 = vmul.f32 %v564_v52, %v4558_v38  ;;  %v589_v58 = vmul.f32 %v560_v53, %v4560_v40  ;;  %v590_v59 = vmul.f32 %v562_v54, %v4562_v41  ;;  %v540_v60 = vpop.permute.xlu1 %539  ;;  %v536_v61 = vpop.permute.xlu0 %535 }
  0x91   : > { %v567_v62 = vrot.slane %v540_v60, 7  ;;  %v565_v63 = vrot.slane %v536_v61, 7  ;;  %2447 = vperm.xlu1 %4132, %v2432_v48   ;;  %2443 = vperm.xlu0 %4131, %v2431_v49   ;;  %v4645_v60 = vmax.f32 %v494_v45, 0.0  ;;  %v2168_v61 = vld [vmem:[%s5625_s2 + $0x5c] sm:$0xff] }
  0x92   : > { %v599_v2 = vpack.c.bf16 %v589_v58, %v588_v56  ;;  %v4585_v3 = vpack.c.bf16 %v591_v57, %v590_v59  ;;  %v4641_v57 = vmax.f32 %v493_v39, 0.0 }
  0x93   : > { %v566_v11 = vsel %vm557_vm1, %v563_v44, %v565_v63  ;;  %v568_v12 = vsel %vm557_vm1, %v565_v63, %v567_v62  ;;  %v462_v44 = vld [vmem:[%s4505_s21 + $0x28] sm:$0x1] }
  0x94   : > { %v592_v14 = vmul.f32 %v566_v11, %v4565_v46  ;;  %v593_v15 = vmul.f32 %v568_v12, %v4567_v47  ;;  %v548_v16 = vpop.permute.xlu1 %547  ;;  %v544_v17 = vpop.permute.xlu0 %543  ;;  %v626_v19 = vshll.u32 %v599_v2, 16  ;;  %v631_v23 = vshll.u32 %v4585_v3, 16  ;;  %v4151_v12 = vld [vmem:[%s5624_s1 + $0xa8] sm:$0xff]  }
  0x95   : > { %v571_v21 = vrot.slane %v548_v16, 7  ;;  %v569_v22 = vrot.slane %v544_v17, 7  ;;  %2455 = vperm.xlu1 %4132, %v2434_v8   ;;  %2451 = vperm.xlu0 %4131, %v2433_v9   ;;  %v624_v28 = vshrl.u32 %v599_v2, 16  ;;  %v473_v53 = vunpack.c.l.bf16 %v462_v44 }
  0x96   : > { %v4603_v26 = vpack.c.bf16 %v593_v15, %v592_v14  ;;  %v628_v29 = vrot.slane %v626_v19, 1  ;;  %v633_v36 = vrot.slane %v631_v23, 1 }
  0x97   : > { %v570_v30 = vsel %vm557_vm1, %v567_v62, %v569_v22  ;;  %v572_v31 = vsel %vm557_vm1, %v569_v22, %v571_v21  ;;  %v635_v62 = vshrl.u32 %v4585_v3, 16  ;;  %v484_v8 = vmul.f32 %v4532_v10, %v473_v53 }
  0x98   : > { %v379_v32 = vpop.permute.xlu1 %378  ;;  %v374_v33 = vpop.permute.xlu0 %373  ;;  %v629_v34 = vor.u32 %v628_v29, %v624_v28  ;;  %v594_v48 = vmul.f32 %v570_v30, %v4596_v13  ;;  %v595_v49 = vmul.f32 %v572_v31, %v4605_v27  ;;  %v914_v29 = vld [vmem:[%s4505_s21] sm:$0xe]  ;;  %v4157_v31 = vld [vmem:[%s5624_s1 + $0xe8] sm:$0xff]  }
  0x99   : > { %v422_v42 = vmul.f32 %v4560_v40, %v379_v32  ;;  %v421_v43 = vmul.f32 %v496_v35, %v374_v33  ;;  %2199 = vperm.xlu1 %4132, %v4526_v7   ;;  %2195 = vperm.xlu0 %4131, %v4510_v1   ;;  %v639_v7 = vshll.u32 %v4603_v26, 16  ;;  %v4153_v35 = vld [vmem:[%s5624_s1 + $0xf8] sm:$0xff]   ;;  %v637_v3 = vor.u32 %v635_v62, %v633_v36  ;;  %v4152_v30 = vld [vmem:[%s5624_s1 + $0xa0] sm:$0xff]  }
  0x9a   : > { %v634_v50 = vsel %vm622_vm2, %v629_v34, %v633_v36  ;;  %v4643_v59 = vpack.c.bf16 %v595_v49, %v594_v48  ;;  %v2440_v33 = vld [vmem:[%s5625_s2 + $0x5d] sm:$0xff]  ;;  %v2439_v34 = vld [vmem:[%s5625_s2 + $0x55] sm:$0xff]  ;;  %v643_v36 = vshrl.u32 %v4603_v26, 16  ;;  %v915_v39 = vunpack.c.l.bf16 %v914_v29 }
  0x9b   : > { %v431_v1 = vpack.c.bf16 %v422_v42, %v421_v43  ;;  %3796 = vmatmul.mubr.bf16.vlgmr.msra.gmra.mxu0 %v634_v50  ;;  %v641_v63 = vrot.slane %v639_v7, 1  ;;  %v4154_v26 = vld [vmem:[%s5624_s1 + $0x98] sm:$0xff]  }
  0x9c   : > { %3852 = vmatpush3.bf16.msra.mxu0 %v4149_v37  ;;  %v4633_v52 = vpop.permute.xlu1 %555  ;;  %v552_v54 = vpop.permute.xlu0 %551  ;;  %3799 = vmatprep.mubr.msk.bf16.mxu0 %vm4217_vm0, %v4216_v5  ;;  %v647_v22 = vshll.u32 %v4643_v59, 16  ;;  %v651_v62 = vshrl.u32 %v4643_v59, 16 }
  0x9d   : > { %v575_v56 = vrot.slane %v4633_v52, 7  ;;  %v573_v58 = vrot.slane %v552_v54, 7  ;;  %2463 = vperm.xlu1 %4132, %v2436_v51   ;;  %2459 = vperm.xlu0 %4131, %v2435_v25   ;;  %v642_v19 = vsel %vm622_vm2, %v637_v3, %v641_v63  ;;  %v645_v49 = vor.u32 %v643_v36, %v641_v63  ;;  %v2742_v51 = vld [vmem:[%s5625_s2 + $0x1e] sm:$0xff]  ;;  %v2741_v25 = vld [vmem:[%s5625_s2 + $0x16] sm:$0xff]  ;;  %v2744_v52 = vld [vmem:[%s5625_s2 + $0x2e] sm:$0xff] }
  0x9e   : > { %3832 = vmatmul.mubr.bf16.vlgmr.msra.gmra.mxu1 %v431_v1  ;;  %3853 = vmatprep.subr.bf16.mxu0 %v4216_v5  ;;  %v649_v37 = vrot.slane %v647_v22, 1  ;;  %v4159_v1 = vld [vmem:[%s5624_s1 + $0xe0] sm:$0xff]   ;;  %v916_v54 = vmul.f32 %v4532_v10, %v915_v39  ;;  %v2745_v22 = vld [vmem:[%s5625_s2 + $0x36] sm:$0xff] }
  0x9f   : > { %v574_v0 = vsel %vm557_vm1, %v571_v21, %v573_v58  ;;  %v576_v2 = vsel %vm557_vm1, %v573_v58, %v575_v56  ;;  %3835 = vmatprep.mubr.msk.bf16.mxu1 %vm4217_vm0, %v4216_v5  ;;  %3888 = vmatpush3.bf16.msra.mxu1 %v4153_v35  ;;  %v2437_v21 = vld [vmem:[%s5625_s2 + $0x45] sm:$0xff]  ;;  %v4163_v39 = vld [vmem:[%s5624_s1 + $0xd0] sm:$0xff]   ;;  %vm3234_vm1 = vmand %vm969_vm3, %vm3105_vm13 }
  0xa0   : > { %v389_v9 = vpop.permute.xlu1 %388  ;;  %v384_v11 = vpop.permute.xlu0 %383  ;;  %3854 = vmatpush3.bf16.msra.mxu0 %v4150_v55  ;;  %3889 = vmatprep.subr.bf16.mxu1 %v4216_v5  ;;  %v596_v16 = vmul.f32 %v574_v0, %v4641_v57  ;;  %v597_v17 = vmul.f32 %v576_v2, %v4645_v60  ;;  %v650_v50 = vsel %vm622_vm2, %v645_v49, %v649_v37  ;;  %v4160_v36 = vld [vmem:[%s5624_s1 + $0x80] sm:$0xff]  }
  0xa1   : > { %v424_v14 = vmul.f32 %v4558_v38, %v389_v9  ;;  %v423_v15 = vmul.f32 %v4562_v41, %v384_v11  ;;  %2207 = vperm.xlu1 %4132, %v2168_v61   ;;  %2203 = vperm.xlu0 %4131, %v4521_v6   ;;  %v4681_v6 = vadd.f32 %v4541_v18, %v484_v8  ;;  %v4156_v61 = vld [vmem:[%s5624_s1 + $0x90] sm:$0xff]  }
  0xa2   : > { %3855 = vmatprep.subr.bf16.mxu0 %v4216_v5  ;;  %v4692_v32 = vpack.c.bf16 %v597_v17, %v596_v16  ;;  %v917_v9 = vadd.f32 %v4541_v18, %v916_v54  ;;  %v653_v3 = vor.u32 %v651_v62, %v649_v37  ;;  %v4164_v54 = vld [vmem:[%s5624_s1 + $0xc8] sm:$0xff]   ;;  %v2749_v62 = vld [vmem:[%s5625_s2 + $0x56] sm:$0xff] }
  0xa3   : > { %v432_v23 = vpack.c.bf16 %v424_v14, %v423_v15  ;;  %3800 = vmatmul.mubr.bf16.gmra.mxu0 %v642_v19  ;;  %3890 = vmatpush3.bf16.msra.mxu1 %v4155_v4  ;;  %v506_v42 = vmax.f32 %v4681_v6, 0.0  ;;  %v4161_v4 = vld [vmem:[%s5624_s1 + $0xd8] sm:$0xff]   ;;  %v1188_v19 = vld [vmem:[%s4505_s21 + $0x4] sm:$0xe] }
  0xa4   : > { %v399_v24 = vpop.permute.xlu1 %398  ;;  %v394_v28 = vpop.permute.xlu0 %393  ;;  %3856 = vmatpush3.bf16.msra.mxu0 %v4151_v12  ;;  %3803 = vmatprep.mubr.msk.bf16.mxu0 %vm4217_vm0, %v4216_v5  ;;  %v655_v7 = vshll.u32 %v4692_v32, 16  ;;  %v4158_v12 = vld [vmem:[%s5624_s1 + $0x88] sm:$0xff]   ;;  %v1199_v37 = vunpack.c.l.bf16 %v1188_v19 }
  0xa5   : > { %2471 = vperm.xlu1 %4132, %v2438_v20   ;;  %2467 = vperm.xlu0 %4131, %v2437_v21   ;;  %v426_v43 = vmul.f32 %v4567_v47, %v399_v24  ;;  %v425_v44 = vmul.f32 %v4565_v46, %v394_v28  ;;  %v598_v35 = vmul.f32 %v575_v56, %v506_v42  ;;  %v2743_v56 = vld [vmem:[%s5625_s2 + $0x26] sm:$0xff]  ;;  %v2746_v21 = vld [vmem:[%s5625_s2 + $0x3e] sm:$0xff] }
  0xa6   : > { %3836 = vmatmul.mubr.bf16.gmra.mxu1 %v432_v23  ;;  %3857 = vmatprep.subr.bf16.mxu0 %v4216_v5  ;;  %v657_v63 = vrot.slane %v655_v7, 1 }
  0xa7   : > { %3839 = vmatprep.mubr.msk.bf16.mxu1 %vm4217_vm0, %v4216_v5  ;;  %3891 = vmatprep.subr.bf16.mxu1 %v4216_v5  ;;  %v433_v53 = vpack.c.bf16 %v426_v43, %v425_v44  ;;  %v604_v8 = vpack.c.bf16 %v598_v35, %v598_v35 }
  0xa8   : > { %v4708_v45 = vpop.permute.xlu1 %935  ;;  %v4710_v48 = vpop.permute.xlu0 %931  ;;  %3858 = vmatpush3.bf16.msra.mxu0 %v4152_v30  ;;  %3892 = vmatpush3.bf16.msra.mxu1 %v4157_v31  ;;  %v658_v20 = vsel %vm622_vm2, %v653_v3, %v657_v63  ;;  %v918_v30 = vmax.f32 %v917_v9, 0.0 }
  0xa9   : > { %2479 = vperm.xlu1 %4132, %v2440_v33   ;;  %2475 = vperm.xlu0 %4131, %v2439_v34   ;;  %v971_v14 = vrot.slane %v4708_v45, 6  ;;  %v970_v15 = vrot.slane %v4710_v48, 6  ;;  %v663_v29 = vshll.u32 %v604_v8, 16  ;;  %v659_v34 = vshrl.u32 %v4692_v32, 16  ;;  %v2748_v32 = vld [vmem:[%s5625_s2 + $0x4e] sm:$0xff]  ;;  %v2747_v48 = vld [vmem:[%s5625_s2 + $0x46] sm:$0xff] }
  0xaa   : > { %3859 = vmatprep.subr.bf16.mxu0 %v4216_v5  ;;  %3893 = vmatprep.subr.bf16.mxu1 %v4216_v5 }
  0xab   : > { %3804 = vmatmul.mubr.bf16.gmra.mxu0 %v650_v50  ;;  %v972_v43 = vsel %vm969_vm3, %v970_v15, %v971_v14  ;;  %v661_v49 = vor.u32 %v659_v34, %v657_v63 }
  0xac   : > { %v4733_v55 = vpop.permute.xlu1 %943  ;;  %v940_v58 = vpop.permute.xlu0 %939  ;;  %3860 = vmatpush3.bf16.msra.mxu0 %v4154_v26  ;;  %3807 = vmatprep.mubr.msk.bf16.mxu0 %vm4217_vm0, %v4216_v5  ;;  %v1001_v7 = vmul.f32 %v972_v43, %v4560_v40  ;;  %v2750_v40 = vld [vmem:[%s5625_s2 + $0x5e] sm:$0xff] }
  0xad   : > { %2757 = vperm.xlu1 %4132, %v2742_v51   ;;  %2753 = vperm.xlu0 %4131, %v2741_v25   ;;  %v975_v0 = vrot.slane %v4733_v55, 6  ;;  %v973_v2 = vrot.slane %v940_v58, 6  ;;  %v665_v51 = vrot.slane %v663_v29, 1  ;;  %v1000_v25 = vmul.f32 %v970_v15, %v918_v30  ;;  %v4166_v55 = vld [vmem:[%s5624_s1 + $0xc0] sm:$0xff]  }
  0xae   : > { %3840 = vmatmul.mubr.bf16.gmra.mxu1 %v433_v53  ;;  %3861 = vmatprep.subr.bf16.mxu0 %v4216_v5  ;;  %v1210_v53 = vmul.f32 %v4532_v10, %v1199_v37 }
  0xaf   : > { %3843 = vmatprep.mubr.msk.bf16.mxu1 %vm4217_vm0, %v4216_v5  ;;  %3894 = vmatpush3.bf16.msra.mxu1 %v4159_v1  ;;  %v974_v23 = vsel %vm969_vm3, %v971_v14, %v973_v2  ;;  %v976_v24 = vsel %vm969_vm3, %v973_v2, %v975_v0  ;;  %v1011_v8 = vpack.c.bf16 %v1001_v7, %v1000_v25 }
  0xb0   : > { %v409_v11 = vpop.permute.xlu1 %408  ;;  %v404_v59 = vpop.permute.xlu0 %403  ;;  %3862 = vmatpush3.bf16.msra.mxu0 %v4156_v61  ;;  %3895 = vmatprep.subr.bf16.mxu1 %v4216_v5  ;;  %v1002_v44 = vmul.f32 %v974_v23, %v4562_v41  ;;  %v1003_v45 = vmul.f32 %v976_v24, %v4558_v38 }
  0xb1   : > { %v428_v16 = vmul.f32 %v4605_v27, %v409_v11  ;;  %v427_v17 = vmul.f32 %v4596_v13, %v404_v59  ;;  %2765 = vperm.xlu1 %4132, %v2744_v52   ;;  %2761 = vperm.xlu0 %4131, %v2743_v56   ;;  %v666_v56 = vsel %vm622_vm2, %v661_v49, %v665_v51 }
  0xb2   : > { %3863 = vmatprep.subr.bf16.mxu0 %v4216_v5  ;;  %v1012_v52 = vpack.c.bf16 %v1003_v45, %v1002_v44  ;;  %v4822_v59 = vadd.f32 %v4541_v18, %v1210_v53 }
  0xb3   : > { %v434_v28 = vpack.c.bf16 %v428_v16, %v427_v17  ;;  %3808 = vmatmul.mubr.bf16.gmra.mxu0 %v658_v20  ;;  %3896 = vmatpush3.bf16.msra.mxu1 %v4161_v4  ;;  %v1041_v16 = vrot.slane %v1011_v8, 1  ;;  %v4168_v8 = vld [vmem:[%s5624_s1 + $0x120] sm:$0xff]  }
  0xb4   : > { %v4776_v31 = vpop.permute.xlu1 %951  ;;  %v948_v33 = vpop.permute.xlu0 %947  ;;  %3864 = vmatpush3.bf16.msra.mxu0 %v4158_v12  ;;  %3811 = vmatprep.mubr.msk.bf16.mxu0 %vm4217_vm0, %v4216_v5  ;;  %v1232_v20 = vmax.f32 %v4822_v59, 0.0 }
  0xb5   : > { %2773 = vperm.xlu1 %4132, %v2746_v21   ;;  %2769 = vperm.xlu0 %4131, %v2745_v22   ;;  %v979_v26 = vrot.slane %v4776_v31, 6  ;;  %v977_v50 = vrot.slane %v948_v33, 6  ;;  %v4162_v21 = vld [vmem:[%s5624_s1 + $0x138] sm:$0xff]  }
  0xb6   : > { %3844 = vmatmul.mubr.bf16.gmra.mxu1 %v434_v28  ;;  %3865 = vmatprep.subr.bf16.mxu0 %v4216_v5 }
  0xb7   : > { %3847 = vmatprep.mubr.msk.bf16.mxu1 %vm4217_vm0, %v4216_v5  ;;  %3897 = vmatprep.subr.bf16.mxu1 %v4216_v5  ;;  %v978_v63 = vsel %vm969_vm3, %v975_v0, %v977_v50  ;;  %v980_v2 = vsel %vm969_vm3, %v977_v50, %v979_v26  ;;  %v1042_v0 = vrot.slane %v1012_v52, 1 }
  0xb8   : > { %v419_v1 = vpop.permute.xlu1 %418  ;;  %v414_v35 = vpop.permute.xlu0 %413  ;;  %3866 = vmatpush3.bf16.msra.mxu0 %v4160_v36  ;;  %3898 = vmatpush3.bf16.msra.mxu1 %v4163_v39  ;;  %v1004_v3 = vmul.f32 %v978_v63, %v4565_v46  ;;  %v1005_v12 = vmul.f32 %v980_v2, %v4567_v47  ;;  %v4165_v39 = vld [vmem:[%s5624_s1 + $0x130] sm:$0xff]  }
  0xb9   : > { %v430_v58 = vmul.f32 %v4645_v60, %v419_v1  ;;  %v429_v61 = vmul.f32 %v4641_v57, %v414_v35  ;;  %2781 = vperm.xlu1 %4132, %v2748_v32   ;;  %2777 = vperm.xlu0 %4131, %v2747_v48   ;;  %v1043_v24 = vsel %vm1040_vm4, %v1041_v16, %v1042_v0  ;;  %v4167_v35 = vld [vmem:[%s5624_s1 + $0x128] sm:$0xff]  }
  0xba   : > { %3923 = vmatprep.subr.bf16.mxu0 %v4216_v5  ;;  %3899 = vmatprep.subr.bf16.mxu1 %v4216_v5  ;;  %v1013_v28 = vpack.c.bf16 %v1005_v12, %v1004_v3  ;;  %v1198_v16 = vld [vmem:[%s4505_s21 + $0x2c] sm:$0x1] }
  0xbb   : > { %v435_v4 = vpack.c.bf16 %v430_v58, %v429_v61  ;;  %3812 = vmatmul.mubr.bf16.gmra.mxu0 %v666_v56 }
  0xbc   : > { %v960_v9 = vpop.permute.xlu1 %959  ;;  %v956_v11 = vpop.permute.xlu0 %955  ;;  %3867 = vmatprep.mubr.msk.bf16.mxu0 %vm4217_vm0, %v4216_v5  ;;  %3900 = vmatpush3.bf16.msra.mxu1 %v4164_v54  ;;  %v1044_v48 = vrot.slane %v1013_v28, 1  ;;  %v4170_v28 = vld [vmem:[%s5624_s1 + $0x118] sm:$0xff]  }
  0xbd   : > { %2789 = vperm.xlu1 %4132, %v2750_v40   ;;  %2785 = vperm.xlu0 %4131, %v2749_v62   ;;  %v983_v14 = vrot.slane %v960_v9, 6  ;;  %v981_v15 = vrot.slane %v956_v11, 6  ;;  %v4169_v9 = vld [vmem:[%s5624_s1 + $0x178] sm:$0xff]  }
  0xbe   : > { %3848 = vmatmul.mubr.bf16.gmra.mxu1 %v435_v4  ;;  %3901 = vmatprep.subr.bf16.mxu1 %v4216_v5  ;;  %v1045_v61 = vsel %vm1040_vm4, %v1042_v0, %v1044_v48  ;;  %v4880_v0 = vld [vmem:[%s4505_s21 + $0xc] ss:$28 sps:$4 sm:$0xff]  }
  0xbf   : > { %3903 = vmatprep.mubr.msk.bf16.mxu1 %vm4217_vm0, %v4216_v5  ;;  %v982_v29 = vsel %vm969_vm3, %v979_v26, %v981_v15  ;;  %v984_v30 = vsel %vm969_vm3, %v981_v15, %v983_v14 }
  0xc0   : > { %v1260_v17 = vpop.permute.xlu1 %1259  ;;  %v1256_v19 = vpop.permute.xlu0 %1255  ;;  %3902 = vmatpush3.bf16.msra.mxu1 %v4166_v55  ;;  %v1006_v45 = vmul.f32 %v982_v29, %v4596_v13  ;;  %v1007_v32 = vmul.f32 %v984_v30, %v4605_v27  ;;  %v4171_v29 = vld [vmem:[%s5624_s1 + $0x170] sm:$0xff]   ;;  %v1208_v30 = vunpack.c.h.bf16 %v4880_v0 }
  0xc1   : > { %v1294_v22 = vrot.slane %v1260_v17, 6  ;;  %v1293_v23 = vrot.slane %v1256_v19, 6  ;;  %3959 = vmatprep.subr.bf16.mxu1 %v4216_v5 }
  0xc2   : > { %v1014_v52 = vpack.c.bf16 %v1007_v32, %v1006_v45 }
  0xc3   : > { %v1295_v31 = vsel %vm969_vm3, %v1293_v23, %v1294_v22  ;;  %3868 = vmatmul.mubr.bf16.vlgmr.msra.gmra.mxu0 %v1043_v24  ;;  %v1323_v33 = vmul.f32 %v1293_v23, %v1232_v20 }
  0xc4   : > { %v1324_v34 = vmul.f32 %v1295_v31, %v4562_v41  ;;  %3924 = vmatpush3.bf16.msra.mxu0 %v4162_v21  ;;  %v1268_v36 = vpop.permute.xlu1 %1267  ;;  %v1264_v37 = vpop.permute.xlu0 %1263  ;;  %3871 = vmatprep.mubr.msk.bf16.mxu0 %vm4217_vm0, %v4216_v5  ;;  %v4885_v15 = vrot.slane %v1014_v52, 1 }
  0xc5   : > { %v1298_v43 = vrot.slane %v1268_v36, 6  ;;  %v1296_v44 = vrot.slane %v1264_v37, 6  ;;  %3925 = vmatprep.subr.bf16.mxu0 %v4216_v5 }
  0xc6   : > { %v1334_v50 = vpack.c.bf16 %v1324_v34, %v1323_v33  ;;  %v1209_v34 = vunpack.c.l.bf16 %v1198_v16  ;;  %v1047_v36 = vsel %vm1040_vm4, %v1044_v48, %v4885_v15 }
  0xc7   : > { %v1297_v49 = vsel %vm969_vm3, %v1294_v22, %v1296_v44  ;;  %v1299_v26 = vsel %vm969_vm3, %v1296_v44, %v1298_v43 }
  0xc8   : > { %v1325_v51 = vmul.f32 %v1297_v49, %v4558_v38  ;;  %v1326_v25 = vmul.f32 %v1299_v26, %v4565_v46  ;;  %v4858_v7 = vpop.permute.xlu1 %967  ;;  %v964_v1 = vpop.permute.xlu0 %963  ;;  %3926 = vmatpush3.bf16.msra.mxu0 %v4165_v39  ;;  %v1363_v62 = vrot.slane %v1334_v50, 1  ;;  %v1219_v50 = vmul.f32 %v4532_v10, %v1208_v30 }
  0xc9   : > { %v987_v53 = vrot.slane %v4858_v7, 6  ;;  %v985_v54 = vrot.slane %v964_v1, 6  ;;  %3927 = vmatprep.subr.bf16.mxu0 %v4216_v5 }
  0xca   : > { %v1335_v58 = vpack.c.bf16 %v1326_v25, %v1325_v51  ;;  %v4172_v51 = vld [vmem:[%s5624_s1 + $0x110] sm:$0xff]   ;;  %v4173_v25 = vld [vmem:[%s5624_s1 + $0x168] sm:$0xff]  }
  0xcb   : > { %v986_v56 = vsel %vm969_vm3, %v983_v14, %v985_v54  ;;  %v988_v40 = vsel %vm969_vm3, %v985_v54, %v987_v53  ;;  %3872 = vmatmul.mubr.bf16.gmra.mxu0 %v1045_v61  ;;  %v1220_v54 = vmul.f32 %v4532_v10, %v1209_v34 }
  0xcc   : > { %v1364_v63 = vrot.slane %v1335_v58, 1  ;;  %v1276_v2 = vpop.permute.xlu1 %1275  ;;  %v1272_v4 = vpop.permute.xlu0 %1271  ;;  %3928 = vmatpush3.bf16.msra.mxu0 %v4167_v35  ;;  %3875 = vmatprep.mubr.msk.bf16.mxu0 %vm4217_vm0, %v4216_v5  ;;  %v1008_v3 = vmul.f32 %v986_v56, %v4641_v57  ;;  %v1009_v12 = vmul.f32 %v988_v40, %v4645_v60  ;;  %v1010_v58 = vmul.f32 %v987_v53, %v506_v42  ;;  %v1830_v40 = vld [vmem:[%s4505_s21 + $0x4] sm:$0xc]  ;;  %v4174_v53 = vld [vmem:[%s5624_s1 + $0x108] sm:$0xff]  }
  0xcd   : > { %v1302_v11 = vrot.slane %v1276_v2, 6  ;;  %v1300_v55 = vrot.slane %v1272_v4, 6  ;;  %3929 = vmatprep.subr.bf16.mxu0 %v4216_v5  ;;  %v1230_v42 = vadd.f32 %v4541_v18, %v1219_v50 }
  0xce   : > { %v1365_v14 = vsel %vm1040_vm4, %v1363_v62, %v1364_v63  ;;  %v1015_v39 = vpack.c.bf16 %v1009_v12, %v1008_v3 }
  0xcf   : > { %v1301_v17 = vsel %vm969_vm3, %v1298_v43, %v1300_v55  ;;  %v1303_v19 = vsel %vm969_vm3, %v1300_v55, %v1302_v11  ;;  %3904 = vmatmul.mubr.bf16.vlgmr.msra.gmra.mxu1 %v1365_v14 }
  0xd0   : > { %v1327_v21 = vmul.f32 %v1301_v17, %v4567_v47  ;;  %v1328_v22 = vmul.f32 %v1303_v19, %v4596_v13  ;;  %v4892_v23 = vpop.permute.xlu1 %1283  ;;  %v1280_v24 = vpop.permute.xlu0 %1279  ;;  %3930 = vmatpush3.bf16.msra.mxu0 %v4168_v8  ;;  %3960 = vmatpush3.bf16.msra.mxu1 %v4169_v9  ;;  %v4936_v52 = vrot.slane %v1015_v39, 1  ;;  %v4175_v8 = vld [vmem:[%s5624_s1 + $0x160] sm:$0xff]   ;;  %v1831_v9 = vunpack.c.l.bf16 %v1830_v40 }
  0xd1   : > { %v1306_v31 = vrot.slane %v4892_v23, 6  ;;  %v1304_v33 = vrot.slane %v1280_v24, 6  ;;  %3907 = vmatprep.mubr.msk.bf16.mxu1 %vm4217_vm0, %v4216_v5  ;;  %3931 = vmatprep.subr.bf16.mxu0 %v4216_v5  ;;  %v4973_v24 = vmax.f32 %v1230_v42, 0.0 }
  0xd2   : > { %v1336_v37 = vpack.c.bf16 %v1328_v22, %v1327_v21  ;;  %3961 = vmatprep.subr.bf16.mxu1 %v4216_v5  ;;  %v1049_v55 = vsel %vm1040_vm4, %v4885_v15, %v4936_v52  ;;  %v4176_v15 = vld [vmem:[%s5624_s1 + $0x100] sm:$0xff]   ;;  %v1832_v34 = vmul.f32 %v4532_v10, %v1831_v9 }
  0xd3   : > { %v1305_v43 = vsel %vm969_vm3, %v1302_v11, %v1304_v33  ;;  %v1307_v44 = vsel %vm969_vm3, %v1304_v33, %v1306_v31  ;;  %3876 = vmatmul.mubr.bf16.gmra.mxu0 %v1047_v36  ;;  %v1016_v11 = vpack.c.bf16 %v1010_v58, %v1010_v58  ;;  %v4177_v33 = vld [vmem:[%s5624_s1 + $0x158] sm:$0xff]   ;;  %v4179_v58 = vld [vmem:[%s5624_s1 + $0x150] sm:$0xff]  }
  0xd4   : > { %v1329_v45 = vmul.f32 %v1305_v43, %v4605_v27  ;;  %v1330_v32 = vmul.f32 %v1307_v44, %v4641_v57  ;;  %v4914_v49 = vpop.permute.xlu1 %1532  ;;  %v4916_v26 = vpop.permute.xlu0 %1527  ;;  %v1366_v48 = vrot.slane %v1336_v37, 1  ;;  %3932 = vmatpush3.bf16.msra.mxu0 %v4170_v28  ;;  %3962 = vmatpush3.bf16.msra.mxu1 %v4171_v29 }
  0xd5   : > { %v1577_v1 = vrot.slane %v4914_v49, 5  ;;  %v1576_v35 = vrot.slane %v4916_v26, 5  ;;  %3879 = vmatprep.mubr.msk.bf16.mxu0 %vm4217_vm0, %v4216_v5  ;;  %3933 = vmatprep.subr.bf16.mxu0 %v4216_v5  ;;  %v1050_v36 = vrot.slane %v1016_v11, 1 }
  0xd6   : > { %v1367_v61 = vsel %vm1040_vm4, %v1364_v63, %v1366_v48  ;;  %3963 = vmatprep.subr.bf16.mxu1 %v4216_v5  ;;  %v1337_v56 = vpack.c.bf16 %v1330_v32, %v1329_v45 }
  0xd7   : > { %v1578_v62 = vsel %vm1575_vm5, %v1576_v35, %v1577_v1  ;;  %v1606_v2 = vmul.f32 %v1576_v35, %v1232_v20  ;;  %3908 = vmatmul.mubr.bf16.gmra.mxu1 %v1367_v61  ;;  %v1231_v20 = vadd.f32 %v4541_v18, %v1220_v54  ;;  %v1833_v54 = vadd.f32 %v4541_v18, %v1832_v34  ;;  %v4178_v34 = vld [vmem:[%s5624_s1 + $0x1b8] sm:$0xff]  }
  0xd8   : > { %v1607_v4 = vmul.f32 %v1578_v62, %v4562_v41  ;;  %v4944_v6 = vpop.permute.xlu1 %1542  ;;  %v4946_v7 = vpop.permute.xlu0 %1537  ;;  %3934 = vmatpush3.bf16.msra.mxu0 %v4172_v51  ;;  %3964 = vmatpush3.bf16.msra.mxu1 %v4173_v25  ;;  %v4964_v3 = vrot.slane %v1337_v56, 1  ;;  %v1051_v40 = vsel %vm1040_vm4, %v4936_v52, %v1050_v36 }
  0xd9   : > { %v1581_v63 = vrot.slane %v4944_v6, 5  ;;  %v1579_v59 = vrot.slane %v4946_v7, 5  ;;  %3911 = vmatprep.mubr.msk.bf16.mxu1 %vm4217_vm0, %v4216_v5  ;;  %3935 = vmatprep.subr.bf16.mxu0 %v4216_v5  ;;  %v1242_v28 = vmax.f32 %v1231_v20, 0.0 }
  0xda   : > { %3965 = vmatprep.subr.bf16.mxu1 %v4216_v5  ;;  %v1617_v12 = vpack.c.bf16 %v1607_v4, %v1606_v2  ;;  %v1369_v39 = vsel %vm1040_vm4, %v1366_v48, %v4964_v3  ;;  %v1510_v2 = vld [vmem:[%s4505_s21 + $0x2c] sm:$0x3] }
  0xdb   : > { %v1580_v14 = vsel %vm1575_vm5, %v1577_v1, %v1579_v59  ;;  %v1582_v16 = vsel %vm1575_vm5, %v1579_v59, %v1581_v63  ;;  %3880 = vmatmul.mubr.bf16.gmra.mxu0 %v1049_v55 }
  0xdc   : > { %v1608_v17 = vmul.f32 %v1580_v14, %v4558_v38  ;;  %v1609_v19 = vmul.f32 %v1582_v16, %v4565_v46  ;;  %v1292_v21 = vpop.permute.xlu1 %1291  ;;  %v1288_v22 = vpop.permute.xlu0 %1287  ;;  %3936 = vmatpush3.bf16.msra.mxu0 %v4174_v53  ;;  %3883 = vmatprep.mubr.msk.bf16.mxu0 %vm4217_vm0, %v4216_v5  ;;  %v1642_v43 = vshrl.u32 %v1617_v12, 16  ;;  %v1645_v44 = vshll.u32 %v1617_v12, 16  ;;  %v4180_v14 = vld [vmem:[%s5624_s1 + $0x148] sm:$0xff]  }
  0xdd   : > { %v1310_v29 = vrot.slane %v1292_v21, 6  ;;  %v1308_v30 = vrot.slane %v1288_v22, 6  ;;  %3966 = vmatpush3.bf16.msra.mxu1 %v4175_v8  ;;  %3937 = vmatprep.subr.bf16.mxu0 %v4216_v5  ;;  %v1511_v12 = vunpack.c.l.bf16 %v1510_v2 }
  0xde   : > { %v1618_v37 = vpack.c.bf16 %v1609_v19, %v1608_v17  ;;  %3967 = vmatprep.subr.bf16.mxu1 %v4216_v5  ;;  %v1644_v4 = vrot.slane %v1642_v43, 1  ;;  %v1647_v42 = vrot.slane %v1645_v44, 2 }
  0xdf   : > { %v1309_v45 = vsel %vm969_vm3, %v1306_v31, %v1308_v30  ;;  %v1311_v32 = vsel %vm969_vm3, %v1308_v30, %v1310_v29  ;;  %3912 = vmatmul.mubr.bf16.gmra.mxu1 %v1369_v39  ;;  %v1333_v23 = vmul.f32 %v1310_v29, %v1242_v28 }
  0xe0   : > { %v1650_v50 = vshrl.u32 %v1618_v37, 16  ;;  %v1653_v51 = vshll.u32 %v1618_v37, 16  ;;  %v1331_v10 = vmul.f32 %v1309_v45, %v4645_v60  ;;  %v1332_v25 = vmul.f32 %v1311_v32, %v4973_v24  ;;  %v4994_v1 = vpop.permute.xlu1 %1552  ;;  %v4996_v48 = vpop.permute.xlu0 %1547  ;;  %3915 = vmatprep.mubr.msk.bf16.mxu1 %vm4217_vm0, %v4216_v5  ;;  %3938 = vmatpush3.bf16.msra.mxu0 %v4176_v15  ;;  %v5047_v45 = vld [vmem:[%s5626_s3] ss:$0 sm:$0xff] }
  0xe1   : > { %v1585_v31 = vrot.slane %v4994_v1, 5  ;;  %v1583_v35 = vrot.slane %v4996_v48, 5  ;;  %3968 = vmatpush3.bf16.msra.mxu1 %v4177_v33  ;;  %3995 = vmatprep.subr.bf16.mxu0 %v4216_v5  ;;  %v1339_v11 = vpack.c.bf16 %v1333_v23, %v1333_v23  ;;  %v1834_v15 = vmax.f32 %v1833_v54, 0.0 }
  0xe2   : > { %v1652_v61 = vrot.slane %v1650_v50, 1  ;;  %v1655_v56 = vrot.slane %v1653_v51, 2  ;;  %v1338_v62 = vpack.c.bf16 %v1332_v25, %v1331_v10  ;;  %3969 = vmatprep.subr.bf16.mxu1 %v4216_v5  ;;  %v1648_v28 = vor.u32 %v1647_v42, %v1644_v4  ;;  %v4182_v50 = vld [vmem:[%s5624_s1 + $0x140] sm:$0xff]  }
  0xe3   : > { %v1584_v18 = vsel %vm1575_vm5, %v1581_v63, %v1583_v35  ;;  %v1586_v53 = vsel %vm1575_vm5, %v1583_v35, %v1585_v31  ;;  %3884 = vmatmul.mubr.bf16.gmra.mxu0 %v1051_v40  ;;  %v1372_v39 = vrot.slane %v1339_v11, 1  ;;  %v1512_v32 = vmul.f32 %v5047_v45, %v1511_v12 }
  0xe4   : > { %v1610_v59 = vmul.f32 %v1584_v18, %v4567_v47  ;;  %v1611_v20 = vmul.f32 %v1586_v53, %v4596_v13  ;;  %v5017_v8 = vpop.permute.xlu1 %1562  ;;  %v5019_v52 = vpop.permute.xlu0 %1557  ;;  %v1370_v9 = vrot.slane %v1338_v62, 1  ;;  %3939 = vmatprep.mubr.msk.bf16.mxu0 %vm4217_vm0, %v4216_v5  ;;  %v5030_v19 = vor.u32 %v1655_v56, %v1652_v61  ;;  %v4181_v56 = vld [vmem:[%s5624_s1 + $0x1b0] sm:$0xff]  }
  0xe5   : > { %v1589_v55 = vrot.slane %v5017_v8, 5  ;;  %v1587_v63 = vrot.slane %v5019_v52, 5  ;;  %3970 = vmatpush3.bf16.msra.mxu1 %v4179_v58 }
  0xe6   : > { %v1619_v16 = vpack.c.bf16 %v1611_v20, %v1610_v59  ;;  %v1371_v17 = vsel %vm1040_vm4, %v4964_v3, %v1370_v9  ;;  %3971 = vmatprep.subr.bf16.mxu1 %v4216_v5  ;;  %v1657_v10 = vsel %vm1640_vm6, %v1648_v28, %v5030_v19  ;;  %v1373_v4 = vsel %vm1040_vm4, %v1370_v9, %v1372_v39  ;;  %v2104_v59 = vld [vmem:[%s4505_s21 + $0x8] sm:$0xc] }
  0xe7   : > { %v1588_v21 = vsel %vm1575_vm5, %v1585_v31, %v1587_v63  ;;  %v1590_v22 = vsel %vm1575_vm5, %v1587_v63, %v1589_v55  ;;  %3916 = vmatmul.mubr.bf16.gmra.mxu1 %v1371_v17  ;;  %v4183_v17 = vld [vmem:[%s5624_s1 + $0x1a8] sm:$0xff]  }
  0xe8   : > { %v1612_v29 = vmul.f32 %v1588_v21, %v4605_v27  ;;  %v1613_v30 = vmul.f32 %v1590_v22, %v4641_v57  ;;  %v1852_v33 = vpop.permute.xlu1 %1851  ;;  %v1848_v3 = vpop.permute.xlu0 %1847  ;;  %3919 = vmatprep.mubr.msk.bf16.mxu1 %vm4217_vm0, %v4216_v5  ;;  %v1659_v36 = vshrl.u32 %v1619_v16, 16  ;;  %v1662_v37 = vshll.u32 %v1619_v16, 16 }
  0xe9   : > { %v1887_v43 = vrot.slane %v1852_v33, 4  ;;  %v1886_v44 = vrot.slane %v1848_v3, 4  ;;  %3972 = vmatpush3.bf16.msra.mxu1 %v4180_v14  ;;  %v3658_v33 = vld [vmem:[%s4505_s21 + $0x10] sm:$0xff]  }
  0xea   : > { %v1620_v51 = vpack.c.bf16 %v1613_v30, %v1612_v29  ;;  %v1661_v25 = vrot.slane %v1659_v36, 1  ;;  %v1664_v23 = vrot.slane %v1662_v37, 2  ;;  %3973 = vmatprep.subr.bf16.mxu1 %v4216_v5  ;;  %v2116_v36 = vunpack.c.l.bf16 %v4880_v0  ;;  %v4185_v0 = vld [vmem:[%s5624_s1 + $0x1f8] sm:$0xff]  }
  0xeb   : > { %v1888_v31 = vsel %vm1885_vm7, %v1886_v44, %v1887_v43  ;;  %3940 = vmatmul.mubr.bf16.vlgmr.msra.gmra.mxu0 %v1657_v10  ;;  %v1916_v35 = vmul.f32 %v1886_v44, %v1834_v15 }
  0xec   : > { %v1917_v54 = vmul.f32 %v1888_v31, %v4562_v41  ;;  %3996 = vmatpush3.bf16.msra.mxu0 %v4178_v34  ;;  %v5058_v58 = vpop.permute.xlu1 %1859  ;;  %v1856_v61 = vpop.permute.xlu0 %1855  ;;  %3943 = vmatprep.mubr.msk.bf16.mxu0 %vm4217_vm0, %v4216_v5  ;;  %v5070_v41 = vld [vmem:[%s5627_s4] ss:$0 sm:$0xff]  ;;  %v5076_v42 = vor.u32 %v1664_v23, %v1661_v25  ;;  %v1668_v18 = vshrl.u32 %v1620_v51, 16  ;;  %v1671_v53 = vshll.u32 %v1620_v51, 16 }
  0xed   : > { %v1891_v40 = vrot.slane %v5058_v58, 4  ;;  %v1889_v62 = vrot.slane %v1856_v61, 4  ;;  %3997 = vmatprep.subr.bf16.mxu0 %v4216_v5  ;;  %v5073_v2 = vadd.f32 %v5070_v41, %v1512_v32  ;;  %3974 = vmatpush3.bf16.msra.mxu1 %v4182_v50  ;;  %v3632_v25 = vunpack.c.l.bf16 %v3658_v33 }
  0xee   : > { %4031 = vmatprep.subr.bf16.mxu1 %v4216_v5  ;;  %v1927_v63 = vpack.c.bf16 %v1917_v54, %v1916_v35  ;;  %v1666_v28 = vsel %vm1640_vm6, %v5030_v19, %v5076_v42  ;;  %v1670_v29 = vrot.slane %v1668_v18, 1  ;;  %v1673_v30 = vrot.slane %v1671_v53, 2 }
  0xef   : > { %v1890_v20 = vsel %vm1885_vm7, %v1887_v43, %v1889_v62  ;;  %v1892_v11 = vsel %vm1885_vm7, %v1889_v62, %v1891_v40  ;;  %3920 = vmatmul.mubr.bf16.gmra.mxu1 %v1373_v4  ;;  %v1514_v21 = vmax.f32 %v5073_v2, 0.0  ;;  %v3633_v62 = vunpack.c.h.bf16 %v3658_v33 }
  0xf0   : > { %v1918_v12 = vmul.f32 %v1890_v20, %v4558_v38  ;;  %v1919_v14 = vmul.f32 %v1892_v11, %v4565_v46  ;;  %v5084_v16 = vpop.permute.xlu1 %1572  ;;  %v5086_v9 = vpop.permute.xlu0 %1567  ;;  %3998 = vmatpush3.bf16.msra.mxu0 %v4181_v56  ;;  %3975 = vmatprep.mubr.msk.bf16.mxu1 %vm4217_vm0, %v4216_v5  ;;  %v2115_v46 = vunpack.c.l.bf16 %v2104_v59  ;;  %v1957_v37 = vrot.slane %v1927_v63, 2  ;;  %v4186_v20 = vld [vmem:[%s5624_s1 + $0x198] sm:$0xff]  }
  0xf1   : > { %v1593_v22 = vrot.slane %v5084_v16, 5  ;;  %v1591_v38 = vrot.slane %v5086_v9, 5  ;;  %3999 = vmatprep.subr.bf16.mxu0 %v4216_v5  ;;  %v5123_v35 = vor.u32 %v1673_v30, %v1670_v29  ;;  %v2127_v56 = vmul.f32 %v5047_v45, %v2116_v36 }
  0xf2   : > { %v1928_v15 = vpack.c.bf16 %v1919_v14, %v1918_v12  ;;  %v2126_v54 = vmul.f32 %v5047_v45, %v2115_v46  ;;  %v3659_v12 = vld [vmem:[%s4505_s21 + $0x18] sm:$0xff]   ;;  %v2129_v30 = vmul.f32 %v5047_v45, %v3633_v62 }
  0xf3   : > { %v1592_v3 = vsel %vm1575_vm5, %v1589_v55, %v1591_v38  ;;  %v1594_v34 = vsel %vm1575_vm5, %v1591_v38, %v1593_v22  ;;  %3944 = vmatmul.mubr.bf16.gmra.mxu0 %v1666_v28  ;;  %v4184_v55 = vld [vmem:[%s5624_s1 + $0x1a0] sm:$0xff]   ;;  %v1616_v50 = vmul.f32 %v1593_v22, %v1514_v21  ;;  %v1675_v22 = vsel %vm1640_vm6, %v5076_v42, %v5123_v35 }
  0xf4   : > { %v5106_v39 = vrot.slane %v1928_v15, 2  ;;  %v1614_v43 = vmul.f32 %v1592_v3, %v4645_v60  ;;  %v1615_v19 = vmul.f32 %v1594_v34, %v4973_v24  ;;  %v1868_v44 = vpop.permute.xlu1 %1867  ;;  %v1864_v32 = vpop.permute.xlu0 %1863  ;;  %4000 = vmatpush3.bf16.msra.mxu0 %v4183_v17  ;;  %3947 = vmatprep.mubr.msk.bf16.mxu0 %vm4217_vm0, %v4216_v5  ;;  %v3636_v33 = vunpack.c.l.bf16 %v3659_v12 }
  0xf5   : > { %v1895_v51 = vrot.slane %v1868_v44, 4  ;;  %v1893_v10 = vrot.slane %v1864_v32, 4  ;;  %4001 = vmatprep.subr.bf16.mxu0 %v4216_v5  ;;  %v1622_v14 = vpack.c.bf16 %v1616_v50, %v1616_v50  ;;  %v3637_v44 = vunpack.c.h.bf16 %v3659_v12 }
  0xf6   : > { %v1621_v23 = vpack.c.bf16 %v1615_v19, %v1614_v43  ;;  %v1959_v31 = vsel %vm1956_vm8, %v1957_v37, %v5106_v39  ;;  %v4188_v43 = vld [vmem:[%s5624_s1 + $0x190] sm:$0xff]   ;;  %v4189_v19 = vld [vmem:[%s5624_s1 + $0x1e8] sm:$0xff]   ;;  %v5169_v50 = vadd.f32 %v5070_v41, %v2126_v54  ;;  %v2130_v62 = vmul.f32 %v5047_v45, %v3636_v33 }
  0xf7   : > { %v1894_v58 = vsel %vm1885_vm7, %v1891_v40, %v1893_v10  ;;  %v1896_v61 = vsel %vm1885_vm7, %v1893_v10, %v1895_v51  ;;  %3976 = vmatmul.mubr.bf16.vlgmr.msra.gmra.mxu1 %v1959_v31  ;;  %v4187_v40 = vld [vmem:[%s5624_s1 + $0x1f0] sm:$0xff]   ;;  %v1686_v32 = vshrl.u32 %v1622_v14, 16  ;;  %v2138_v31 = vadd.f32 %v5070_v41, %v2127_v56 }
  0xf8   : > { %v1920_v4 = vmul.f32 %v1894_v58, %v4567_v47  ;;  %v1921_v18 = vmul.f32 %v1896_v61, %v4596_v13  ;;  %v1876_v53 = vpop.permute.xlu1 %1875  ;;  %v1872_v59 = vpop.permute.xlu0 %1871  ;;  %4002 = vmatpush3.bf16.msra.mxu0 %v4184_v55  ;;  %4032 = vmatpush3.bf16.msra.mxu1 %v4185_v0  ;;  %v1677_v11 = vshrl.u32 %v1621_v23, 16  ;;  %v1680_v63 = vshll.u32 %v1621_v23, 16 }
  0xf9   : > { %v1899_v17 = vrot.slane %v1876_v53, 4  ;;  %v1897_v47 = vrot.slane %v1872_v59, 4  ;;  %3979 = vmatprep.mubr.msk.bf16.mxu1 %vm4217_vm0, %v4216_v5  ;;  %4003 = vmatprep.subr.bf16.mxu0 %v4216_v5  ;;  %v2128_v13 = vmul.f32 %v5047_v45, %v3632_v25  ;;  %v2140_v61 = vadd.f32 %v5070_v41, %v2129_v30  ;;  %v5187_v53 = vld [vmem:[%s4505_s21 + $0x20] sm:$0xff]  }
  0xfa   : > { %v1929_v38 = vpack.c.bf16 %v1921_v18, %v1920_v4  ;;  %4033 = vmatprep.subr.bf16.mxu1 %v4216_v5  ;;  %v1679_v46 = vrot.slane %v1677_v11, 1  ;;  %v1682_v15 = vrot.slane %v1680_v63, 2  ;;  %v2131_v4 = vmul.f32 %v5047_v45, %v3637_v44  ;;  %v4190_v18 = vld [vmem:[%s5624_s1 + $0x188] sm:$0xff]   ;;  %v4191_v11 = vld [vmem:[%s5624_s1 + $0x1e0] sm:$0xff]  }
  0xfb   : > { %v1898_v28 = vsel %vm1885_vm7, %v1895_v51, %v1897_v47  ;;  %v1900_v29 = vsel %vm1885_vm7, %v1897_v47, %v1899_v17  ;;  %3948 = vmatmul.mubr.bf16.gmra.mxu0 %v1675_v22  ;;  %v1688_v59 = vrot.slane %v1686_v32, 1  ;;  %v2148_v47 = vmax.f32 %v5169_v50, 0.0 }
  0xfc   : > { %v1922_v3 = vmul.f32 %v1898_v28, %v4605_v27  ;;  %v1923_v34 = vmul.f32 %v1900_v29, %v4641_v57  ;;  %v5151_v36 = vpop.permute.xlu1 %1883  ;;  %v1880_v42 = vpop.permute.xlu0 %1879  ;;  %v5153_v37 = vrot.slane %v1929_v38, 2  ;;  %4004 = vmatpush3.bf16.msra.mxu0 %v4186_v20  ;;  %4034 = vmatpush3.bf16.msra.mxu1 %v4187_v40  ;;  %v1689_v27 = vshll.u32 %v1622_v14, 16 }
  0xfd   : > { %v1903_v57 = vrot.slane %v5151_v36, 4  ;;  %v1901_v55 = vrot.slane %v1880_v42, 4  ;;  %3951 = vmatprep.mubr.msk.bf16.mxu0 %vm4217_vm0, %v4216_v5  ;;  %4005 = vmatprep.subr.bf16.mxu0 %v4216_v5  ;;  %v5171_v51 = vor.u32 %v1682_v15, %v1679_v46  ;;  %v5205_v22 = vmax.f32 %v2138_v31, 0.0 }
  0xfe   : > { %v1961_v0 = vsel %vm1956_vm8, %v5106_v39, %v5153_v37  ;;  %4035 = vmatprep.subr.bf16.mxu1 %v4216_v5  ;;  %v1930_v10 = vpack.c.bf16 %v1923_v34, %v1922_v3  ;;  %v2139_v39 = vadd.f32 %v5070_v41, %v2128_v13  ;;  %v1691_v56 = vrot.slane %v1689_v27, 2  ;;  %v4193_v3 = vld [vmem:[%s5624_s1 + $0x1d8] sm:$0xff]  }
  0xff   : > { %v1902_v25 = vsel %vm1885_vm7, %v1899_v17, %v1901_v55  ;;  %v1904_v23 = vsel %vm1885_vm7, %v1901_v55, %v1903_v57  ;;  %3980 = vmatmul.mubr.bf16.gmra.mxu1 %v1961_v0  ;;  %v1684_v14 = vsel %vm1640_vm6, %v5123_v35, %v5171_v51  ;;  %v3640_v13 = vunpack.c.l.bf16 %v5187_v53  ;;  %v4192_v35 = vld [vmem:[%s5624_s1 + $0x180] sm:$0xff]  }
 0x100   : > { %v2176_v58 = vpop.permute.xlu1 %2175  ;;  %v2172_v54 = vpop.permute.xlu0 %2171  ;;  %4006 = vmatpush3.bf16.msra.mxu0 %v4188_v43  ;;  %4036 = vmatpush3.bf16.msra.mxu1 %v4189_v19  ;;  %v1924_v63 = vmul.f32 %v1902_v25, %v4645_v60  ;;  %v1925_v12 = vmul.f32 %v1904_v23, %v4973_v24  ;;  %v5200_v17 = vrot.slane %v1930_v10, 2  ;;  %v5207_v60 = vmax.f32 %v2139_v39, 0.0 }
 0x101   : > { %v2210_v20 = vrot.slane %v2176_v58, 4  ;;  %v2209_v40 = vrot.slane %v2172_v54, 4  ;;  %3983 = vmatprep.mubr.msk.bf16.mxu1 %vm4217_vm0, %v4216_v5  ;;  %4007 = vmatprep.subr.bf16.mxu0 %v4216_v5  ;;  %v5209_v24 = vmax.f32 %v2140_v61, 0.0  ;;  %v2141_v15 = vadd.f32 %v5070_v41, %v2130_v62  ;;  %v4195_v61 = vld [vmem:[%s5624_s1 + $0x1d0] sm:$0xff]  }
 0x102   : > { %4037 = vmatprep.subr.bf16.mxu1 %v4216_v5  ;;  %v2142_v33 = vadd.f32 %v5070_v41, %v2131_v4  ;;  %v1963_v34 = vsel %vm1956_vm8, %v5153_v37, %v5200_v17  ;;  %v1692_v42 = vor.u32 %v1691_v56, %v1688_v59  ;;  %v1931_v43 = vpack.c.bf16 %v1925_v12, %v1924_v63  ;;  %v4196_v12 = vld [vmem:[%s5624_s1 + $0x1c8] sm:$0xff]  }
 0x103   : > { %3952 = vmatmul.mubr.bf16.gmra.mxu0 %v1684_v14  ;;  %v2211_v28 = vsel %vm1885_vm7, %v2209_v40, %v2210_v20  ;;  %v3641_v19 = vunpack.c.h.bf16 %v5187_v53  ;;  %v2239_v44 = vmul.f32 %v2209_v40, %v2148_v47  ;;  %v2132_v55 = vmul.f32 %v5047_v45, %v3640_v13  ;;  %v2114_v14 = vld [vmem:[%s4505_s21 + $0x30] sm:$0x3] }
 0x104   : > { %v2184_v38 = vpop.permute.xlu1 %2183  ;;  %v2180_v46 = vpop.permute.xlu0 %2179  ;;  %4008 = vmatpush3.bf16.msra.mxu0 %v4190_v18  ;;  %3955 = vmatprep.mubr.msk.bf16.mxu0 %vm4217_vm0, %v4216_v5  ;;  %v2240_v0 = vmul.f32 %v2211_v28, %v5205_v22  ;;  %v1926_v31 = vmul.f32 %v1903_v57, %v1514_v21  ;;  %v5245_v58 = vmax.f32 %v2141_v15, 0.0  ;;  %v5251_v4 = vmax.f32 %v2142_v33, 0.0  ;;  %v3661_v21 = vld [vmem:[%s4505_s21 + $0x28] sm:$0xff]  }
 0x105   : > { %v2214_v29 = vrot.slane %v2184_v38, 4  ;;  %v2212_v30 = vrot.slane %v2180_v46, 4  ;;  %4038 = vmatpush3.bf16.msra.mxu1 %v4191_v11  ;;  %4009 = vmatprep.subr.bf16.mxu0 %v4216_v5  ;;  %v1693_v2 = vsel %vm1640_vm6, %v5171_v51, %v1692_v42  ;;  %v5255_v36 = vrot.slane %v1931_v43, 2 }
 0x106   : > { %4039 = vmatprep.subr.bf16.mxu1 %v4216_v5  ;;  %v2133_v53 = vmul.f32 %v5047_v45, %v3641_v19  ;;  %v2250_v59 = vpack.c.bf16 %v2240_v0, %v2239_v44  ;;  %v2143_v51 = vadd.f32 %v5070_v41, %v2132_v55  ;;  %v1932_v40 = vpack.c.bf16 %v1926_v31, %v1926_v31 }
 0x107   : > { %v2213_v32 = vsel %vm1885_vm7, %v2210_v20, %v2212_v30  ;;  %v2215_v27 = vsel %vm1885_vm7, %v2212_v30, %v2214_v29  ;;  %3984 = vmatmul.mubr.bf16.gmra.mxu1 %v1963_v34  ;;  %v3644_v13 = vunpack.c.l.bf16 %v3661_v21  ;;  %v3645_v33 = vunpack.c.h.bf16 %v3661_v21 }
 0x108   : > { %v2241_v37 = vmul.f32 %v2213_v32, %v5207_v60  ;;  %v2242_v10 = vmul.f32 %v2215_v27, %v5209_v24  ;;  %v5236_v25 = vpop.permute.xlu1 %2191  ;;  %v2188_v23 = vpop.permute.xlu0 %2187  ;;  %3987 = vmatprep.mubr.msk.bf16.mxu1 %vm4217_vm0, %v4216_v5  ;;  %4010 = vmatpush3.bf16.msra.mxu0 %v4192_v35  ;;  %v1965_v35 = vsel %vm1956_vm8, %v5200_v17, %v5255_v36  ;;  %v5289_v17 = vld [vmem:[%s5624_s1 + $0x238] sm:$0xff]   ;;  %v2125_v50 = vunpack.c.l.bf16 %v2114_v14  ;;  %v4198_v27 = vld [vmem:[%s5624_s1 + $0x1c0] sm:$0xff]   ;;  %v2426_v14 = vld [vmem:[%s4505_s21 + $0x30] sm:$0x7] }
 0x109   : > { %v2218_v39 = vrot.slane %v5236_v25, 4  ;;  %v2216_v54 = vrot.slane %v2188_v23, 4  ;;  %4040 = vmatpush3.bf16.msra.mxu1 %v4193_v3  ;;  %4067 = vmatprep.subr.bf16.mxu0 %v4216_v5  ;;  %v2144_v30 = vadd.f32 %v5070_v41, %v2133_v53  ;;  %v2279_v3 = vrot.slane %v2250_v59, 2  ;;  %v5316_v59 = vld [vmem:[%s5624_s1 + $0x230] sm:$0xff]   ;;  %v5342_v25 = vld [vmem:[%s5624_s1 + $0x228] sm:$0xff]  }
 0x10a   : > { %v2251_v62 = vpack.c.bf16 %v2242_v10, %v2241_v37  ;;  %4041 = vmatprep.subr.bf16.mxu1 %v4216_v5  ;;  %v5294_v44 = vmax.f32 %v2143_v51, 0.0  ;;  %v2134_v32 = vmul.f32 %v5047_v45, %v3644_v13  ;;  %v1966_v55 = vrot.slane %v1932_v40, 2 }
 0x10b   : > { %v2217_v57 = vsel %vm1885_vm7, %v2214_v29, %v2216_v54  ;;  %v2219_v18 = vsel %vm1885_vm7, %v2216_v54, %v2218_v39  ;;  %3956 = vmatmul.mubr.bf16.gmra.mxu0 %v1693_v2  ;;  %v5305_v54 = vmax.f32 %v2144_v30, 0.0  ;;  %v2136_v51 = vmul.f32 %v5047_v45, %v2125_v50 }
 0x10c   : > { %v2448_v56 = vpop.permute.xlu1 %2447  ;;  %v2444_v20 = vpop.permute.xlu0 %2443  ;;  %4011 = vmatprep.mubr.msk.bf16.mxu0 %vm4217_vm0, %v4216_v5  ;;  %v5271_v38 = vrot.slane %v2251_v62, 2  ;;  %v2243_v46 = vmul.f32 %v2217_v57, %v5245_v58  ;;  %v2244_v15 = vmul.f32 %v2219_v18, %v5251_v4 }
 0x10d   : > { %v2483_v11 = vrot.slane %v2448_v56, 3  ;;  %v2482_v63 = vrot.slane %v2444_v20, 3  ;;  %4042 = vmatpush3.bf16.msra.mxu1 %v4195_v61  ;;  %v2135_v61 = vmul.f32 %v5047_v45, %v3645_v33 }
 0x10e   : > { %4043 = vmatprep.subr.bf16.mxu1 %v4216_v5  ;;  %v2281_v37 = vsel %vm1956_vm8, %v2279_v3, %v5271_v38  ;;  %v2252_v10 = vpack.c.bf16 %v2244_v15, %v2243_v46 }
 0x10f   : > { %v2484_v28 = vsel %vm2481_vm9, %v2482_v63, %v2483_v11  ;;  %v2512_v29 = vmul.f32 %v2482_v63, %v2148_v47  ;;  %3988 = vmatmul.mubr.bf16.gmra.mxu1 %v1965_v35  ;;  %v2146_v3 = vadd.f32 %v5070_v41, %v2135_v61 }
 0x110   : > { %v2513_v34 = vmul.f32 %v2484_v28, %v5205_v22  ;;  %v5284_v42 = vpop.permute.xlu1 %2455  ;;  %v2452_v43 = vpop.permute.xlu0 %2451  ;;  %3991 = vmatprep.mubr.msk.bf16.mxu1 %vm4217_vm0, %v4216_v5  ;;  %v5325_v63 = vrot.slane %v2252_v10, 2 }
 0x111   : > { %v2487_v47 = vrot.slane %v5284_v42, 3  ;;  %v2485_v19 = vrot.slane %v2452_v43, 3  ;;  %4044 = vmatpush3.bf16.msra.mxu1 %v4196_v12  ;;  %v2145_v12 = vadd.f32 %v5070_v41, %v2134_v32  ;;  %v2427_v43 = vunpack.c.l.bf16 %v2426_v14 }
 0x112   : > { %v2523_v0 = vpack.c.bf16 %v2513_v34, %v2512_v29  ;;  %4045 = vmatprep.subr.bf16.mxu1 %v4216_v5  ;;  %v2283_v32 = vsel %vm1956_vm8, %v5271_v38, %v5325_v63 }
 0x113   : > { %v2486_v23 = vsel %vm2481_vm9, %v2483_v11, %v2485_v19  ;;  %v2488_v31 = vsel %vm2481_vm9, %v2485_v19, %v2487_v47  ;;  %4012 = vmatmul.mubr.bf16.vlgmr.msra.gmra.mxu0 %v2281_v37  ;;  %v1967_v11 = vsel %vm1956_vm8, %v5255_v36, %v1966_v55 }
 0x114   : > { %v2548_v62 = vshrl.u32 %v2523_v0, 16  ;;  %v2551_v2 = vshll.u32 %v2523_v0, 16  ;;  %v2514_v21 = vmul.f32 %v2486_v23, %v5207_v60  ;;  %v2515_v57 = vmul.f32 %v2488_v31, %v5209_v24  ;;  %4068 = vmatpush3.bf16.msra.mxu0 %v5289_v17  ;;  %v5311_v18 = vpop.permute.xlu1 %2199  ;;  %v2196_v53 = vpop.permute.xlu0 %2195  ;;  %4015 = vmatprep.mubr.msk.bf16.mxu0 %vm4217_vm0, %v4216_v5 }
 0x115   : > { %v2222_v56 = vrot.slane %v5311_v18, 4  ;;  %v2220_v20 = vrot.slane %v2196_v53, 4  ;;  %4069 = vmatprep.subr.bf16.mxu0 %v4216_v5  ;;  %4046 = vmatpush3.bf16.msra.mxu1 %v4198_v27  ;;  %v5352_v27 = vmax.f32 %v2145_v12, 0.0 }
 0x116   : > { %v2524_v40 = vpack.c.bf16 %v2515_v57, %v2514_v21  ;;  %4103 = vmatprep.subr.bf16.mxu1 %v4216_v5  ;;  %v2550_v13 = vrot.slane %v2548_v62, 2  ;;  %v2553_v46 = vrot.slane %v2551_v2, 3  ;;  %v5358_v2 = vmax.f32 %v2146_v3, 0.0  ;;  %v2736_v21 = vld [vmem:[%s4505_s21 + $0x8] sm:$0x8] }
 0x117   : > { %v2221_v15 = vsel %vm1885_vm7, %v2218_v39, %v2220_v20  ;;  %v2223_v35 = vsel %vm1885_vm7, %v2220_v20, %v2222_v56  ;;  %3992 = vmatmul.mubr.bf16.gmra.mxu1 %v1967_v11  ;;  %v2147_v57 = vadd.f32 %v5070_v41, %v2136_v51  ;;  %v2428_v20 = vmul.f32 %v5047_v45, %v2427_v43 }
 0x118   : > { %v2556_v28 = vshrl.u32 %v2524_v40, 16  ;;  %v2559_v29 = vshll.u32 %v2524_v40, 16  ;;  %v2245_v36 = vmul.f32 %v2221_v15, %v5294_v44  ;;  %v5335_v30 = vpop.permute.xlu1 %2463  ;;  %v2460_v33 = vpop.permute.xlu0 %2459  ;;  %4070 = vmatpush3.bf16.msra.mxu0 %v5316_v59  ;;  %4047 = vmatprep.mubr.msk.bf16.mxu1 %vm4217_vm0, %v4216_v5  ;;  %v2246_v39 = vmul.f32 %v2223_v35, %v5305_v54 }
 0x119   : > { %v2491_v34 = vrot.slane %v5335_v30, 3  ;;  %v2489_v42 = vrot.slane %v2460_v33, 3  ;;  %4071 = vmatprep.subr.bf16.mxu0 %v4216_v5  ;;  %v2554_v55 = vor.u32 %v2553_v46, %v2550_v13  ;;  %v2737_v46 = vunpack.c.l.bf16 %v2736_v21 }
 0x11a   : > { %v2558_v50 = vrot.slane %v2556_v28, 2  ;;  %v2561_v19 = vrot.slane %v2559_v29, 3  ;;  %v2253_v10 = vpack.c.bf16 %v2246_v39, %v2245_v36  ;;  %v2158_v30 = vmax.f32 %v2147_v57, 0.0 }
 0x11b   : > { %v2490_v0 = vsel %vm2481_vm9, %v2487_v47, %v2489_v42  ;;  %v2492_v37 = vsel %vm2481_vm9, %v2489_v42, %v2491_v34  ;;  %4016 = vmatmul.mubr.bf16.gmra.mxu0 %v2283_v32  ;;  %v5366_v47 = vld [vmem:[%s5624_s1 + $0x220] sm:$0xff]   ;;  %v5387_v39 = vadd.f32 %v5070_v41, %v2428_v20 }
 0x11c   : > { %v2516_v23 = vmul.f32 %v2490_v0, %v5245_v58  ;;  %v2517_v31 = vmul.f32 %v2492_v37, %v5251_v4  ;;  %v2208_v61 = vpop.permute.xlu1 %2207  ;;  %v2204_v62 = vpop.permute.xlu0 %2203  ;;  %4072 = vmatpush3.bf16.msra.mxu0 %v5342_v25  ;;  %v2562_v38 = vor.u32 %v2561_v19, %v2558_v50  ;;  %4019 = vmatprep.mubr.msk.bf16.mxu0 %vm4217_vm0, %v4216_v5  ;;  %v5373_v12 = vrot.slane %v2253_v10, 2 }
 0x11d   : > { %v2226_v18 = vrot.slane %v2208_v61, 4  ;;  %v2224_v53 = vrot.slane %v2204_v62, 4  ;;  %4073 = vmatprep.subr.bf16.mxu0 %v4216_v5  ;;  %v2430_v61 = vmax.f32 %v5387_v39, 0.0 }
 0x11e   : > { %v2525_v40 = vpack.c.bf16 %v2517_v31, %v2516_v23  ;;  %v2563_v11 = vsel %vm2546_vm10, %v2554_v55, %v2562_v38  ;;  %v2738_v55 = vmul.f32 %v5047_v45, %v2737_v46 }
 0x11f   : > { %v2225_v14 = vsel %vm1885_vm7, %v2222_v56, %v2224_v53  ;;  %v2227_v13 = vsel %vm1885_vm7, %v2224_v53, %v2226_v18  ;;  %4048 = vmatmul.mubr.bf16.vlgmr.msra.gmra.mxu1 %v2563_v11  ;;  %v5384_v56 = vld [vmem:[%s5624_s1 + $0x218] sm:$0xff]  }
 0x120   : > { %v2247_v15 = vmul.f32 %v2225_v14, %v5352_v27  ;;  %v2248_v51 = vmul.f32 %v2227_v13, %v5358_v2  ;;  %v2472_v35 = vpop.permute.xlu1 %2471  ;;  %v2468_v28 = vpop.permute.xlu0 %2467  ;;  %4074 = vmatpush3.bf16.msra.mxu0 %v5366_v47  ;;  %4111 = vmatpush3.bf16.msra.mxu1 %v5289_v17  ;;  %v2565_v29 = vshrl.u32 %v2525_v40, 16  ;;  %v2568_v36 = vshll.u32 %v2525_v40, 16 }
 0x121   : > { %v2495_v33 = vrot.slane %v2472_v35, 3  ;;  %v2493_v3 = vrot.slane %v2468_v28, 3  ;;  %4051 = vmatprep.mubr.msk.bf16.mxu1 %vm4217_vm0, %v4216_v5  ;;  %4075 = vmatprep.subr.bf16.mxu0 %v4216_v5  ;;  %v2285_v17 = vsel %vm1956_vm8, %v5325_v63, %v5373_v12  ;;  %v5406_v63 = vld [vmem:[%s5624_s1 + $0x210] sm:$0xff]   ;;  %v2739_v20 = vadd.f32 %v5070_v41, %v2738_v55 }
 0x122   : > { %v2567_v42 = vrot.slane %v2565_v29, 2  ;;  %v2570_v43 = vrot.slane %v2568_v36, 3  ;;  %4104 = vmatprep.subr.bf16.mxu1 %v4216_v5  ;;  %v2254_v50 = vpack.c.bf16 %v2248_v51, %v2247_v15  ;;  %v5426_v15 = vld [vmem:[%s5624_s1 + $0x208] sm:$0xff]  }
 0x123   : > { %v2494_v19 = vsel %vm2481_vm9, %v2491_v34, %v2493_v3  ;;  %v2496_v32 = vsel %vm2481_vm9, %v2493_v3, %v2495_v33  ;;  %4020 = vmatmul.mubr.bf16.gmra.mxu0 %v2285_v17  ;;  %v2249_v34 = vmul.f32 %v2226_v18, %v2158_v30 }
 0x124   : > { %v2518_v0 = vmul.f32 %v2494_v19, %v5294_v44  ;;  %v2519_v37 = vmul.f32 %v2496_v32, %v5305_v54  ;;  %v2480_v10 = vpop.permute.xlu1 %2479  ;;  %v2476_v23 = vpop.permute.xlu0 %2475  ;;  %v2571_v31 = vor.u32 %v2570_v43, %v2567_v42  ;;  %4076 = vmatpush3.bf16.msra.mxu0 %v5384_v56  ;;  %4112 = vmatpush3.bf16.msra.mxu1 %v5316_v59  ;;  %v5413_v53 = vrot.slane %v2254_v50, 2  ;;  %v5443_v43 = vld [vmem:[%s5624_s1 + $0x200] sm:$0xff]  }
 0x125   : > { %v2499_v45 = vrot.slane %v2480_v10, 3  ;;  %v2497_v62 = vrot.slane %v2476_v23, 3  ;;  %4023 = vmatprep.mubr.msk.bf16.mxu0 %vm4217_vm0, %v4216_v5  ;;  %4077 = vmatprep.subr.bf16.mxu0 %v4216_v5  ;;  %v2255_v51 = vpack.c.bf16 %v2249_v34, %v2249_v34 }
 0x126   : > { %v2526_v21 = vpack.c.bf16 %v2519_v37, %v2518_v0  ;;  %v2572_v57 = vsel %vm2546_vm10, %v2562_v38, %v2571_v31  ;;  %4105 = vmatprep.subr.bf16.mxu1 %v4216_v5 }
 0x127   : > { %v2498_v59 = vsel %vm2481_vm9, %v2495_v33, %v2497_v62  ;;  %v2500_v18 = vsel %vm2481_vm9, %v2497_v62, %v2499_v45  ;;  %4052 = vmatmul.mubr.bf16.gmra.mxu1 %v2572_v57  ;;  %v2522_v41 = vmul.f32 %v2499_v45, %v2430_v61  ;;  %v2740_v33 = vmax.f32 %v2739_v20, 0.0 }
 0x128   : > { %v2520_v40 = vmul.f32 %v2498_v59, %v5352_v27  ;;  %v2521_v11 = vmul.f32 %v2500_v18, %v5358_v2  ;;  %v2758_v14 = vpop.permute.xlu1 %2757  ;;  %v2754_v13 = vpop.permute.xlu0 %2753  ;;  %4078 = vmatpush3.bf16.msra.mxu0 %v5406_v63  ;;  %4113 = vmatpush3.bf16.msra.mxu1 %v5342_v25  ;;  %v2574_v38 = vshrl.u32 %v2526_v21, 16  ;;  %v2577_v46 = vshll.u32 %v2526_v21, 16 }
 0x129   : > { %v2793_v35 = vrot.slane %v2758_v14, 2  ;;  %v2792_v28 = vrot.slane %v2754_v13, 2  ;;  %4055 = vmatprep.mubr.msk.bf16.mxu1 %vm4217_vm0, %v4216_v5  ;;  %4079 = vmatprep.subr.bf16.mxu0 %v4216_v5  ;;  %v2287_v25 = vsel %vm1956_vm8, %v5373_v12, %v5413_v53  ;;  %v2528_v19 = vpack.c.bf16 %v2522_v41, %v2522_v41 }
 0x12a   : > { %v2527_v29 = vpack.c.bf16 %v2521_v11, %v2520_v40  ;;  %v2576_v36 = vrot.slane %v2574_v38, 2  ;;  %v2579_v30 = vrot.slane %v2577_v46, 3  ;;  %4106 = vmatprep.subr.bf16.mxu1 %v4216_v5  ;;  %v2288_v37 = vrot.slane %v2255_v51, 2 }
 0x12b   : > { %4024 = vmatmul.mubr.bf16.gmra.mxu0 %v2287_v25  ;;  %v2794_v32 = vsel %vm1956_vm8, %v2792_v28, %v2793_v35  ;;  %v2822_v45 = vmul.f32 %v2792_v28, %v2740_v33  ;;  %v2595_v40 = vshll.u32 %v2528_v19, 16 }
 0x12c   : > { %v2766_v3 = vpop.permute.xlu1 %2765  ;;  %v2762_v17 = vpop.permute.xlu0 %2761  ;;  %v2580_v42 = vor.u32 %v2579_v30, %v2576_v36  ;;  %4080 = vmatpush3.bf16.msra.mxu0 %v5426_v15  ;;  %4027 = vmatprep.mubr.msk.bf16.mxu0 %vm4217_vm0, %v4216_v5  ;;  %v2583_v12 = vshrl.u32 %v2527_v29, 16  ;;  %v2586_v50 = vshll.u32 %v2527_v29, 16  ;;  %v2823_v57 = vmul.f32 %v2794_v32, %v5205_v22 }
 0x12d   : > { %v2797_v55 = vrot.slane %v2766_v3, 2  ;;  %v2795_v0 = vrot.slane %v2762_v17, 2  ;;  %4114 = vmatpush3.bf16.msra.mxu1 %v5366_v47  ;;  %4081 = vmatprep.subr.bf16.mxu0 %v4216_v5  ;;  %v2289_v22 = vsel %vm1956_vm8, %v5413_v53, %v2288_v37 }
 0x12e   : > { %v2581_v10 = vsel %vm2546_vm10, %v2571_v31, %v2580_v42  ;;  %4107 = vmatprep.subr.bf16.mxu1 %v4216_v5  ;;  %v2585_v23 = vrot.slane %v2583_v12, 2  ;;  %v2588_v34 = vrot.slane %v2586_v50, 3  ;;  %v2592_v31 = vshrl.u32 %v2528_v19, 16 }
 0x12f   : > { %v2796_v62 = vsel %vm1956_vm8, %v2793_v35, %v2795_v0  ;;  %v2798_v21 = vsel %vm1956_vm8, %v2795_v0, %v2797_v55  ;;  %4056 = vmatmul.mubr.bf16.gmra.mxu1 %v2581_v10  ;;  %v2833_v46 = vpack.c.bf16 %v2823_v57, %v2822_v45 }
 0x130   : > { %v2824_v59 = vmul.f32 %v2796_v62, %v5207_v60  ;;  %v2825_v47 = vmul.f32 %v2798_v21, %v5209_v24  ;;  %v2774_v18 = vpop.permute.xlu1 %2773  ;;  %v2770_v20 = vpop.permute.xlu0 %2769  ;;  %4059 = vmatprep.mubr.msk.bf16.mxu1 %vm4217_vm0, %v4216_v5  ;;  %4082 = vmatpush3.bf16.msra.mxu0 %v5443_v43  ;;  %v2589_v60 = vor.u32 %v2588_v34, %v2585_v23  ;;  %v2594_v35 = vrot.slane %v2592_v31, 2 }
 0x131   : > { %v2801_v11 = vrot.slane %v2774_v18, 2  ;;  %v2799_v14 = vrot.slane %v2770_v20, 2  ;;  %4115 = vmatpush3.bf16.msra.mxu1 %v5384_v56  ;;  %v2597_v56 = vrot.slane %v2595_v40, 3  ;;  %v2863_v33 = vrot.slane %v2833_v46, 3 }
 0x132   : > { %v2834_v13 = vpack.c.bf16 %v2825_v47, %v2824_v59  ;;  %4108 = vmatprep.subr.bf16.mxu1 %v4216_v5  ;;  %v2590_v30 = vsel %vm2546_vm10, %v2580_v42, %v2589_v60 }
 0x133   : > { %v2800_v24 = vsel %vm1956_vm8, %v2797_v55, %v2799_v14  ;;  %v2802_v38 = vsel %vm1956_vm8, %v2799_v14, %v2801_v11  ;;  %4028 = vmatmul.mubr.bf16.gmra.mxu0 %v2289_v22 }
 0x134   : > { %v2782_v51 = vpop.permute.xlu1 %2781  ;;  %v2778_v41 = vpop.permute.xlu0 %2777  ;;  %4083 = vmatprep.mubr.msk.bf16.mxu0 %vm4217_vm0, %v4216_v5  ;;  %v2864_v53 = vrot.slane %v2834_v13, 3  ;;  %v2826_v25 = vmul.f32 %v2800_v24, %v5245_v58  ;;  %v2827_v36 = vmul.f32 %v2802_v38, %v5251_v4  ;;  %v2598_v4 = vor.u32 %v2597_v56, %v2594_v35 }
 0x135   : > { %v2805_v28 = vrot.slane %v2782_v51, 2  ;;  %v2803_v29 = vrot.slane %v2778_v41, 2  ;;  %4116 = vmatpush3.bf16.msra.mxu1 %v5406_v63 }
 0x136   : > { %4109 = vmatprep.subr.bf16.mxu1 %v4216_v5  ;;  %v2865_v58 = vsel %vm2481_vm9, %v2863_v33, %v2864_v53  ;;  %v2835_v42 = vpack.c.bf16 %v2827_v36, %v2826_v25  ;;  %v2599_v34 = vsel %vm2546_vm10, %v2589_v60, %v2598_v4 }
 0x137   : > { %4060 = vmatmul.mubr.bf16.gmra.mxu1 %v2590_v30  ;;  %v2804_v12 = vsel %vm1956_vm8, %v2801_v11, %v2803_v29  ;;  %v2806_v63 = vsel %vm1956_vm8, %v2803_v29, %v2805_v28 }
 0x138   : > { %v2790_v3 = vpop.permute.xlu1 %2789  ;;  %v2786_v17 = vpop.permute.xlu0 %2785  ;;  %4063 = vmatprep.mubr.msk.bf16.mxu1 %vm4217_vm0, %v4216_v5  ;;  %v2828_v0 = vmul.f32 %v2804_v12, %v5294_v44  ;;  %v2829_v37 = vmul.f32 %v2806_v63, %v5305_v54  ;;  %v2866_v45 = vrot.slane %v2835_v42, 3 }
 0x139   : > { %v2809_v50 = vrot.slane %v2790_v3, 2  ;;  %v2807_v19 = vrot.slane %v2786_v17, 2  ;;  %4117 = vmatpush3.bf16.msra.mxu1 %v5426_v15 }
 0x13a   : > { %4110 = vmatprep.subr.bf16.mxu1 %v4216_v5  ;;  %v2836_v62 = vpack.c.bf16 %v2829_v37, %v2828_v0 }
 0x13b   : > { %v2808_v32 = vsel %vm1956_vm8, %v2805_v28, %v2807_v19  ;;  %v2810_v55 = vsel %vm1956_vm8, %v2807_v19, %v2809_v50  ;;  %4084 = vmatmul.mubr.bf16.vlgmr.msra.gmra.mxu0 %v2865_v58  ;;  %v2832_v44 = vmul.f32 %v2809_v50, %v2430_v61 }
 0x13c   : > { %v2830_v10 = vmul.f32 %v2808_v32, %v5352_v27  ;;  %v2831_v23 = vmul.f32 %v2810_v55, %v5358_v2  ;;  %4087 = vmatprep.mubr.msk.bf16.mxu0 %vm4217_vm0, %v4216_v5  ;;  %v2867_v27 = vsel %vm2481_vm9, %v2864_v53, %v2866_v45  ;;  %v2868_v2 = vrot.slane %v2836_v62, 3 }
 0x13d   : > { %4118 = vmatpush3.bf16.msra.mxu1 %v5443_v43  ;;  %v2838_v43 = vpack.c.bf16 %v2832_v44, %v2832_v44 }
 0x13e   : > { %v2837_v15 = vpack.c.bf16 %v2831_v23, %v2830_v10  ;;  %v2869_v59 = vsel %vm2481_vm9, %v2866_v45, %v2868_v2 }
 0x13f   : > { %4064 = vmatmul.mubr.bf16.gmra.mxu1 %v2599_v34  ;;  %v2872_v57 = vrot.slane %v2838_v43, 3 }
 0x140   : > { %4095 = vmatprep.mubr.msk.bf16.mxu1 %vm4217_vm0, %v4216_v5  ;;  %v2870_v54 = vrot.slane %v2837_v15, 3 }
 0x142   : > { %v2871_v21 = vsel %vm2481_vm9, %v2868_v2, %v2870_v54  ;;  %v2873_v39 = vsel %vm2481_vm9, %v2870_v54, %v2872_v57 }
 0x143   : > { %4088 = vmatmul.mubr.bf16.gmra.mxu0 %v2867_v27 }
 0x144   : > { %4091 = vmatprep.mubr.msk.bf16.mxu0 %vm4217_vm0, %v4216_v5 }
 0x147   : > { %4096 = vmatmul.mubr.bf16.vlgmr.msra.gmra.mxu1 %v2871_v21 }
 0x148   : > { %4099 = vmatprep.mubr.msk.bf16.mxu1 %vm4217_vm0, %v4216_v5  ;;  %vm5556_vm0 = vmor %vm3105_vm13, %vm3106_vm14 }
 0x14b   : > { %4092 = vmatmul.mubr.bf16.gmra.mxu0 %v2869_v59 }
 0x14f   : > { %4100 = vmatmul.mubr.bf16.gmra.mxu1 %v2873_v39 }
 0x15b   : > { %v754_v61 = vpop.f32.mrf.mxu0 }
 0x15d   : > { %v3797_v47 = vpop.f32.mrf.mxu0 }
 0x15e   : > { %v875_v18 = vpop.f32.mrf.mxu1 }
 0x15f   : > { %v876_v20 = vadd.f32 %v875_v18, %v754_v61  ;;  %v757_v31 = vpop.f32.mrf.mxu0 }
 0x160   : > { %v3833_v40 = vpop.f32.mrf.mxu1 }
 0x161   : > { %v3798_v11 = vpop.f32.mrf.mxu0 }
 0x162   : > { %v878_v14 = vpop.f32.mrf.mxu1 }
 0x163   : > { %v879_v13 = vadd.f32 %v878_v14, %v757_v31  ;;  %v762_v22 = vpop.f32.mrf.mxu0 }
 0x164   : > { %v3834_v60 = vpop.f32.mrf.mxu1 }
 0x165   : > { %v3801_v24 = vpop.f32.mrf.mxu0 }
 0x166   : > { %v883_v5 = vpop.f32.mrf.mxu1 }
 0x167   : > { %v884_v38 = vadd.f32 %v883_v5, %v762_v22  ;;  %v765_v46 = vpop.f32.mrf.mxu0 }
 0x168   : > { %v3837_v51 = vpop.f32.mrf.mxu1 }
 0x169   : > { %v3802_v41 = vpop.f32.mrf.mxu0 }
 0x16a   : > { %v886_v35 = vpop.f32.mrf.mxu1 }
 0x16b   : > { %v887_v56 = vadd.f32 %v886_v35, %v765_v46  ;;  %v770_v28 = vpop.f32.mrf.mxu0 }
 0x16c   : > { %v3838_v29 = vpop.f32.mrf.mxu1 }
 0x16d   : > { %v3805_v53 = vpop.f32.mrf.mxu0 }
 0x16e   : > { %v891_v25 = vpop.f32.mrf.mxu1 }
 0x16f   : > { %v892_v36 = vadd.f32 %v891_v25, %v770_v28  ;;  %v773_v30 = vpop.f32.mrf.mxu0 }
 0x170   : > { %v3841_v33 = vpop.f32.mrf.mxu1 }
 0x171   : > { %v3806_v3 = vpop.f32.mrf.mxu0 }
 0x172   : > { %v894_v17 = vpop.f32.mrf.mxu1 }
 0x173   : > { %v895_v12 = vadd.f32 %v894_v17, %v773_v30  ;;  %v778_v63 = vpop.f32.mrf.mxu0 }
 0x174   : > { %v3842_v50 = vpop.f32.mrf.mxu1 }
 0x175   : > { %v3809_v19 = vpop.f32.mrf.mxu0 }
 0x176   : > { %v899_v58 = vpop.f32.mrf.mxu1 }
 0x177   : > { %v900_v4 = vadd.f32 %v899_v58, %v778_v63  ;;  %v781_v42 = vpop.f32.mrf.mxu0 }
 0x178   : > { %v3845_v32 = vpop.f32.mrf.mxu1 }
 0x179   : > { %v3810_v55 = vpop.f32.mrf.mxu0 }
 0x17a   : > { %v902_v0 = vpop.f32.mrf.mxu1 }
 0x17b   : > { %v903_v37 = vadd.f32 %v902_v0, %v781_v42  ;;  %v786_v10 = vpop.f32.mrf.mxu0 }
 0x17c   : > { %v3846_v23 = vpop.f32.mrf.mxu1 }
 0x17d   : > { %v3813_v15 = vpop.f32.mrf.mxu0 }
 0x17e   : > { %v907_v34 = vpop.f32.mrf.mxu1 }
 0x17f   : > { %v908_v45 = vadd.f32 %v907_v34, %v786_v10  ;;  %v789_v62 = vpop.f32.mrf.mxu0 }
 0x180   : > { %v3849_v44 = vpop.f32.mrf.mxu1 }
 0x181   : > { %v3814_v54 = vpop.f32.mrf.mxu0 }
 0x182   : > { %v910_v27 = vpop.f32.mrf.mxu1 }
 0x183   : > { %v911_v2 = vadd.f32 %v910_v27, %v789_v62  ;;  %v1139_v43 = vpop.f32.mrf.mxu0 }
 0x184   : > { %v3850_v21 = vpop.f32.mrf.mxu1  ;;  %v1178_v57 = vadd.f32 %v1139_v43, %v876_v20 }
 0x185   : > { %v3869_v59 = vpop.f32.mrf.mxu0 }
 0x187   : > { %v1142_v39 = vpop.f32.mrf.mxu0 }
 0x188   : > { %v1179_v61 = vadd.f32 %v1142_v39, %v879_v13 }
 0x189   : > { %v3870_v47 = vpop.f32.mrf.mxu0 }
 0x18b   : > { %v1147_v18 = vpop.f32.mrf.mxu0 }
 0x18c   : > { %v1180_v31 = vadd.f32 %v1147_v18, %v884_v38 }
 0x18d   : > { %v3873_v40 = vpop.f32.mrf.mxu0 }
 0x18f   : > { %v1150_v11 = vpop.f32.mrf.mxu0  ;;  %v1461_v14 = vpop.f32.mrf.mxu1 }
 0x190   : > { %v1181_v22 = vadd.f32 %v1150_v11, %v887_v56  ;;  %v1500_v60 = vadd.f32 %v1461_v14, %v1178_v57 }
 0x191   : > { %v3874_v24 = vpop.f32.mrf.mxu0  ;;  %v3905_v5 = vpop.f32.mrf.mxu1 }
 0x193   : > { %v1155_v46 = vpop.f32.mrf.mxu0  ;;  %v1464_v51 = vpop.f32.mrf.mxu1 }
 0x194   : > { %v1182_v41 = vadd.f32 %v1155_v46, %v892_v36  ;;  %v1501_v35 = vadd.f32 %v1464_v51, %v1179_v61 }
 0x195   : > { %v3877_v28 = vpop.f32.mrf.mxu0  ;;  %v3906_v29 = vpop.f32.mrf.mxu1 }
 0x197   : > { %v1158_v20 = vpop.f32.mrf.mxu0  ;;  %v1469_v53 = vpop.f32.mrf.mxu1 }
 0x198   : > { %v1183_v25 = vadd.f32 %v1158_v20, %v895_v12  ;;  %v1502_v13 = vadd.f32 %v1469_v53, %v1180_v31 }
 0x199   : > { %v3878_v30 = vpop.f32.mrf.mxu0  ;;  %v3909_v33 = vpop.f32.mrf.mxu1 }
 0x19b   : > { %v1163_v38 = vpop.f32.mrf.mxu0  ;;  %v1472_v3 = vpop.f32.mrf.mxu1 }
 0x19c   : > { %v1184_v17 = vadd.f32 %v1163_v38, %v900_v4  ;;  %v1503_v63 = vadd.f32 %v1472_v3, %v1181_v22 }
 0x19d   : > { %v3881_v56 = vpop.f32.mrf.mxu0  ;;  %v3910_v50 = vpop.f32.mrf.mxu1 }
 0x19f   : > { %v1166_v19 = vpop.f32.mrf.mxu0  ;;  %v1477_v58 = vpop.f32.mrf.mxu1 }
 0x1a0   : > { %v1185_v42 = vadd.f32 %v1166_v19, %v903_v37  ;;  %v1504_v32 = vadd.f32 %v1477_v58, %v1182_v41 }
 0x1a1   : > { %v3882_v36 = vpop.f32.mrf.mxu0  ;;  %v3913_v55 = vpop.f32.mrf.mxu1 }
 0x1a3   : > { %v1171_v0 = vpop.f32.mrf.mxu0  ;;  %v1480_v10 = vpop.f32.mrf.mxu1 }
 0x1a4   : > { %v1186_v23 = vadd.f32 %v1171_v0, %v908_v45  ;;  %v1505_v15 = vadd.f32 %v1480_v10, %v1183_v25 }
 0x1a5   : > { %v3885_v12 = vpop.f32.mrf.mxu0  ;;  %v3914_v34 = vpop.f32.mrf.mxu1 }
 0x1a7   : > { %v1174_v62 = vpop.f32.mrf.mxu0  ;;  %v1485_v44 = vpop.f32.mrf.mxu1 }
 0x1a8   : > { %v1187_v54 = vadd.f32 %v1174_v62, %v911_v2  ;;  %v1506_v27 = vadd.f32 %v1485_v44, %v1184_v17 }
 0x1a9   : > { %v3886_v4 = vpop.f32.mrf.mxu0  ;;  %v3917_v43 = vpop.f32.mrf.mxu1 }
 0x1ab   : > { %v1488_v21 = vpop.f32.mrf.mxu1  ;;  %v1781_v57 = vpop.f32.mrf.mxu0 }
 0x1ac   : > { %v1507_v59 = vadd.f32 %v1488_v21, %v1185_v42  ;;  %v5500_v39 = vadd.f32 %v1781_v57, %v1500_v60 }
 0x1ad   : > { %v3918_v37 = vpop.f32.mrf.mxu1  ;;  %v3941_v61 = vpop.f32.mrf.mxu0 }
 0x1af   : > { %v1493_v47 = vpop.f32.mrf.mxu1  ;;  %v1784_v18 = vpop.f32.mrf.mxu0 }
 0x1b0   : > { %v1508_v31 = vadd.f32 %v1493_v47, %v1186_v23  ;;  %v5502_v45 = vadd.f32 %v1784_v18, %v1501_v35 }
 0x1b1   : > { %v3921_v40 = vpop.f32.mrf.mxu1  ;;  %v3942_v11 = vpop.f32.mrf.mxu0 }
 0x1b3   : > { %v1496_v14 = vpop.f32.mrf.mxu1  ;;  %v1789_v22 = vpop.f32.mrf.mxu0 }
 0x1b4   : > { %v1509_v2 = vadd.f32 %v1496_v14, %v1187_v54  ;;  %v1822_v24 = vadd.f32 %v1789_v22, %v1502_v13 }
 0x1b5   : > { %v3922_v5 = vpop.f32.mrf.mxu1  ;;  %v3945_v46 = vpop.f32.mrf.mxu0 }
 0x1b7   : > { %v1792_v51 = vpop.f32.mrf.mxu0  ;;  %v5504_v41 = vpop.f32.mrf.mxu1 }
 0x1b8   : > { %v5506_v60 = vadd.f32 %v1792_v51, %v1503_v63 }
 0x1b9   : > { %v3946_v28 = vpop.f32.mrf.mxu0  ;;  %v3977_v29 = vpop.f32.mrf.mxu1 }
 0x1bb   : > { %v1797_v20 = vpop.f32.mrf.mxu0  ;;  %v5508_v53 = vpop.f32.mrf.mxu1 }
 0x1bc   : > { %v1824_v35 = vadd.f32 %v1797_v20, %v1504_v32 }
 0x1bd   : > { %v3949_v25 = vpop.f32.mrf.mxu0  ;;  %v3978_v30 = vpop.f32.mrf.mxu1 }
 0x1bf   : > { %v1800_v33 = vpop.f32.mrf.mxu0  ;;  %v2063_v38 = vpop.f32.mrf.mxu1 }
 0x1c0   : > { %v1825_v3 = vadd.f32 %v1800_v33, %v1505_v15  ;;  %v5510_v17 = vadd.f32 %v2063_v38, %v1822_v24 }
 0x1c1   : > { %v3950_v13 = vpop.f32.mrf.mxu0  ;;  %v3981_v56 = vpop.f32.mrf.mxu1 }
 0x1c3   : > { %v1805_v50 = vpop.f32.mrf.mxu0  ;;  %v5512_v19 = vpop.f32.mrf.mxu1 }
 0x1c4   : > { %v5514_v63 = vadd.f32 %v1805_v50, %v1506_v27 }
 0x1c5   : > { %v3953_v58 = vpop.f32.mrf.mxu0  ;;  %v3982_v42 = vpop.f32.mrf.mxu1 }
 0x1c7   : > { %v1808_v36 = vpop.f32.mrf.mxu0  ;;  %v2071_v55 = vpop.f32.mrf.mxu1 }
 0x1c8   : > { %v5516_v0 = vadd.f32 %v1808_v36, %v1507_v59  ;;  %v5518_v32 = vadd.f32 %v2071_v55, %v1824_v35 }
 0x1c9   : > { %v3954_v10 = vpop.f32.mrf.mxu0  ;;  %v3985_v23 = vpop.f32.mrf.mxu1 }
 0x1cb   : > { %v1813_v15 = vpop.f32.mrf.mxu0  ;;  %v2074_v12 = vpop.f32.mrf.mxu1 }
 0x1cc   : > { %v5520_v34 = vadd.f32 %v1813_v15, %v1508_v31  ;;  %v5522_v62 = vadd.f32 %v2074_v12, %v1825_v3 }
 0x1cd   : > { %v3957_v44 = vpop.f32.mrf.mxu0  ;;  %v3986_v54 = vpop.f32.mrf.mxu1 }
 0x1ce   : > { %v2094_v54 = vadd.f32 %v5504_v41, %v5500_v39  ;;  %v2097_v39 = vadd.f32 %v5512_v19, %v5506_v60 }
 0x1cf   : > { %v1816_v27 = vpop.f32.mrf.mxu0  ;;  %v2079_v4 = vpop.f32.mrf.mxu1 }
 0x1d0   : > { %v5524_v43 = vadd.f32 %v1816_v27, %v1509_v2  ;;  %v2100_v41 = vadd.f32 %v2079_v4, %v5514_v63 }
 0x1d1   : > { %v3958_v21 = vpop.f32.mrf.mxu0  ;;  %v3989_v57 = vpop.f32.mrf.mxu1 }
 0x1d3   : > { %v2082_v59 = vpop.f32.mrf.mxu1  ;;  %v2377_v37 = vpop.f32.mrf.mxu0 }
 0x1d4   : > { %v2416_v57 = vadd.f32 %v2377_v37, %v2094_v54  ;;  %v2101_v37 = vadd.f32 %v2082_v59, %v5516_v0 }
 0x1d5   : > { %v3990_v61 = vpop.f32.mrf.mxu1  ;;  %v4013_v47 = vpop.f32.mrf.mxu0 }
 0x1d7   : > { %v2087_v18 = vpop.f32.mrf.mxu1  ;;  %v2380_v40 = vpop.f32.mrf.mxu0 }
 0x1d9   : > { %v3993_v11 = vpop.f32.mrf.mxu1  ;;  %v4014_v14 = vpop.f32.mrf.mxu0 }
 0x1da   : > { %v2095_v11 = vadd.f32 %v5508_v53, %v5502_v45 }
 0x1db   : > { %v2090_v31 = vpop.f32.mrf.mxu1  ;;  %v2385_v22 = vpop.f32.mrf.mxu0 }
 0x1dd   : > { %v3994_v24 = vpop.f32.mrf.mxu1  ;;  %v4017_v5 = vpop.f32.mrf.mxu0 }
 0x1df   : > { %v2388_v46 = vpop.f32.mrf.mxu0  ;;  %v2687_v51 = vpop.f32.mrf.mxu1 }
 0x1e0   : > { %v2726_v14 = vadd.f32 %v2687_v51, %v2416_v57  ;;  %v2418_v51 = vadd.f32 %v2385_v22, %v5510_v17 }
 0x1e1   : > { %v4018_v28 = vpop.f32.mrf.mxu0  ;;  %v4049_v29 = vpop.f32.mrf.mxu1 }
 0x1e2   : > { %v2417_v28 = vadd.f32 %v2380_v40, %v2095_v11  ;;  %v2102_v40 = vadd.f32 %v2087_v18, %v5520_v34 }
 0x1e3   : > { %v2393_v2 = vpop.f32.mrf.mxu0  ;;  %v2690_v20 = vpop.f32.mrf.mxu1 }
 0x1e5   : > { %v4021_v35 = vpop.f32.mrf.mxu0  ;;  %v4050_v25 = vpop.f32.mrf.mxu1 }
 0x1e7   : > { %v2396_v30 = vpop.f32.mrf.mxu0  ;;  %v2695_v33 = vpop.f32.mrf.mxu1 }
 0x1e8   : > { %v2421_v60 = vadd.f32 %v2396_v30, %v5522_v62  ;;  %v2728_v0 = vadd.f32 %v2695_v33, %v2418_v51  ;;  %v3221_v33 = vld [vmem:[%s4288_s14 + $0x4] sm:$0xe] }
 0x1e9   : > { %v4022_v38 = vpop.f32.mrf.mxu0  ;;  %v4053_v3 = vpop.f32.mrf.mxu1 }
 0x1ea   : > { %v2727_v38 = vadd.f32 %v2690_v20, %v2417_v28 }
 0x1eb   : > { %v2401_v13 = vpop.f32.mrf.mxu0  ;;  %v2698_v56 = vpop.f32.mrf.mxu1 }
 0x1ec   : > { %v2422_v34 = vadd.f32 %v2401_v13, %v2100_v41 }
 0x1ed   : > { %v4025_v50 = vpop.f32.mrf.mxu0  ;;  %v4054_v58 = vpop.f32.mrf.mxu1 }
 0x1ee   : > { %v2419_v58 = vadd.f32 %v2388_v46, %v2097_v39 }
 0x1ef   : > { %v2404_v42 = vpop.f32.mrf.mxu0  ;;  %v2703_v36 = vpop.f32.mrf.mxu1 }
 0x1f0   : > { %v2729_v18 = vadd.f32 %v2698_v56, %v2419_v58  ;;  %v2423_v17 = vadd.f32 %v2404_v42, %v2101_v37 }
 0x1f1   : > { %v4026_v55 = vpop.f32.mrf.mxu0  ;;  %v4057_v10 = vpop.f32.mrf.mxu1 }
 0x1f2   : > { %v2420_v55 = vadd.f32 %v2393_v2, %v5518_v32 }
 0x1f3   : > { %v2409_v23 = vpop.f32.mrf.mxu0  ;;  %v2706_v15 = vpop.f32.mrf.mxu1 }
 0x1f4   : > { %v2730_v2 = vadd.f32 %v2703_v36, %v2420_v55  ;;  %v2424_v62 = vadd.f32 %v2409_v23, %v2102_v40  ;;  %v2731_v54 = vadd.f32 %v2706_v15, %v2421_v60 }
 0x1f5   : > { %v4029_v12 = vpop.f32.mrf.mxu0  ;;  %v4058_v44 = vpop.f32.mrf.mxu1 }
 0x1f7   : > { %v2412_v27 = vpop.f32.mrf.mxu0  ;;  %v2711_v21 = vpop.f32.mrf.mxu1 }
 0x1f8   : > { %v2732_v57 = vadd.f32 %v2711_v21, %v2422_v34 }
 0x1f9   : > { %v4030_v61 = vpop.f32.mrf.mxu0  ;;  %v4061_v47 = vpop.f32.mrf.mxu1 }
 0x1fb   : > { %v2714_v24 = vpop.f32.mrf.mxu1  ;;  %v2961_v5 = vpop.f32.mrf.mxu0 }
 0x1fc   : > { %v3000_v29 = vadd.f32 %v2961_v5, %v2726_v14 }
 0x1fd   : > { %v4062_v35 = vpop.f32.mrf.mxu1  ;;  %v4085_v25 = vpop.f32.mrf.mxu0 }
 0x1fe   : > { %v3010_v3 = vmul.f32 %v3000_v29, %v4916_v26  ;;  %v2103_v26 = vadd.f32 %v2090_v31, %v5524_v43  ;;  %v2733_v29 = vadd.f32 %v2714_v24, %v2423_v17 }
 0x1ff   : > { %v2719_v45 = vpop.f32.mrf.mxu1  ;;  %v2964_v53 = vpop.f32.mrf.mxu0 }
 0x200   : > { %v3564_v20 = vpack.c.bf16 %v3010_v3, %v3010_v3  ;;  %v3001_v50 = vadd.f32 %v2964_v53, %v2727_v38  ;;  %v3036_v22 = vmul.f32 %v3010_v3, %v3010_v3  ;;  %v2425_v11 = vadd.f32 %v2412_v27, %v2103_v26 }
 0x201   : > { %v4065_v19 = vpop.f32.mrf.mxu1  ;;  %v4086_v63 = vpop.f32.mrf.mxu0  ;;  %v5552_v27 = vadd.f32 %v2719_v45, %v2424_v62 }
 0x202   : > { %v3109_v4 = vshrl.u32 %v3564_v20, 16  ;;  %v3112_v59 = vshll.u32 %v3564_v20, 16  ;;  %v3011_v10 = vmul.f32 %v3001_v50, %v4914_v49 }
 0x203   : > { %v2722_v12 = vpop.f32.mrf.mxu1  ;;  %v2969_v44 = vpop.f32.mrf.mxu0 }
 0x204   : > { %v3111_v43 = vrot.slane %v3109_v4, 6  ;;  %v3114_v31 = vrot.slane %v3112_v59, 7  ;;  %v3020_v46 = vadd.f32 %v3011_v10, %v3010_v3  ;;  %v3037_v32 = vmul.f32 %v3011_v10, %v3011_v10 }
 0x205   : > { %v3565_v49 = vpack.c.bf16 %v3011_v10, %v3011_v10  ;;  %v3002_v13 = vadd.f32 %v2969_v44, %v2728_v0  ;;  %v4066_v56 = vpop.f32.mrf.mxu1  ;;  %v4089_v42 = vpop.f32.mrf.mxu0  ;;  %v5564_v50 = vadd.f32 %v2722_v12, %v2425_v11 }
 0x206   : > { %v3115_v61 = vor.u32 %v3114_v31, %v3111_v43  ;;  %v3046_v47 = vadd.f32 %v3037_v32, %v3036_v22 }
 0x207   : > { %v3118_v14 = vshrl.u32 %v3565_v49, 16  ;;  %v3121_v36 = vshll.u32 %v3565_v49, 16  ;;  %v3012_v23 = vmul.f32 %v3002_v13, %v4946_v7  ;;  %v2972_v5 = vpop.f32.mrf.mxu0  ;;  %v2985_v28 = vpop.f32.mrf.mxu1 }
 0x208   : > { %v3222_v35 = vsel %vm5543_vm15, %v3115_v61, %v3221_v33  ;;  %v3003_v25 = vadd.f32 %v2972_v5, %v2729_v18  ;;  %v3006_v38 = vadd.f32 %v2985_v28, %v2732_v57  ;;  %v3116_v51 = vrot.slane %v3115_v61, 4 }
 0x209   : > { %3223 = vst [vmem:[%s4288_s14 + $0x4] sm:$0xe] %v3222_v35  ;;  %v3120_v3 = vrot.slane %v3118_v14, 6  ;;  %v3123_v39 = vrot.slane %v3121_v36, 7  ;;  %v3021_v15 = vadd.f32 %v3020_v46, %v3012_v23  ;;  %v3038_v21 = vmul.f32 %v3012_v23, %v3012_v23  ;;  %v4090_v41 = vpop.f32.mrf.mxu0  ;;  %v4097_v37 = vpop.f32.mrf.mxu1 }
 0x20a   : > { %v3566_v24 = vpack.c.bf16 %v3012_v23, %v3012_v23  ;;  %v3013_v53 = vmul.f32 %v3003_v25, %v4944_v6  ;;  %v5562_v40 = vmul.f32 %v3006_v38, %v5019_v52 }
 0x20b   : > { %v3124_v20 = vor.u32 %v3123_v39, %v3120_v3  ;;  %v3047_v26 = vadd.f32 %v3046_v47, %v3038_v21  ;;  %v2977_v45 = vpop.f32.mrf.mxu0  ;;  %v2988_v58 = vpop.f32.mrf.mxu1 }
 0x20c   : > { %v3128_v55 = vshrl.u32 %v3566_v24, 16  ;;  %v3131_v60 = vshll.u32 %v3566_v24, 16  ;;  %v3022_v19 = vadd.f32 %v3021_v15, %v3013_v53  ;;  %v3039_v63 = vmul.f32 %v3013_v53, %v3013_v53 }
 0x20d   : > { %v3125_v0 = vsel %vm5556_vm0, %v3116_v51, %v3124_v20  ;;  %v3126_v4 = vrot.slane %v3124_v20, 4  ;;  %v3567_v6 = vpack.c.bf16 %v3013_v53, %v3013_v53  ;;  %v5570_v52 = vmul.f32 %v5562_v40, %v5562_v40  ;;  %v4093_v59 = vpop.f32.mrf.mxu0  ;;  %v4098_v10 = vpop.f32.mrf.mxu1 }
 0x20e   : > { %3224 = vst [vmem:[%s4288_s14 + $0x8] sm:$0xf] %v3125_v0  ;;  %v3130_v34 = vrot.slane %v3128_v55, 6  ;;  %v3133_v18 = vrot.slane %v3131_v60, 7  ;;  %v3048_v17 = vadd.f32 %v3047_v26, %v3039_v63  ;;  %v3570_v22 = vpack.c.bf16 %v5562_v40, %v5562_v40 }
 0x20f   : > { %v3138_v12 = vshrl.u32 %v3567_v6, 16  ;;  %v3141_v44 = vshll.u32 %v3567_v6, 16  ;;  %v3004_v43 = vadd.f32 %v2977_v45, %v2730_v2  ;;  %v3007_v31 = vadd.f32 %v2988_v58, %v2733_v29  ;;  %v2980_v46 = vpop.f32.mrf.mxu0  ;;  %v2993_v32 = vpop.f32.mrf.mxu1 }
 0x210   : > { %v3134_v62 = vor.u32 %v3133_v18, %v3130_v34  ;;  %v3168_v30 = vshrl.u32 %v3570_v22, 16  ;;  %v3171_v33 = vshll.u32 %v3570_v22, 16  ;;  %v3005_v49 = vadd.f32 %v2980_v46, %v2731_v54 }
 0x211   : > { %v3140_v13 = vrot.slane %v3138_v12, 6  ;;  %v3143_v56 = vrot.slane %v3141_v44, 7  ;;  %v3014_v42 = vmul.f32 %v3004_v43, %v4996_v48  ;;  %v3017_v57 = vmul.f32 %v3007_v31, %v5017_v8  ;;  %v4094_v61 = vpop.f32.mrf.mxu0  ;;  %v4101_v47 = vpop.f32.mrf.mxu1 }
 0x212   : > { %v3135_v11 = vsel %vm5556_vm0, %v3126_v4, %v3134_v62  ;;  %v3136_v2 = vrot.slane %v3134_v62, 4  ;;  %v3170_v14 = vrot.slane %v3168_v30, 6  ;;  %v3173_v36 = vrot.slane %v3171_v33, 7 }
 0x213   : > { %3225 = vst [vmem:[%s4288_s14 + $0xc] sm:$0xf] %v3135_v11  ;;  %v3144_v23 = vor.u32 %v3143_v56, %v3140_v13  ;;  %v3023_v5 = vadd.f32 %v3022_v19, %v3014_v42  ;;  %v3040_v28 = vmul.f32 %v3014_v42, %v3014_v42  ;;  %v3568_v54 = vpack.c.bf16 %v3014_v42, %v3014_v42  ;;  %v2996_v29 = vpop.f32.mrf.mxu1 }
 0x214   : > { %v3174_v35 = vor.u32 %v3173_v36, %v3170_v14  ;;  %v3043_v25 = vmul.f32 %v3017_v57, %v3017_v57  ;;  %v3571_v48 = vpack.c.bf16 %v3017_v57, %v3017_v57  ;;  %v3015_v8 = vmul.f32 %v3005_v49, %v4994_v1 }
 0x215   : > { %v3145_v38 = vsel %vm5556_vm0, %v3136_v2, %v3144_v23  ;;  %v3146_v3 = vrot.slane %v3144_v23, 4  ;;  %v3049_v39 = vadd.f32 %v3048_v17, %v3040_v28  ;;  %v3148_v15 = vshrl.u32 %v3568_v54, 16  ;;  %v4102_v21 = vpop.f32.mrf.mxu1 }
 0x216   : > { %3226 = vst [vmem:[%s4288_s14 + $0x10] sm:$0xf] %v3145_v38  ;;  %v3176_v41 = vrot.slane %v3174_v35, 4  ;;  %v3151_v37 = vshll.u32 %v3568_v54, 16  ;;  %v3178_v24 = vshrl.u32 %v3571_v48, 16  ;;  %v3181_v53 = vshll.u32 %v3571_v48, 16 }
 0x217   : > { %v3150_v51 = vrot.slane %v3148_v15, 6  ;;  %v3024_v20 = vadd.f32 %v3023_v5, %v3015_v8  ;;  %v3041_v26 = vmul.f32 %v3015_v8, %v3015_v8  ;;  %v3569_v45 = vpack.c.bf16 %v3015_v8, %v3015_v8  ;;  %v3235_v15 = vld [vmem:[%s4288_s14 + $0x2c] sm:$0x3] }
 0x218   : > { %v3153_v58 = vrot.slane %v3151_v37, 7  ;;  %v3180_v55 = vrot.slane %v3178_v24, 6  ;;  %v3183_v60 = vrot.slane %v3181_v53, 7  ;;  %v3008_v1 = vadd.f32 %v2993_v32, %v5552_v27 }
 0x219   : > { %v3025_v19 = vadd.f32 %v3024_v20, %v5562_v40  ;;  %v3050_v63 = vadd.f32 %v3049_v39, %v3041_v26  ;;  %v3158_v0 = vshrl.u32 %v3569_v45, 16  ;;  %v3161_v4 = vshll.u32 %v3569_v45, 16 }
 0x21a   : > { %v3154_v6 = vor.u32 %v3153_v58, %v3150_v51  ;;  %v3184_v59 = vor.u32 %v3183_v60, %v3180_v55  ;;  %v3018_v10 = vmul.f32 %v3008_v1, %v5086_v9  ;;  %v3009_v34 = vadd.f32 %v2996_v29, %v5564_v50 }
 0x21b   : > { %v3051_v18 = vadd.f32 %v3050_v63, %v5570_v52  ;;  %v3160_v17 = vrot.slane %v3158_v0, 6  ;;  %v3163_v22 = vrot.slane %v3161_v4, 7  ;;  %v3026_v12 = vadd.f32 %v3025_v19, %v3017_v57 }
 0x21c   : > { %v3155_v27 = vsel %vm5556_vm0, %v3146_v3, %v3154_v6  ;;  %v3156_v40 = vrot.slane %v3154_v6, 4  ;;  %v3185_v44 = vsel %vm5556_vm0, %v3176_v41, %v3184_v59  ;;  %v3044_v31 = vmul.f32 %v3018_v10, %v3018_v10 }
 0x21d   : > { %3227 = vst [vmem:[%s4288_s14 + $0x14] sm:$0xf] %v3155_v27  ;;  %3230 = vst [vmem:[%s4288_s14 + $0x20] sm:$0xf] %v3185_v44  ;;  %v3164_v43 = vor.u32 %v3163_v22, %v3160_v17  ;;  %v3027_v9 = vadd.f32 %v3026_v12, %v3018_v10  ;;  %v3052_v50 = vadd.f32 %v3051_v18, %v3043_v25  ;;  %v3186_v36 = vrot.slane %v3184_v59, 4 }
 0x21e   : > { %v3572_v46 = vpack.c.bf16 %v3018_v10, %v3018_v10  ;;  %v3019_v52 = vmul.f32 %v3009_v34, %v5084_v16 }
 0x21f   : > { %v3165_v32 = vsel %vm5556_vm0, %v3156_v40, %v3164_v43  ;;  %v3166_v62 = vrot.slane %v3164_v43, 4  ;;  %v3053_v30 = vadd.f32 %v3052_v50, %v3044_v31 }
 0x220   : > { %3228 = vst [vmem:[%s4288_s14 + $0x18] sm:$0xf] %v3165_v32  ;;  %v3188_v33 = vshrl.u32 %v3572_v46, 16  ;;  %v3191_v49 = vshll.u32 %v3572_v46, 16  ;;  %v3028_v13 = vadd.f32 %v3027_v9, %v3019_v52  ;;  %v3045_v56 = vmul.f32 %v3019_v52, %v3019_v52 }
 0x221   : > { %v3175_v42 = vsel %vm5556_vm0, %v3166_v62, %v3174_v35  ;;  %v3573_v57 = vpack.c.bf16 %v3019_v52, %v3019_v52 }
 0x222   : > { %3229 = vst [vmem:[%s4288_s14 + $0x1c] sm:$0xf] %v3175_v42  ;;  %v3190_v61 = vrot.slane %v3188_v33, 6  ;;  %v3193_v47 = vrot.slane %v3191_v49, 7  ;;  %v3029_v11 = vrot.slane %v3028_v13, 4  ;;  %v3054_v16 = vadd.f32 %v3053_v30, %v3045_v56 }
 0x223   : > { %v3198_v2 = vshrl.u32 %v3573_v57, 16  ;;  %v3201_v14 = vshll.u32 %v3573_v57, 16 }
 0x224   : > { %v3194_v23 = vor.u32 %v3193_v47, %v3190_v61  ;;  %v3030_v5 = vadd.f32 %v3029_v11, %v3028_v13  ;;  %v3055_v28 = vrot.slane %v3054_v16, 4 }
 0x225   : > { %v3200_v54 = vrot.slane %v3198_v2, 6  ;;  %v3203_v29 = vrot.slane %v3201_v14, 7 }
 0x226   : > { %v3195_v35 = vsel %vm5556_vm0, %v3186_v36, %v3194_v23  ;;  %v3031_v25 = vrot.slane %v3030_v5, 2  ;;  %v3056_v48 = vadd.f32 %v3055_v28, %v3054_v16  ;;  %v3196_v8 = vrot.slane %v3194_v23, 4 }
 0x227   : > { %3231 = vst [vmem:[%s4288_s14 + $0x24] sm:$0xf] %v3195_v35  ;;  %v3204_v38 = vor.u32 %v3203_v29, %v3200_v54 }
 0x228   : > { %v3032_v3 = vadd.f32 %v3031_v25, %v3030_v5  ;;  %v3057_v39 = vrot.slane %v3056_v48, 2 }
 0x229   : > { %v3205_v21 = vsel %vm5556_vm0, %v3196_v8, %v3204_v38  ;;  %v3206_v41 = vrot.slane %v3204_v38, 4 }
 0x22a   : > { %v3033_v37 = vrot.slane %v3032_v3, 1  ;;  %v3058_v24 = vadd.f32 %v3057_v39, %v3056_v48  ;;  %3232 = vst [vmem:[%s4288_s14 + $0x28] sm:$0xf] %v3205_v21 }
 0x22b   : > { %v3236_v53 = vsel %vm3234_vm1, %v3206_v41, %v3235_v15 }
 0x22c   : > { %v3034_v51 = vadd.f32 %v3033_v37, %v3032_v3  ;;  %v3059_v20 = vrot.slane %v3058_v24, 1  ;;  %3237 = vst [vmem:[%s4288_s14 + $0x2c] sm:$0x3] %v3236_v53 }
 0x22e   : > { %3035 = vst [vmem:[%s292_s22] sm:$0x1] %v3034_v51  ;;  %v3060_v26 = vadd.f32 %v3059_v20, %v3058_v24 }
 0x230   : > { %3061 = vst [vmem:[%s295_s27] sm:$0x1] %v3060_v26 }
 0x231 PF: > { %s18_s24 = sadd.s32 1, %s4213_s24  }
 0x232   : > { %p15_p4 = scmp.ge.s32.totalorder %s18_s24, 4  }
 0x234   :  { %17 = sbr.rel (!%p15_p4) target bundleno = 1 (0x1), region = 102 }

</bundles_post_ra>
